<compile_context>
chip_gen: v5e
topology: v5e:2x2
jax: 0.10.0
libtpu: 0.0.40
codegen_flags: <defaults>
</compile_context>

<pallas_src>
import jax
import jax.numpy as jnp
from jax.experimental import pallas as pl
from jax.experimental.pallas import tpu as pltpu

GROUPS = 32                  # nn.GroupNorm(32, ...)
EPS = 1e-5                   # GroupNorm default eps
LANE = 128                   # TPU lane width: channel dims are padded to this
VMEM_CAP_BYTES = 64 << 20    # conservative per-step cap (= v7x physical VMEM)


# ---------------------------------------------------------------------------
# small host-side helpers (all tiny, run under XLA / at trace time)
# ---------------------------------------------------------------------------
def _round_up(v, m):
    return (v + m - 1) // m * m


def _nbytes(shape, dtype):
    n = 1
    for d in shape:
        n *= int(d)
    return n * jnp.dtype(dtype).itemsize


def _swish(v):
    return v * jax.nn.sigmoid(v)


def _pad_lanes(a, target):
    """Zero-pad the last (channel / lane) axis of `a` to `target`."""
    pad = target - a.shape[-1]
    if pad == 0:
        return a
    return jnp.pad(a, [(0, 0)] * (a.ndim - 1) + [(0, pad)])


def _group_onehot(c_real, c_pad):
    """(c_pad, GROUPS) one-hot channel->group map; pad channels map to nothing."""
    cg = c_real // GROUPS
    c = jnp.arange(c_pad)[:, None]
    g = jnp.arange(GROUPS)[None, :]
    return (((c // cg) == g) & (c < c_real)).astype(jnp.float32)


def _prep_conv3x3_weights(w_hwio, cin_p, cout_p, dtype):
    """(3,3,Cin,Cout) -> lane-padded (3, 3*Cin_p, Cout_p), dx-major on axis 1."""
    kh, kw, cin, cout = w_hwio.shape
    w = jnp.pad(w_hwio, ((0, 0), (0, 0), (0, cin_p - cin), (0, cout_p - cout)))
    return w.reshape(kh, kw * cin_p, cout_p).astype(dtype)


# ---------------------------------------------------------------------------
# Fused stage kernel:
#   [GroupNorm (stats computed in-kernel) -> swish -> 3x3 "same" conv
#    -> bias(+temb)]  (+ identity residual | + fused 1x1 shortcut projection)
# ---------------------------------------------------------------------------
def _make_stage_kernel(H, W, cin_p, cout_p, group_count, shortcut, conv_dtype):
    # shortcut: "none" (stage 1), "identity" (stage 2, Cin==Cout),
    #           "project" (stage 2, 1x1 projection fused in-kernel)
    K = 3 * cin_p
    cnt = float(group_count)       # H * W * (real_C // GROUPS)

    def kernel(*refs):
        if shortcut == "project":
            (x_ref, m_ref, mt_ref, gamma_ref, beta_ref, w_ref, bias_ref,
             res_ref, sw_ref, sb_ref, o_ref, xcat) = refs
        elif shortcut == "identity":
            (x_ref, m_ref, mt_ref, gamma_ref, beta_ref, w_ref, bias_ref,
             res_ref, o_ref, xcat) = refs
        else:
            (x_ref, m_ref, mt_ref, gamma_ref, beta_ref, w_ref, bias_ref,
             o_ref, xcat) = refs

        # ---- GroupNorm statistics (whole image block already resident) ------
        xf = x_ref[0].astype(jnp.float32)                               # (H,W,Cp)
        s = jnp.sum(jnp.sum(xf, axis=0), axis=0, keepdims=True)         # (1,Cp)
        ss = jnp.sum(jnp.sum(xf * xf, axis=0), axis=0, keepdims=True)   # (1,Cp)
        mean_g = jnp.dot(s, m_ref[...], preferred_element_type=jnp.float32) / cnt
        ex2_g = jnp.dot(ss, m_ref[...], preferred_element_type=jnp.float32) / cnt
        # single-pass variance; clamp avoids NaN from cancellation
        var_g = jnp.maximum(ex2_g - mean_g * mean_g, 0.0)
        inv_g = jax.lax.rsqrt(var_g + EPS)
        mean_c = jnp.dot(mean_g, mt_ref[...], preferred_element_type=jnp.float32)
        inv_c = jnp.dot(inv_g, mt_ref[...], preferred_element_type=jnp.float32)
        sc = inv_c * gamma_ref[...]                                     # (1,Cp)
        scale = sc[None]                                                # (1,1,Cp)
        shift = (beta_ref[...] - mean_c * sc)[None]

        # ---- normalize + swish (f32 elementwise; only MXU operands narrowed) -
        xn = xf * scale + shift
        xn = xn * jax.nn.sigmoid(xn)
        xb = xn.astype(conv_dtype)                                      # (H,W,Cp)

        # ---- build dx-concatenated conv input in scratch: K = 3*Cin_p lanes --
        zc = jnp.zeros((H, 1, cin_p), conv_dtype)
        xl = jnp.concatenate([zc, xb[:, :W - 1, :]], axis=1)    # tap reading col x-1
        xr = jnp.concatenate([xb[:, 1:, :], zc], axis=1)        # tap reading col x+1
        xcat[0:1, :, :] = jnp.zeros((1, W, K), conv_dtype)               # top halo
        xcat[H + 1:H + 2, :, :] = jnp.zeros((1, W, K), conv_dtype)       # bottom halo
        xcat[1:H + 1, :, :] = jnp.concatenate([xl, xb, xr], axis=2)      # lane-dense

        # ---- 3 MXU taps; dy offsets live on the leading (untiled) axis -------
        acc = jnp.zeros((H, W, cout_p), jnp.float32)
        for dy in range(3):
            acc = acc + jax.lax.dot_general(
                xcat[dy:dy + H, :, :], w_ref[dy],
                (((2,), (0,)), ((), ())),
                preferred_element_type=jnp.float32)
        acc = acc + bias_ref[...].astype(jnp.float32)            # conv bias (+temb)

        # ---- residual / shortcut ---------------------------------------------
        if shortcut == "identity":
            acc = acc + res_ref[0].astype(jnp.float32)
        elif shortcut == "project":
            r = res_ref[0].astype(conv_dtype)                    # (H,W,Cres_p)
            acc = acc + jax.lax.dot_general(
                r, sw_ref[...], (((2,), (0,)), ((), ())),
                preferred_element_type=jnp.float32)
            acc = acc + sb_ref[...].astype(jnp.float32)

        o_ref[0] = acc.astype(o_ref.dtype)

    return kernel


def gn_swish_conv3x3(x, gmap, gmap_t, gamma, beta, w3, bias, *, group_count,
                     bias_per_batch, residual=None, short_w=None, short_b=None,
                     conv_dtype=jnp.bfloat16, out_dtype=None):
    """One fused ResidualBlock stage over lane-padded NHWC tensors."""
    N, H, W, cin_p = x.shape
    cout_p = w3.shape[-1]
    out_dtype = out_dtype or x.dtype

    if residual is None:
        shortcut = "none"
    elif short_w is None:
        shortcut = "identity"
    else:
        shortcut = "project"

    kernel = _make_stage_kernel(H, W, cin_p, cout_p, group_count, shortcut,
                                conv_dtype)

    bias_idx = (lambda n: (n, 0, 0)) if bias_per_batch else (lambda n: (0, 0, 0))
    in_specs = [
        pl.BlockSpec((1, H, W, cin_p), lambda n: (n, 0, 0, 0)),       # x / h
        pl.BlockSpec((cin_p, GROUPS), lambda n: (0, 0)),              # chan->group
        pl.BlockSpec((GROUPS, cin_p), lambda n: (0, 0)),              # group->chan
        pl.BlockSpec((1, cin_p), lambda n: (0, 0)),                   # gamma
        pl.BlockSpec((1, cin_p), lambda n: (0, 0)),                   # beta
        pl.BlockSpec((3, 3 * cin_p, cout_p), lambda n: (0, 0, 0)),    # conv weights
        pl.BlockSpec((1, 1, cout_p), bias_idx),                       # bias(+temb)
    ]
    args = [x, gmap, gmap_t, gamma, beta, w3, bias]

    if shortcut != "none":
        cres_p = residual.shape[-1]
        in_specs.append(pl.BlockSpec((1, H, W, cres_p), lambda n: (n, 0, 0, 0)))
        args.append(residual)
    if shortcut == "project":
        in_specs.append(pl.BlockSpec((cres_p, cout_p), lambda n: (0, 0)))
        in_specs.append(pl.BlockSpec((1, cout_p), lambda n: (0, 0)))
        args.append(short_w)
        args.append(short_b)

    # VMEM budget: double-buffered blocks + weights + concat scratch + f32 temps.
    est = (2 * _nbytes((1, H, W, cin_p), x.dtype)
           + 2 * _nbytes((1, H, W, cout_p), out_dtype)
           + 2 * _nbytes(w3.shape, w3.dtype)
           + _nbytes((H + 2, W, 3 * cin_p), conv_dtype)
           + 6 * H * W * max(cin_p, cout_p) * 4)
    if residual is not None:
        est += 2 * _nbytes(residual.shape[1:], residual.dtype)
    if est > VMEM_CAP_BYTES:
        # TODO(synk): spatial row tiling (grid=(N, H//TH) + halo DMA + separate
        # stats reduction) for stages whose whole-image block exceeds VMEM.
        raise ValueError(
            f"ResidualBlock stage needs ~{est >> 20} MiB VMEM per grid step "
            f"(cap {VMEM_CAP_BYTES >> 20} MiB); spatial tiling not implemented.")
    vmem_limit = min(VMEM_CAP_BYTES, max(32 << 20, int(est * 1.25)))

    return pl.pallas_call(
        kernel,
        out_shape=jax.ShapeDtypeStruct((N, H, W, cout_p), out_dtype),
        grid=(N,),
        in_specs=in_specs,
        out_specs=pl.BlockSpec((1, H, W, cout_p), lambda n: (n, 0, 0, 0)),
        scratch_shapes=[pltpu.VMEM((H + 2, W, 3 * cin_p), conv_dtype)],
        compiler_params=pltpu.CompilerParams(
            dimension_semantics=("parallel",),
            vmem_limit_bytes=vmem_limit),
    )(*args)


# ---------------------------------------------------------------------------
# ResidualBlock forward
# ---------------------------------------------------------------------------
def residual_block_nhwc(x, t, params, conv_dtype=jnp.bfloat16):
    """NHWC in / NHWC out (keep NHWC end-to-end across a UNet)."""
    N, H, W, cin = x.shape
    cout = params["conv1_w"].shape[-1]
    assert cin % GROUPS == 0 and cout % GROUPS == 0
    cin_p = _round_up(cin, LANE)
    cout_p = _round_up(cout, LANE)

    # Host-side (XLA) prep: all tiny or one-off.  In a full UNet the
    # activations stay lane-padded end-to-end, so the x pad amortizes away.
    xp = _pad_lanes(x, cin_p)
    m1 = _group_onehot(cin, cin_p)
    m2 = _group_onehot(cout, cout_p)
    g1 = _pad_lanes(params["norm1_g"], cin_p)
    be1 = _pad_lanes(params["norm1_b"], cin_p)
    g2 = _pad_lanes(params["norm2_g"], cout_p)
    be2 = _pad_lanes(params["norm2_b"], cout_p)
    w1 = _prep_conv3x3_weights(params["conv1_w"], cin_p, cout_p, conv_dtype)
    w2 = _prep_conv3x3_weights(params["conv2_w"], cout_p, cout_p, conv_dtype)

    # time-embedding MLP: tiny matmul, left to XLA, folded into conv1's bias.
    temb = _swish(t.astype(jnp.float32)) @ params["time_w"] + params["time_b"]
    bias1 = _pad_lanes(params["conv1_b"][None, :] + temb, cout_p).reshape(N, 1, cout_p)
    bias2 = _pad_lanes(params["conv2_b"][None, :], cout_p).reshape(1, 1, cout_p)

    # stage 1:  h = conv1(swish(norm1(x))) + conv1_b + temb
    h = gn_swish_conv3x3(xp, m1, m1.T, g1, be1, w1, bias1,
                         group_count=H * W * (cin // GROUPS),
                         bias_per_batch=True,
                         conv_dtype=conv_dtype, out_dtype=conv_dtype)

    # stage 2:  out = conv2(dropout(swish(norm2(h)))) + conv2_b + shortcut(x)
    # TODO(synk): nn.Dropout(0.1) omitted -- eval-mode (identity) semantics.
    kwargs = dict(group_count=H * W * (cout // GROUPS), bias_per_batch=False,
                  conv_dtype=conv_dtype, out_dtype=x.dtype)
    if cin != cout:
        sw = jnp.pad(params["short_w"],
                     ((0, cin_p - cin), (0, cout_p - cout))).astype(conv_dtype)
        sb = _pad_lanes(params["short_b"][None, :], cout_p)
        out = gn_swish_conv3x3(h, m2, m2.T, g2, be2, w2, bias2,
                               residual=xp, short_w=sw, short_b=sb, **kwargs)
    else:
        out = gn_swish_conv3x3(h, m2, m2.T, g2, be2, w2, bias2,
                               residual=xp, **kwargs)
    return out[..., :cout]


def residual_block(x_nchw, t, params, conv_dtype=jnp.bfloat16):
    """PyTorch-compatible NCHW interface (transposes only at the boundary)."""
    x = jnp.transpose(x_nchw, (0, 2, 3, 1))
    out = residual_block_nhwc(x, t, params, conv_dtype)
    return jnp.transpose(out, (0, 3, 1, 2))


# ---------------------------------------------------------------------------
# Deterministic parameter init (matches shapes & init scheme of the module)
# ---------------------------------------------------------------------------
def init_params(key, in_dim, out_dim, time_channels):
    ks = jax.random.split(key, 4)

    def kaiming(k, shape, fan_in):
        return jax.random.normal(k, shape, jnp.float32) * jnp.sqrt(2.0 / fan_in)

    def xavier(k, shape, fan_in, fan_out):
        return jax.random.normal(k, shape, jnp.float32) * jnp.sqrt(2.0 / (fan_in + fan_out))

    params = {
        "norm1_g": jnp.ones((1, in_dim), jnp.float32),
        "norm1_b": jnp.zeros((1, in_dim), jnp.float32),
        "conv1_w": kaiming(ks[0], (3, 3, in_dim, out_dim), 9 * in_dim),   # HWIO
        "conv1_b": jnp.zeros((out_dim,), jnp.float32),
        "norm2_g": jnp.ones((1, out_dim), jnp.float32),
        "norm2_b": jnp.zeros((1, out_dim), jnp.float32),
        "conv2_w": kaiming(ks[1], (3, 3, out_dim, out_dim), 9 * out_dim),
        "conv2_b": jnp.zeros((out_dim,), jnp.float32),
        "time_w": xavier(ks[2], (time_channels, out_dim), time_channels, out_dim),
        "time_b": jnp.zeros((1, out_dim), jnp.float32),
    }
    if in_dim != out_dim:
        params["short_w"] = kaiming(ks[3], (in_dim, out_dim), in_dim)
        params["short_b"] = jnp.zeros((out_dim,), jnp.float32)
    return params


# ---------------------------------------------------------------------------
# Pure-JAX reference for correctness check
# ---------------------------------------------------------------------------
def reference(x_nchw, t, params, in_dim, out_dim):
    def gn(x, gamma, beta):
        N, C, H, W = x.shape
        xr = x.reshape(N, GROUPS, C // GROUPS, H, W)
        mean = xr.mean(axis=(2, 3, 4), keepdims=True)
        var = ((xr - mean) ** 2).mean(axis=(2, 3, 4), keepdims=True)
        xn = ((xr - mean) / jnp.sqrt(var + EPS)).reshape(N, C, H, W)
        return xn * gamma.reshape(1, C, 1, 1) + beta.reshape(1, C, 1, 1)

    def conv(x, w_hwio, b):
        y = jax.lax.conv_general_dilated(x, w_hwio, (1, 1), "SAME",
                                         dimension_numbers=("NCHW", "HWIO", "NCHW"))
        return y + b.reshape(1, -1, 1, 1)

    h = conv(_swish(gn(x_nchw, params["norm1_g"], params["norm1_b"])),
             params["conv1_w"], params["conv1_b"])
    temb = _swish(t) @ params["time_w"] + params["time_b"]
    h = h + temb[:, :, None, None]
    h = conv(_swish(gn(h, params["norm2_g"], params["norm2_b"])),
             params["conv2_w"], params["conv2_b"])
    if in_dim != out_dim:
        sc = conv(x_nchw, params["short_w"].reshape(1, 1, in_dim, out_dim),
                  params["short_b"])
    else:
        sc = x_nchw
    return h + sc


if __name__ == "__main__":
    key = jax.random.PRNGKey(0)
    # GroupNorm(32, C) requires C % 32 == 0.
    N, H, W, time_channels = 2, 8, 8, 16

    # (in_dim, out_dim, conv/MXU dtype, tolerance):
    #   bf16 is the performance default; the f32 runs are a tight reference check.
    cases = (
        (32, 64, jnp.bfloat16, 1e-1),   # projected-shortcut variant, bf16 MXU
        (32, 32, jnp.bfloat16, 1e-1),   # identity-shortcut variant, bf16 MXU
        (32, 64, jnp.float32, 2e-3),
        (32, 32, jnp.float32, 2e-3),
    )
    for in_dim, out_dim, cdt, tol in cases:
        kx, kt, kp, key = jax.random.split(key, 4)
        x = jax.random.normal(kx, (N, in_dim, H, W), jnp.float32)
        t = jax.random.normal(kt, (N, time_channels), jnp.float32)
        params = init_params(kp, in_dim, out_dim, time_channels)

        run = jax.jit(lambda a, b, p: residual_block(a, b, p, conv_dtype=cdt))
        out = jax.block_until_ready(run(x, t, params))

        ref = reference(x, t, params, in_dim, out_dim)
        assert out.shape == (N, out_dim, H, W)
        err = float(jnp.max(jnp.abs(out - ref)))
        assert jnp.allclose(out, ref, atol=tol, rtol=tol), (in_dim, out_dim, str(cdt), err)

    print("KERNEL_OK")
</pallas_src>

<mosaic_0001>
module attributes {stable_mosaic.version = 11 : i64} {
  func.func @kernel(%arg0: i32, %arg1: memref<1x8x8x128xf32, #tpu.memory_space<vmem>>, %arg2: memref<128x32xf32, #tpu.memory_space<vmem>>, %arg3: memref<32x128xf32, #tpu.memory_space<vmem>>, %arg4: memref<1x128xf32, #tpu.memory_space<vmem>>, %arg5: memref<1x128xf32, #tpu.memory_space<vmem>>, %arg6: memref<3x384x128xbf16, #tpu.memory_space<vmem>>, %arg7: memref<1x1x128xf32, #tpu.memory_space<vmem>>, %arg8: memref<1x8x8x128xbf16, #tpu.memory_space<vmem>>, %arg9: memref<10x8x384xbf16, #tpu.memory_space<vmem>>) attributes {dimension_semantics = [#tpu.dimension_semantics<parallel>], iteration_bounds = array<i64: 2>, scalar_prefetch = 0 : i64, scratch_operands = 1 : i64, tpu.core_type = #tpu.core_type<tc>, window_params = [{transform_indices = @transform_0, window_bounds = array<i64: 1, 8, 8, 128>}, {pipeline_mode = #tpu.pipeline_mode<synchronous>, transform_indices = @transform_1, window_bounds = array<i64: 128, 32>}, {pipeline_mode = #tpu.pipeline_mode<synchronous>, transform_indices = @transform_2, window_bounds = array<i64: 32, 128>}, {pipeline_mode = #tpu.pipeline_mode<synchronous>, transform_indices = @transform_3, window_bounds = array<i64: 1, 128>}, {pipeline_mode = #tpu.pipeline_mode<synchronous>, transform_indices = @transform_4, window_bounds = array<i64: 1, 128>}, {pipeline_mode = #tpu.pipeline_mode<synchronous>, transform_indices = @transform_5, window_bounds = array<i64: 3, 384, 128>}, {transform_indices = @transform_6, window_bounds = array<i64: 1, 1, 128>}, {transform_indices = @transform_7, window_bounds = array<i64: 1, 8, 8, 128>}]} {
    %c0 = arith.constant 0 : index
    %c0_0 = arith.constant 0 : index
    %c0_1 = arith.constant 0 : index
    %c0_2 = arith.constant 0 : index
    %0 = vector.load %arg1[%c0, %c0_0, %c0_1, %c0_2] : memref<1x8x8x128xf32, #tpu.memory_space<vmem>>, vector<1x8x8x128xf32>
    %1 = vector.shape_cast %0 : vector<1x8x8x128xf32> to vector<8x8x128xf32>
    %cst = arith.constant dense<0.000000e+00> : vector<8x128xf32>
    %2 = vector.multi_reduction <add>, %1, %cst [0] : vector<8x8x128xf32> to vector<8x128xf32>
    %cst_3 = arith.constant dense<0.000000e+00> : vector<128xf32>
    %3 = vector.multi_reduction <add>, %2, %cst_3 [0] : vector<8x128xf32> to vector<128xf32>
    %4 = vector.shape_cast %3 : vector<128xf32> to vector<1x128xf32>
    %5 = arith.mulf %1, %1 : vector<8x8x128xf32>
    %cst_4 = arith.constant dense<0.000000e+00> : vector<8x128xf32>
    %6 = vector.multi_reduction <add>, %5, %cst_4 [0] : vector<8x8x128xf32> to vector<8x128xf32>
    %cst_5 = arith.constant dense<0.000000e+00> : vector<128xf32>
    %7 = vector.multi_reduction <add>, %6, %cst_5 [0] : vector<8x128xf32> to vector<128xf32>
    %8 = vector.shape_cast %7 : vector<128xf32> to vector<1x128xf32>
    %c0_6 = arith.constant 0 : index
    %c0_7 = arith.constant 0 : index
    %9 = vector.load %arg2[%c0_6, %c0_7] : memref<128x32xf32, #tpu.memory_space<vmem>>, vector<128x32xf32>
    %cst_8 = arith.constant dense<0.000000e+00> : vector<1x32xf32>
    %10 = tpu.matmul %4, %9, %cst_8 {dimension_numbers = #tpu.dot_dimension_numbers<[1], [0], [0], [1], [0, 0, 1, 1], [], []>} : vector<1x128xf32>, vector<128x32xf32>, vector<1x32xf32> -> vector<1x32xf32>
    %cst_9 = arith.constant 6.400000e+01 : f32
    %11 = vector.broadcast %cst_9 : f32 to vector<1x32xf32>
    %12 = arith.divf %10, %11 : vector<1x32xf32>
    %c0_10 = arith.constant 0 : index
    %c0_11 = arith.constant 0 : index
    %13 = vector.load %arg2[%c0_10, %c0_11] : memref<128x32xf32, #tpu.memory_space<vmem>>, vector<128x32xf32>
    %cst_12 = arith.constant dense<0.000000e+00> : vector<1x32xf32>
    %14 = tpu.matmul %8, %13, %cst_12 {dimension_numbers = #tpu.dot_dimension_numbers<[1], [0], [0], [1], [0, 0, 1, 1], [], []>} : vector<1x128xf32>, vector<128x32xf32>, vector<1x32xf32> -> vector<1x32xf32>
    %cst_13 = arith.constant 6.400000e+01 : f32
    %15 = vector.broadcast %cst_13 : f32 to vector<1x32xf32>
    %16 = arith.divf %14, %15 : vector<1x32xf32>
    %17 = arith.mulf %12, %12 : vector<1x32xf32>
    %18 = arith.subf %16, %17 : vector<1x32xf32>
    %cst_14 = arith.constant 0.000000e+00 : f32
    %19 = vector.broadcast %cst_14 : f32 to vector<1x32xf32>
    %20 = arith.maximumf %18, %19 : vector<1x32xf32>
    %cst_15 = arith.constant 9.99999974E-6 : f32
    %21 = vector.broadcast %cst_15 : f32 to vector<1x32xf32>
    %22 = arith.addf %20, %21 : vector<1x32xf32>
    %23 = math.rsqrt %22 : vector<1x32xf32>
    %c0_16 = arith.constant 0 : index
    %c0_17 = arith.constant 0 : index
    %24 = vector.load %arg3[%c0_16, %c0_17] : memref<32x128xf32, #tpu.memory_space<vmem>>, vector<32x128xf32>
    %cst_18 = arith.constant dense<0.000000e+00> : vector<1x128xf32>
    %25 = tpu.matmul %12, %24, %cst_18 {dimension_numbers = #tpu.dot_dimension_numbers<[1], [0], [0], [1], [0, 0, 1, 1], [], []>} : vector<1x32xf32>, vector<32x128xf32>, vector<1x128xf32> -> vector<1x128xf32>
    %c0_19 = arith.constant 0 : index
    %c0_20 = arith.constant 0 : index
    %26 = vector.load %arg3[%c0_19, %c0_20] : memref<32x128xf32, #tpu.memory_space<vmem>>, vector<32x128xf32>
    %cst_21 = arith.constant dense<0.000000e+00> : vector<1x128xf32>
    %27 = tpu.matmul %23, %26, %cst_21 {dimension_numbers = #tpu.dot_dimension_numbers<[1], [0], [0], [1], [0, 0, 1, 1], [], []>} : vector<1x32xf32>, vector<32x128xf32>, vector<1x128xf32> -> vector<1x128xf32>
    %c0_22 = arith.constant 0 : index
    %c0_23 = arith.constant 0 : index
    %28 = vector.load %arg4[%c0_22, %c0_23] : memref<1x128xf32, #tpu.memory_space<vmem>>, vector<1x128xf32>
    %29 = arith.mulf %27, %28 : vector<1x128xf32>
    %30 = vector.shape_cast %29 : vector<1x128xf32> to vector<1x1x128xf32>
    %c0_24 = arith.constant 0 : index
    %c0_25 = arith.constant 0 : index
    %31 = vector.load %arg5[%c0_24, %c0_25] : memref<1x128xf32, #tpu.memory_space<vmem>>, vector<1x128xf32>
    %32 = arith.mulf %25, %29 : vector<1x128xf32>
    %33 = arith.subf %31, %32 : vector<1x128xf32>
    %34 = vector.shape_cast %33 : vector<1x128xf32> to vector<1x1x128xf32>
    %35 = vector.broadcast %30 : vector<1x1x128xf32> to vector<8x8x128xf32>
    %36 = arith.mulf %1, %35 : vector<8x8x128xf32>
    %37 = vector.broadcast %34 : vector<1x1x128xf32> to vector<8x8x128xf32>
    %38 = arith.addf %36, %37 : vector<8x8x128xf32>
    %39 = arith.negf %38 : vector<8x8x128xf32>
    %40 = math.exp %39 : vector<8x8x128xf32>
    %cst_26 = arith.constant 1.000000e+00 : f32
    %41 = vector.broadcast %cst_26 : f32 to vector<8x8x128xf32>
    %42 = arith.addf %41, %40 : vector<8x8x128xf32>
    %43 = arith.divf %41, %42 : vector<8x8x128xf32>
    %44 = arith.mulf %38, %43 : vector<8x8x128xf32>
    %45 = arith.truncf %44 : vector<8x8x128xf32> to vector<8x8x128xbf16>
    %cst_27 = arith.constant 0.000000e+00 : bf16
    %46 = vector.broadcast %cst_27 : bf16 to vector<8x1x128xbf16>
    %47 = vector.extract_strided_slice %45 {offsets = [0, 0, 0], sizes = [8, 7, 128], strides = [1, 1, 1]} : vector<8x8x128xbf16> to vector<8x7x128xbf16>
    %48 = tpu.concatenate %46, %47 in 1 : vector<8x1x128xbf16>, vector<8x7x128xbf16> -> vector<8x8x128xbf16>
    %49 = vector.extract_strided_slice %45 {offsets = [0, 1, 0], sizes = [8, 7, 128], strides = [1, 1, 1]} : vector<8x8x128xbf16> to vector<8x7x128xbf16>
    %50 = tpu.concatenate %49, %46 in 1 : vector<8x7x128xbf16>, vector<8x1x128xbf16> -> vector<8x8x128xbf16>
    %cst_28 = arith.constant 0.000000e+00 : bf16
    %51 = vector.broadcast %cst_28 : bf16 to vector<1x8x384xbf16>
    %c0_29 = arith.constant 0 : index
    %c0_30 = arith.constant 0 : index
    %c0_31 = arith.constant 0 : index
    %52 = vector.load %arg9[%c0_29, %c0_30, %c0_31] : memref<10x8x384xbf16, #tpu.memory_space<vmem>>, vector<1x8x384xbf16>
    tpu.vector_store %arg9[%c0_29, %c0_30, %c0_31], %51 {strides = array<i32>} : memref<10x8x384xbf16, #tpu.memory_space<vmem>>, vector<1x8x384xbf16>,
    %cst_32 = arith.constant 0.000000e+00 : bf16
    %53 = vector.broadcast %cst_32 : bf16 to vector<1x8x384xbf16>
    %c9 = arith.constant 9 : index
    %c0_33 = arith.constant 0 : index
    %c0_34 = arith.constant 0 : index
    %54 = vector.load %arg9[%c9, %c0_33, %c0_34] : memref<10x8x384xbf16, #tpu.memory_space<vmem>>, vector<1x8x384xbf16>
    tpu.vector_store %arg9[%c9, %c0_33, %c0_34], %53 {strides = array<i32>} : memref<10x8x384xbf16, #tpu.memory_space<vmem>>, vector<1x8x384xbf16>,
    %55 = tpu.concatenate %48, %45, %50 in 2 : vector<8x8x128xbf16>, vector<8x8x128xbf16>, vector<8x8x128xbf16> -> vector<8x8x384xbf16>
    %c1 = arith.constant 1 : index
    %c0_35 = arith.constant 0 : index
    %c0_36 = arith.constant 0 : index
    %56 = vector.load %arg9[%c1, %c0_35, %c0_36] : memref<10x8x384xbf16, #tpu.memory_space<vmem>>, vector<8x8x384xbf16>
    tpu.vector_store %arg9[%c1, %c0_35, %c0_36], %55 {strides = array<i32>} : memref<10x8x384xbf16, #tpu.memory_space<vmem>>, vector<8x8x384xbf16>,
    %cst_37 = arith.constant 0.000000e+00 : f32
    %57 = vector.broadcast %cst_37 : f32 to vector<8x8x128xf32>
    %c0_38 = arith.constant 0 : index
    %c0_39 = arith.constant 0 : index
    %c0_40 = arith.constant 0 : index
    %58 = vector.load %arg9[%c0_38, %c0_39, %c0_40] : memref<10x8x384xbf16, #tpu.memory_space<vmem>>, vector<8x8x384xbf16>
    %c0_41 = arith.constant 0 : index
    %c0_42 = arith.constant 0 : index
    %c0_43 = arith.constant 0 : index
    %59 = vector.load %arg6[%c0_41, %c0_42, %c0_43] : memref<3x384x128xbf16, #tpu.memory_space<vmem>>, vector<1x384x128xbf16>
    %60 = vector.shape_cast %59 : vector<1x384x128xbf16> to vector<384x128xbf16>
    %cst_44 = arith.constant dense<0.000000e+00> : vector<8x8x128xf32>
    %61 = tpu.matmul %58, %60, %cst_44 {dimension_numbers = #tpu.dot_dimension_numbers<[2], [0], [0, 1], [1], [0, 0, 0, 1, 1, 1], [], []>} : vector<8x8x384xbf16>, vector<384x128xbf16>, vector<8x8x128xf32> -> vector<8x8x128xf32>
    %62 = arith.addf %57, %61 : vector<8x8x128xf32>
    %c1_45 = arith.constant 1 : index
    %c0_46 = arith.constant 0 : index
    %c0_47 = arith.constant 0 : index
    %63 = vector.load %arg9[%c1_45, %c0_46, %c0_47] : memref<10x8x384xbf16, #tpu.memory_space<vmem>>, vector<8x8x384xbf16>
    %c1_48 = arith.constant 1 : index
    %c0_49 = arith.constant 0 : index
    %c0_50 = arith.constant 0 : index
    %64 = vector.load %arg6[%c1_48, %c0_49, %c0_50] : memref<3x384x128xbf16, #tpu.memory_space<vmem>>, vector<1x384x128xbf16>
    %65 = vector.shape_cast %64 : vector<1x384x128xbf16> to vector<384x128xbf16>
    %cst_51 = arith.constant dense<0.000000e+00> : vector<8x8x128xf32>
    %66 = tpu.matmul %63, %65, %cst_51 {dimension_numbers = #tpu.dot_dimension_numbers<[2], [0], [0, 1], [1], [0, 0, 0, 1, 1, 1], [], []>} : vector<8x8x384xbf16>, vector<384x128xbf16>, vector<8x8x128xf32> -> vector<8x8x128xf32>
    %67 = arith.addf %62, %66 : vector<8x8x128xf32>
    %c2 = arith.constant 2 : index
    %c0_52 = arith.constant 0 : index
    %c0_53 = arith.constant 0 : index
    %68 = vector.load %arg9[%c2, %c0_52, %c0_53] : memref<10x8x384xbf16, #tpu.memory_space<vmem>>, vector<8x8x384xbf16>
    %c2_54 = arith.constant 2 : index
    %c0_55 = arith.constant 0 : index
    %c0_56 = arith.constant 0 : index
    %69 = vector.load %arg6[%c2_54, %c0_55, %c0_56] : memref<3x384x128xbf16, #tpu.memory_space<vmem>>, vector<1x384x128xbf16>
    %70 = vector.shape_cast %69 : vector<1x384x128xbf16> to vector<384x128xbf16>
    %cst_57 = arith.constant dense<0.000000e+00> : vector<8x8x128xf32>
    %71 = tpu.matmul %68, %70, %cst_57 {dimension_numbers = #tpu.dot_dimension_numbers<[2], [0], [0, 1], [1], [0, 0, 0, 1, 1, 1], [], []>} : vector<8x8x384xbf16>, vector<384x128xbf16>, vector<8x8x128xf32> -> vector<8x8x128xf32>
    %72 = arith.addf %67, %71 : vector<8x8x128xf32>
    %c0_58 = arith.constant 0 : index
    %c0_59 = arith.constant 0 : index
    %c0_60 = arith.constant 0 : index
    %73 = vector.load %arg7[%c0_58, %c0_59, %c0_60] : memref<1x1x128xf32, #tpu.memory_space<vmem>>, vector<1x1x128xf32>
    %74 = vector.broadcast %73 : vector<1x1x128xf32> to vector<8x8x128xf32>
    %75 = arith.addf %72, %74 : vector<8x8x128xf32>
    %76 = arith.truncf %75 : vector<8x8x128xf32> to vector<8x8x128xbf16>
    %c0_61 = arith.constant 0 : index
    %c0_62 = arith.constant 0 : index
    %c0_63 = arith.constant 0 : index
    %c0_64 = arith.constant 0 : index
    %77 = vector.load %arg8[%c0_61, %c0_62, %c0_63, %c0_64] : memref<1x8x8x128xbf16, #tpu.memory_space<vmem>>, vector<1x8x8x128xbf16>
    %78 = vector.shape_cast %77 : vector<1x8x8x128xbf16> to vector<8x8x128xbf16>
    %79 = vector.shape_cast %76 : vector<8x8x128xbf16> to vector<1x8x8x128xbf16>
    tpu.vector_store %arg8[%c0_61, %c0_62, %c0_63, %c0_64], %79 {strides = array<i32>} : memref<1x8x8x128xbf16, #tpu.memory_space<vmem>>, vector<1x8x8x128xbf16>,
    return
  }
  func.func @transform_0(%arg0: i32) -> (i32, i32, i32, i32) {
    %c0_i32 = arith.constant 0 : i32
    %c0_i32_0 = arith.constant 0 : i32
    %c0_i32_1 = arith.constant 0 : i32
    %c0_i32_2 = arith.constant 0 : i32
    return %arg0, %c0_i32, %c0_i32_0, %c0_i32_1 : i32, i32, i32, i32
  }
  func.func @transform_1(%arg0: i32) -> (i32, i32) {
    %c0_i32 = arith.constant 0 : i32
    %c0_i32_0 = arith.constant 0 : i32
    %c0_i32_1 = arith.constant 0 : i32
    return %c0_i32, %c0_i32_0 : i32, i32
  }
  func.func @transform_2(%arg0: i32) -> (i32, i32) {
    %c0_i32 = arith.constant 0 : i32
    %c0_i32_0 = arith.constant 0 : i32
    %c0_i32_1 = arith.constant 0 : i32
    return %c0_i32, %c0_i32_0 : i32, i32
  }
  func.func @transform_3(%arg0: i32) -> (i32, i32) {
    %c0_i32 = arith.constant 0 : i32
    %c0_i32_0 = arith.constant 0 : i32
    %c0_i32_1 = arith.constant 0 : i32
    return %c0_i32, %c0_i32_0 : i32, i32
  }
  func.func @transform_4(%arg0: i32) -> (i32, i32) {
    %c0_i32 = arith.constant 0 : i32
    %c0_i32_0 = arith.constant 0 : i32
    %c0_i32_1 = arith.constant 0 : i32
    return %c0_i32, %c0_i32_0 : i32, i32
  }
  func.func @transform_5(%arg0: i32) -> (i32, i32, i32) {
    %c0_i32 = arith.constant 0 : i32
    %c0_i32_0 = arith.constant 0 : i32
    %c0_i32_1 = arith.constant 0 : i32
    %c0_i32_2 = arith.constant 0 : i32
    return %c0_i32, %c0_i32_0, %c0_i32_1 : i32, i32, i32
  }
  func.func @transform_6(%arg0: i32) -> (i32, i32, i32) {
    %c0_i32 = arith.constant 0 : i32
    %c0_i32_0 = arith.constant 0 : i32
    %c0_i32_1 = arith.constant 0 : i32
    return %arg0, %c0_i32, %c0_i32_0 : i32, i32, i32
  }
  func.func @transform_7(%arg0: i32) -> (i32, i32, i32, i32) {
    %c0_i32 = arith.constant 0 : i32
    %c0_i32_0 = arith.constant 0 : i32
    %c0_i32_1 = arith.constant 0 : i32
    %c0_i32_2 = arith.constant 0 : i32
    return %arg0, %c0_i32, %c0_i32_0, %c0_i32_1 : i32, i32, i32, i32
  }
}

module attributes {stable_mosaic.version = 11 : i64} {
  func.func @kernel(%arg0: i32, %arg1: memref<1x8x8x128xbf16, #tpu.memory_space<vmem>>, %arg2: memref<128x32xf32, #tpu.memory_space<vmem>>, %arg3: memref<32x128xf32, #tpu.memory_space<vmem>>, %arg4: memref<1x128xf32, #tpu.memory_space<vmem>>, %arg5: memref<1x128xf32, #tpu.memory_space<vmem>>, %arg6: memref<3x384x128xbf16, #tpu.memory_space<vmem>>, %arg7: memref<1x1x128xf32, #tpu.memory_space<vmem>>, %arg8: memref<1x8x8x128xf32, #tpu.memory_space<vmem>>, %arg9: memref<128x128xbf16, #tpu.memory_space<vmem>>, %arg10: memref<1x128xf32, #tpu.memory_space<vmem>>, %arg11: memref<1x8x8x128xf32, #tpu.memory_space<vmem>>, %arg12: memref<10x8x384xbf16, #tpu.memory_space<vmem>>) attributes {dimension_semantics = [#tpu.dimension_semantics<parallel>], iteration_bounds = array<i64: 2>, scalar_prefetch = 0 : i64, scratch_operands = 1 : i64, tpu.core_type = #tpu.core_type<tc>, window_params = [{transform_indices = @transform_0, window_bounds = array<i64: 1, 8, 8, 128>}, {pipeline_mode = #tpu.pipeline_mode<synchronous>, transform_indices = @transform_1, window_bounds = array<i64: 128, 32>}, {pipeline_mode = #tpu.pipeline_mode<synchronous>, transform_indices = @transform_2, window_bounds = array<i64: 32, 128>}, {pipeline_mode = #tpu.pipeline_mode<synchronous>, transform_indices = @transform_3, window_bounds = array<i64: 1, 128>}, {pipeline_mode = #tpu.pipeline_mode<synchronous>, transform_indices = @transform_4, window_bounds = array<i64: 1, 128>}, {pipeline_mode = #tpu.pipeline_mode<synchronous>, transform_indices = @transform_5, window_bounds = array<i64: 3, 384, 128>}, {pipeline_mode = #tpu.pipeline_mode<synchronous>, transform_indices = @transform_6, window_bounds = array<i64: 1, 1, 128>}, {transform_indices = @transform_7, window_bounds = array<i64: 1, 8, 8, 128>}, {pipeline_mode = #tpu.pipeline_mode<synchronous>, transform_indices = @transform_8, window_bounds = array<i64: 128, 128>}, {pipeline_mode = #tpu.pipeline_mode<synchronous>, transform_indices = @transform_9, window_bounds = array<i64: 1, 128>}, {transform_indices = @transform_10, window_bounds = array<i64: 1, 8, 8, 128>}]} {
    %c0 = arith.constant 0 : index
    %c0_0 = arith.constant 0 : index
    %c0_1 = arith.constant 0 : index
    %c0_2 = arith.constant 0 : index
    %0 = vector.load %arg1[%c0, %c0_0, %c0_1, %c0_2] : memref<1x8x8x128xbf16, #tpu.memory_space<vmem>>, vector<1x8x8x128xbf16>
    %1 = vector.shape_cast %0 : vector<1x8x8x128xbf16> to vector<8x8x128xbf16>
    %2 = arith.extf %1 : vector<8x8x128xbf16> to vector<8x8x128xf32>
    %cst = arith.constant dense<0.000000e+00> : vector<8x128xf32>
    %3 = vector.multi_reduction <add>, %2, %cst [0] : vector<8x8x128xf32> to vector<8x128xf32>
    %cst_3 = arith.constant dense<0.000000e+00> : vector<128xf32>
    %4 = vector.multi_reduction <add>, %3, %cst_3 [0] : vector<8x128xf32> to vector<128xf32>
    %5 = vector.shape_cast %4 : vector<128xf32> to vector<1x128xf32>
    %6 = arith.mulf %2, %2 : vector<8x8x128xf32>
    %cst_4 = arith.constant dense<0.000000e+00> : vector<8x128xf32>
    %7 = vector.multi_reduction <add>, %6, %cst_4 [0] : vector<8x8x128xf32> to vector<8x128xf32>
    %cst_5 = arith.constant dense<0.000000e+00> : vector<128xf32>
    %8 = vector.multi_reduction <add>, %7, %cst_5 [0] : vector<8x128xf32> to vector<128xf32>
    %9 = vector.shape_cast %8 : vector<128xf32> to vector<1x128xf32>
    %c0_6 = arith.constant 0 : index
    %c0_7 = arith.constant 0 : index
    %10 = vector.load %arg2[%c0_6, %c0_7] : memref<128x32xf32, #tpu.memory_space<vmem>>, vector<128x32xf32>
    %cst_8 = arith.constant dense<0.000000e+00> : vector<1x32xf32>
    %11 = tpu.matmul %5, %10, %cst_8 {dimension_numbers = #tpu.dot_dimension_numbers<[1], [0], [0], [1], [0, 0, 1, 1], [], []>} : vector<1x128xf32>, vector<128x32xf32>, vector<1x32xf32> -> vector<1x32xf32>
    %cst_9 = arith.constant 1.280000e+02 : f32
    %12 = vector.broadcast %cst_9 : f32 to vector<1x32xf32>
    %13 = arith.divf %11, %12 : vector<1x32xf32>
    %c0_10 = arith.constant 0 : index
    %c0_11 = arith.constant 0 : index
    %14 = vector.load %arg2[%c0_10, %c0_11] : memref<128x32xf32, #tpu.memory_space<vmem>>, vector<128x32xf32>
    %cst_12 = arith.constant dense<0.000000e+00> : vector<1x32xf32>
    %15 = tpu.matmul %9, %14, %cst_12 {dimension_numbers = #tpu.dot_dimension_numbers<[1], [0], [0], [1], [0, 0, 1, 1], [], []>} : vector<1x128xf32>, vector<128x32xf32>, vector<1x32xf32> -> vector<1x32xf32>
    %cst_13 = arith.constant 1.280000e+02 : f32
    %16 = vector.broadcast %cst_13 : f32 to vector<1x32xf32>
    %17 = arith.divf %15, %16 : vector<1x32xf32>
    %18 = arith.mulf %13, %13 : vector<1x32xf32>
    %19 = arith.subf %17, %18 : vector<1x32xf32>
    %cst_14 = arith.constant 0.000000e+00 : f32
    %20 = vector.broadcast %cst_14 : f32 to vector<1x32xf32>
    %21 = arith.maximumf %19, %20 : vector<1x32xf32>
    %cst_15 = arith.constant 9.99999974E-6 : f32
    %22 = vector.broadcast %cst_15 : f32 to vector<1x32xf32>
    %23 = arith.addf %21, %22 : vector<1x32xf32>
    %24 = math.rsqrt %23 : vector<1x32xf32>
    %c0_16 = arith.constant 0 : index
    %c0_17 = arith.constant 0 : index
    %25 = vector.load %arg3[%c0_16, %c0_17] : memref<32x128xf32, #tpu.memory_space<vmem>>, vector<32x128xf32>
    %cst_18 = arith.constant dense<0.000000e+00> : vector<1x128xf32>
    %26 = tpu.matmul %13, %25, %cst_18 {dimension_numbers = #tpu.dot_dimension_numbers<[1], [0], [0], [1], [0, 0, 1, 1], [], []>} : vector<1x32xf32>, vector<32x128xf32>, vector<1x128xf32> -> vector<1x128xf32>
    %c0_19 = arith.constant 0 : index
    %c0_20 = arith.constant 0 : index
    %27 = vector.load %arg3[%c0_19, %c0_20] : memref<32x128xf32, #tpu.memory_space<vmem>>, vector<32x128xf32>
    %cst_21 = arith.constant dense<0.000000e+00> : vector<1x128xf32>
    %28 = tpu.matmul %24, %27, %cst_21 {dimension_numbers = #tpu.dot_dimension_numbers<[1], [0], [0], [1], [0, 0, 1, 1], [], []>} : vector<1x32xf32>, vector<32x128xf32>, vector<1x128xf32> -> vector<1x128xf32>
    %c0_22 = arith.constant 0 : index
    %c0_23 = arith.constant 0 : index
    %29 = vector.load %arg4[%c0_22, %c0_23] : memref<1x128xf32, #tpu.memory_space<vmem>>, vector<1x128xf32>
    %30 = arith.mulf %28, %29 : vector<1x128xf32>
    %31 = vector.shape_cast %30 : vector<1x128xf32> to vector<1x1x128xf32>
    %c0_24 = arith.constant 0 : index
    %c0_25 = arith.constant 0 : index
    %32 = vector.load %arg5[%c0_24, %c0_25] : memref<1x128xf32, #tpu.memory_space<vmem>>, vector<1x128xf32>
    %33 = arith.mulf %26, %30 : vector<1x128xf32>
    %34 = arith.subf %32, %33 : vector<1x128xf32>
    %35 = vector.shape_cast %34 : vector<1x128xf32> to vector<1x1x128xf32>
    %36 = vector.broadcast %31 : vector<1x1x128xf32> to vector<8x8x128xf32>
    %37 = arith.mulf %2, %36 : vector<8x8x128xf32>
    %38 = vector.broadcast %35 : vector<1x1x128xf32> to vector<8x8x128xf32>
    %39 = arith.addf %37, %38 : vector<8x8x128xf32>
    %40 = arith.negf %39 : vector<8x8x128xf32>
    %41 = math.exp %40 : vector<8x8x128xf32>
    %cst_26 = arith.constant 1.000000e+00 : f32
    %42 = vector.broadcast %cst_26 : f32 to vector<8x8x128xf32>
    %43 = arith.addf %42, %41 : vector<8x8x128xf32>
    %44 = arith.divf %42, %43 : vector<8x8x128xf32>
    %45 = arith.mulf %39, %44 : vector<8x8x128xf32>
    %46 = arith.truncf %45 : vector<8x8x128xf32> to vector<8x8x128xbf16>
    %cst_27 = arith.constant 0.000000e+00 : bf16
    %47 = vector.broadcast %cst_27 : bf16 to vector<8x1x128xbf16>
    %48 = vector.extract_strided_slice %46 {offsets = [0, 0, 0], sizes = [8, 7, 128], strides = [1, 1, 1]} : vector<8x8x128xbf16> to vector<8x7x128xbf16>
    %49 = tpu.concatenate %47, %48 in 1 : vector<8x1x128xbf16>, vector<8x7x128xbf16> -> vector<8x8x128xbf16>
    %50 = vector.extract_strided_slice %46 {offsets = [0, 1, 0], sizes = [8, 7, 128], strides = [1, 1, 1]} : vector<8x8x128xbf16> to vector<8x7x128xbf16>
    %51 = tpu.concatenate %50, %47 in 1 : vector<8x7x128xbf16>, vector<8x1x128xbf16> -> vector<8x8x128xbf16>
    %cst_28 = arith.constant 0.000000e+00 : bf16
    %52 = vector.broadcast %cst_28 : bf16 to vector<1x8x384xbf16>
    %c0_29 = arith.constant 0 : index
    %c0_30 = arith.constant 0 : index
    %c0_31 = arith.constant 0 : index
    %53 = vector.load %arg12[%c0_29, %c0_30, %c0_31] : memref<10x8x384xbf16, #tpu.memory_space<vmem>>, vector<1x8x384xbf16>
    tpu.vector_store %arg12[%c0_29, %c0_30, %c0_31], %52 {strides = array<i32>} : memref<10x8x384xbf16, #tpu.memory_space<vmem>>, vector<1x8x384xbf16>,
    %cst_32 = arith.constant 0.000000e+00 : bf16
    %54 = vector.broadcast %cst_32 : bf16 to vector<1x8x384xbf16>
    %c9 = arith.constant 9 : index
    %c0_33 = arith.constant 0 : index
    %c0_34 = arith.constant 0 : index
    %55 = vector.load %arg12[%c9, %c0_33, %c0_34] : memref<10x8x384xbf16, #tpu.memory_space<vmem>>, vector<1x8x384xbf16>
    tpu.vector_store %arg12[%c9, %c0_33, %c0_34], %54 {strides = array<i32>} : memref<10x8x384xbf16, #tpu.memory_space<vmem>>, vector<1x8x384xbf16>,
    %56 = tpu.concatenate %49, %46, %51 in 2 : vector<8x8x128xbf16>, vector<8x8x128xbf16>, vector<8x8x128xbf16> -> vector<8x8x384xbf16>
    %c1 = arith.constant 1 : index
    %c0_35 = arith.constant 0 : index
    %c0_36 = arith.constant 0 : index
    %57 = vector.load %arg12[%c1, %c0_35, %c0_36] : memref<10x8x384xbf16, #tpu.memory_space<vmem>>, vector<8x8x384xbf16>
    tpu.vector_store %arg12[%c1, %c0_35, %c0_36], %56 {strides = array<i32>} : memref<10x8x384xbf16, #tpu.memory_space<vmem>>, vector<8x8x384xbf16>,
    %cst_37 = arith.constant 0.000000e+00 : f32
    %58 = vector.broadcast %cst_37 : f32 to vector<8x8x128xf32>
    %c0_38 = arith.constant 0 : index
    %c0_39 = arith.constant 0 : index
    %c0_40 = arith.constant 0 : index
    %59 = vector.load %arg12[%c0_38, %c0_39, %c0_40] : memref<10x8x384xbf16, #tpu.memory_space<vmem>>, vector<8x8x384xbf16>
    %c0_41 = arith.constant 0 : index
    %c0_42 = arith.constant 0 : index
    %c0_43 = arith.constant 0 : index
    %60 = vector.load %arg6[%c0_41, %c0_42, %c0_43] : memref<3x384x128xbf16, #tpu.memory_space<vmem>>, vector<1x384x128xbf16>
    %61 = vector.shape_cast %60 : vector<1x384x128xbf16> to vector<384x128xbf16>
    %cst_44 = arith.constant dense<0.000000e+00> : vector<8x8x128xf32>
    %62 = tpu.matmul %59, %61, %cst_44 {dimension_numbers = #tpu.dot_dimension_numbers<[2], [0], [0, 1], [1], [0, 0, 0, 1, 1, 1], [], []>} : vector<8x8x384xbf16>, vector<384x128xbf16>, vector<8x8x128xf32> -> vector<8x8x128xf32>
    %63 = arith.addf %58, %62 : vector<8x8x128xf32>
    %c1_45 = arith.constant 1 : index
    %c0_46 = arith.constant 0 : index
    %c0_47 = arith.constant 0 : index
    %64 = vector.load %arg12[%c1_45, %c0_46, %c0_47] : memref<10x8x384xbf16, #tpu.memory_space<vmem>>, vector<8x8x384xbf16>
    %c1_48 = arith.constant 1 : index
    %c0_49 = arith.constant 0 : index
    %c0_50 = arith.constant 0 : index
    %65 = vector.load %arg6[%c1_48, %c0_49, %c0_50] : memref<3x384x128xbf16, #tpu.memory_space<vmem>>, vector<1x384x128xbf16>
    %66 = vector.shape_cast %65 : vector<1x384x128xbf16> to vector<384x128xbf16>
    %cst_51 = arith.constant dense<0.000000e+00> : vector<8x8x128xf32>
    %67 = tpu.matmul %64, %66, %cst_51 {dimension_numbers = #tpu.dot_dimension_numbers<[2], [0], [0, 1], [1], [0, 0, 0, 1, 1, 1], [], []>} : vector<8x8x384xbf16>, vector<384x128xbf16>, vector<8x8x128xf32> -> vector<8x8x128xf32>
    %68 = arith.addf %63, %67 : vector<8x8x128xf32>
    %c2 = arith.constant 2 : index
    %c0_52 = arith.constant 0 : index
    %c0_53 = arith.constant 0 : index
    %69 = vector.load %arg12[%c2, %c0_52, %c0_53] : memref<10x8x384xbf16, #tpu.memory_space<vmem>>, vector<8x8x384xbf16>
    %c2_54 = arith.constant 2 : index
    %c0_55 = arith.constant 0 : index
    %c0_56 = arith.constant 0 : index
    %70 = vector.load %arg6[%c2_54, %c0_55, %c0_56] : memref<3x384x128xbf16, #tpu.memory_space<vmem>>, vector<1x384x128xbf16>
    %71 = vector.shape_cast %70 : vector<1x384x128xbf16> to vector<384x128xbf16>
    %cst_57 = arith.constant dense<0.000000e+00> : vector<8x8x128xf32>
    %72 = tpu.matmul %69, %71, %cst_57 {dimension_numbers = #tpu.dot_dimension_numbers<[2], [0], [0, 1], [1], [0, 0, 0, 1, 1, 1], [], []>} : vector<8x8x384xbf16>, vector<384x128xbf16>, vector<8x8x128xf32> -> vector<8x8x128xf32>
    %73 = arith.addf %68, %72 : vector<8x8x128xf32>
    %c0_58 = arith.constant 0 : index
    %c0_59 = arith.constant 0 : index
    %c0_60 = arith.constant 0 : index
    %74 = vector.load %arg7[%c0_58, %c0_59, %c0_60] : memref<1x1x128xf32, #tpu.memory_space<vmem>>, vector<1x1x128xf32>
    %75 = vector.broadcast %74 : vector<1x1x128xf32> to vector<8x8x128xf32>
    %76 = arith.addf %73, %75 : vector<8x8x128xf32>
    %c0_61 = arith.constant 0 : index
    %c0_62 = arith.constant 0 : index
    %c0_63 = arith.constant 0 : index
    %c0_64 = arith.constant 0 : index
    %77 = vector.load %arg8[%c0_61, %c0_62, %c0_63, %c0_64] : memref<1x8x8x128xf32, #tpu.memory_space<vmem>>, vector<1x8x8x128xf32>
    %78 = vector.shape_cast %77 : vector<1x8x8x128xf32> to vector<8x8x128xf32>
    %79 = arith.truncf %78 : vector<8x8x128xf32> to vector<8x8x128xbf16>
    %c0_65 = arith.constant 0 : index
    %c0_66 = arith.constant 0 : index
    %80 = vector.load %arg9[%c0_65, %c0_66] : memref<128x128xbf16, #tpu.memory_space<vmem>>, vector<128x128xbf16>
    %cst_67 = arith.constant dense<0.000000e+00> : vector<8x8x128xf32>
    %81 = tpu.matmul %79, %80, %cst_67 {dimension_numbers = #tpu.dot_dimension_numbers<[2], [0], [0, 1], [1], [0, 0, 0, 1, 1, 1], [], []>} : vector<8x8x128xbf16>, vector<128x128xbf16>, vector<8x8x128xf32> -> vector<8x8x128xf32>
    %82 = arith.addf %76, %81 : vector<8x8x128xf32>
    %c0_68 = arith.constant 0 : index
    %c0_69 = arith.constant 0 : index
    %83 = vector.load %arg10[%c0_68, %c0_69] : memref<1x128xf32, #tpu.memory_space<vmem>>, vector<1x128xf32>
    %84 = vector.shape_cast %83 : vector<1x128xf32> to vector<1x1x128xf32>
    %85 = vector.broadcast %84 : vector<1x1x128xf32> to vector<8x8x128xf32>
    %86 = arith.addf %82, %85 : vector<8x8x128xf32>
    %c0_70 = arith.constant 0 : index
    %c0_71 = arith.constant 0 : index
    %c0_72 = arith.constant 0 : index
    %c0_73 = arith.constant 0 : index
    %87 = vector.load %arg11[%c0_70, %c0_71, %c0_72, %c0_73] : memref<1x8x8x128xf32, #tpu.memory_space<vmem>>, vector<1x8x8x128xf32>
    %88 = vector.shape_cast %87 : vector<1x8x8x128xf32> to vector<8x8x128xf32>
    %89 = vector.shape_cast %86 : vector<8x8x128xf32> to vector<1x8x8x128xf32>
    tpu.vector_store %arg11[%c0_70, %c0_71, %c0_72, %c0_73], %89 {strides = array<i32>} : memref<1x8x8x128xf32, #tpu.memory_space<vmem>>, vector<1x8x8x128xf32>,
    return
  }
  func.func @transform_0(%arg0: i32) -> (i32, i32, i32, i32) {
    %c0_i32 = arith.constant 0 : i32
    %c0_i32_0 = arith.constant 0 : i32
    %c0_i32_1 = arith.constant 0 : i32
    %c0_i32_2 = arith.constant 0 : i32
    return %arg0, %c0_i32, %c0_i32_0, %c0_i32_1 : i32, i32, i32, i32
  }
  func.func @transform_1(%arg0: i32) -> (i32, i32) {
    %c0_i32 = arith.constant 0 : i32
    %c0_i32_0 = arith.constant 0 : i32
    %c0_i32_1 = arith.constant 0 : i32
    return %c0_i32, %c0_i32_0 : i32, i32
  }
  func.func @transform_2(%arg0: i32) -> (i32, i32) {
    %c0_i32 = arith.constant 0 : i32
    %c0_i32_0 = arith.constant 0 : i32
    %c0_i32_1 = arith.constant 0 : i32
    return %c0_i32, %c0_i32_0 : i32, i32
  }
  func.func @transform_3(%arg0: i32) -> (i32, i32) {
    %c0_i32 = arith.constant 0 : i32
    %c0_i32_0 = arith.constant 0 : i32
    %c0_i32_1 = arith.constant 0 : i32
    return %c0_i32, %c0_i32_0 : i32, i32
  }
  func.func @transform_4(%arg0: i32) -> (i32, i32) {
    %c0_i32 = arith.constant 0 : i32
    %c0_i32_0 = arith.constant 0 : i32
    %c0_i32_1 = arith.constant 0 : i32
    return %c0_i32, %c0_i32_0 : i32, i32
  }
  func.func @transform_5(%arg0: i32) -> (i32, i32, i32) {
    %c0_i32 = arith.constant 0 : i32
    %c0_i32_0 = arith.constant 0 : i32
    %c0_i32_1 = arith.constant 0 : i32
    %c0_i32_2 = arith.constant 0 : i32
    return %c0_i32, %c0_i32_0, %c0_i32_1 : i32, i32, i32
  }
  func.func @transform_6(%arg0: i32) -> (i32, i32, i32) {
    %c0_i32 = arith.constant 0 : i32
    %c0_i32_0 = arith.constant 0 : i32
    %c0_i32_1 = arith.constant 0 : i32
    %c0_i32_2 = arith.constant 0 : i32
    return %c0_i32, %c0_i32_0, %c0_i32_1 : i32, i32, i32
  }
  func.func @transform_7(%arg0: i32) -> (i32, i32, i32, i32) {
    %c0_i32 = arith.constant 0 : i32
    %c0_i32_0 = arith.constant 0 : i32
    %c0_i32_1 = arith.constant 0 : i32
    %c0_i32_2 = arith.constant 0 : i32
    return %arg0, %c0_i32, %c0_i32_0, %c0_i32_1 : i32, i32, i32, i32
  }
  func.func @transform_8(%arg0: i32) -> (i32, i32) {
    %c0_i32 = arith.constant 0 : i32
    %c0_i32_0 = arith.constant 0 : i32
    %c0_i32_1 = arith.constant 0 : i32
    return %c0_i32, %c0_i32_0 : i32, i32
  }
  func.func @transform_9(%arg0: i32) -> (i32, i32) {
    %c0_i32 = arith.constant 0 : i32
    %c0_i32_0 = arith.constant 0 : i32
    %c0_i32_1 = arith.constant 0 : i32
    return %c0_i32, %c0_i32_0 : i32, i32
  }
  func.func @transform_10(%arg0: i32) -> (i32, i32, i32, i32) {
    %c0_i32 = arith.constant 0 : i32
    %c0_i32_0 = arith.constant 0 : i32
    %c0_i32_1 = arith.constant 0 : i32
    %c0_i32_2 = arith.constant 0 : i32
    return %arg0, %c0_i32, %c0_i32_0, %c0_i32_1 : i32, i32, i32, i32
  }
}

</mosaic_0001>

<bundles_post_ra>
// kernel: _lambda_.2
= control target key start
LH: loop header
LB: loop body
LE: loop exit
PB: predicated region body
PF: predicated region fallthrough
CT: control target
= control target key end

     0   :  { %s2846_s24 = smov 0   ;;  %s3645_s0 = inlined_call_operand.vmem [shape: f32[2,8,8,128], index: 0, kind: input, shape index: {}]   ;;  %s3646_s1 = inlined_call_operand.vmem [shape: f32[128,32], index: 1, kind: input, shape index: {}]   ;;  %s3647_s2 = inlined_call_operand.vmem [shape: f32[32,128], index: 2, kind: input, shape index: {}]   ;;  %s3648_s3 = inlined_call_operand.vmem [shape: f32[1,128], index: 3, kind: input, shape index: {}]   ;;  %s3649_s4 = inlined_call_operand.vmem [shape: f32[1,128], index: 4, kind: input, shape index: {}]   ;;  %s3650_s5 = inlined_call_operand.vmem [shape: bf16[3,384,128], index: 5, kind: input, shape index: {}]   ;;  %s3651_s6 = inlined_call_operand.vmem [shape: f32[2,1,128], index: 6, kind: input, shape index: {}]   ;;  %s3652_s7 = inlined_call_operand.vmem [shape: bf16[2,8,8,128], index: 7, kind: output, shape index: {}]  }
   0x1 LB: > { %s2059_s25 = sadd.s32 4294967295, %s2802_s24   ;;  %p2063_p0 = scmp.ge.s32.totalorder %s2802_s24, 1  ;;  %s2802_s24 = sphi %s2846_s24, %s17_s24  }
   0x2   : > { %p245_p1 = scmp.lt.s32.totalorder %s2802_s24, 3 }
   0x4   : > { %p246_p2 = pnand %p2063_p0, %p245_p1 }
   0x5   : > { %p280_p3 = scmp.lt.s32.totalorder (!%p246_p2), %s2059_s25, 1 }
   0x6   : > { %249 = sbr.rel (%p246_p2) target bundleno = 707 (0x2c3), region = 48 }
   0xb   : > { %v351_v0 = vld [vmem:[%s3646_s1 + $0x78] sm:$0xff]  ;;  %v350_v1 = vld [vmem:[%s3646_s1 + $0x70] sm:$0xff]  ;;  %v349_v2 = vld [vmem:[%s3646_s1 + $0x68] sm:$0xff]  ;;  %s3676_s25 = smov (!%p280_p3, %s2059_s25), 1  ;;  %v2804_v62 = vmov 64.0   ;;  %vm419_vm1 = vcmask 261120  }
   0xc   : > { %352 = vmatpush.msra.mxu0 %v351_v0  ;;  %380 = vmatpush.msra.mxu1 %v351_v0  ;;  %v348_v3 = vld [vmem:[%s3646_s1 + $0x60] sm:$0xff]  ;;  %s2608_s11 = sshll.u32 %s3676_s25, 6  ;;  %s287_s14 = scalar_lea.vmem %s3651_s6, %s3676_s25  ;;  %v347_v4 = vld [vmem:[%s3646_s1 + $0x58] sm:$0xff]  ;;  %v346_v12 = vld [vmem:[%s3646_s1 + $0x50] sm:$0xff]  ;;  %2760 = vrcp.f32 %v2804_v62 }
   0xd   : > { %s2879_s19 = scalar_lea.vmem %s3645_s0, %s2608_s11  ;;  %v418_v14 = vld [vmem:[%s3647_s2 + $0x18] sm:$0xff]  ;;  %v417_v17 = vld [vmem:[%s3647_s2 + $0x10] sm:$0xff]  ;;  %v345_v18 = vld [vmem:[%s3646_s1 + $0x48] sm:$0xff]  ;;  %s2609_s20 = sshll.u32 %s3676_s25, 5 }
   0xe   : > { %353 = vmatpush.msra.mxu0 %v350_v1  ;;  %381 = vmatpush.msra.mxu1 %v350_v1  ;;  %v2882_v5 = vld [vmem:[%s2879_s19] sm:$0xff]  ;;  %v2885_v6 = vld [vmem:[%s2879_s19 + $0x8] sm:$0xff]  ;;  %v2888_v7 = vld [vmem:[%s2879_s19 + $0x10] sm:$0xff]  ;;  %s3616_s22 = scalar_lea.vmem %s3652_s7, %s2609_s20 }
   0xf   : > { %v2891_v8 = vld [vmem:[%s2879_s19 + $0x18] sm:$0xff]  ;;  %v302_v9 = vadd.f32 %v2885_v6, %v2882_v5  ;;  %v315_v10 = vmul.f32 %v2882_v5, %v2882_v5  ;;  %v316_v11 = vmul.f32 %v2885_v6, %v2885_v6  ;;  %v317_v13 = vmul.f32 %v2888_v7, %v2888_v7  ;;  %v2908_v15 = vld [vmem:[%s2879_s19 + $0x20] sm:$0xff]  ;;  %435 = vmatpush.msra.mxu2 %v418_v14  ;;  %v2920_v21 = vld [vmem:[%s2879_s19 + $0x28] sm:$0xff] }
  0x10   : > { %354 = vmatpush.msra.mxu0 %v349_v2  ;;  %382 = vmatpush.msra.mxu1 %v349_v2  ;;  %v318_v19 = vmul.f32 %v2891_v8, %v2891_v8  ;;  %v344_v23 = vld [vmem:[%s3646_s1 + $0x40] sm:$0xff]  ;;  %v319_v24 = vmul.f32 %v2908_v15, %v2908_v15  ;;  %v2929_v26 = vld [vmem:[%s2879_s19 + $0x30] sm:$0xff]  ;;  %v343_v28 = vld [vmem:[%s3646_s1 + $0x38] sm:$0xff]  ;;  %v320_v29 = vmul.f32 %v2920_v21, %v2920_v21 }
  0x11   : > { %v303_v16 = vadd.f32 %v302_v9, %v2888_v7  ;;  %v323_v20 = vadd.f32 %v316_v11, %v315_v10  ;;  %458 = vmatpush.msra.mxu3 %v418_v14  ;;  %436 = vmatpush.msra.mxu2 %v417_v17  ;;  %v2938_v31 = vld [vmem:[%s2879_s19 + $0x38] sm:$0xff]  ;;  %v342_v33 = vld [vmem:[%s3646_s1 + $0x30] sm:$0xff]  ;;  %v321_v34 = vmul.f32 %v2929_v26, %v2929_v26  ;;  %v341_v37 = vld [vmem:[%s3646_s1 + $0x28] sm:$0xff] }
  0x12   : > { %355 = vmatpush.msra.mxu0 %v348_v3  ;;  %383 = vmatpush.msra.mxu1 %v348_v3  ;;  %v322_v38 = vmul.f32 %v2938_v31, %v2938_v31  ;;  %v340_v41 = vld [vmem:[%s3646_s1 + $0x20] sm:$0xff]  ;;  %v339_v44 = vld [vmem:[%s3646_s1 + $0x18] sm:$0xff]  ;;  %v338_v47 = vld [vmem:[%s3646_s1 + $0x10] sm:$0xff]  ;;  %v2761_v63 = vpop.eup %2760 }
  0x13   : > { %v304_v22 = vadd.f32 %v303_v16, %v2891_v8  ;;  %v324_v25 = vadd.f32 %v323_v20, %v317_v13  ;;  %459 = vmatpush.msra.mxu3 %v417_v17  ;;  %v337_v50 = vld [vmem:[%s3646_s1 + $0x8] sm:$0xff]  ;;  %v336_v53 = vld [vmem:[%s3646_s1] sm:$0xff]  ;;  %v373_v0 = vmul.f32 64.0, %v2761_v63  ;;  %vm377_vm0 = vweird.f32 %v2761_v63 }
  0x14   : > { %356 = vmatpush.msra.mxu0 %v347_v4  ;;  %384 = vmatpush.msra.mxu1 %v347_v4  ;;  %v416_v60 = vld [vmem:[%s3647_s2 + $0x8] sm:$0xff]  ;;  %v415_v61 = vld [vmem:[%s3647_s2] sm:$0xff] }
  0x15   : > { %v305_v27 = vadd.f32 %v304_v22, %v2908_v15  ;;  %v325_v30 = vadd.f32 %v324_v25, %v318_v19  ;;  %437 = vmatpush.msra.mxu2 %v416_v60  ;;  %460 = vmatpush.msra.mxu3 %v416_v60  ;;  %v374_v1 = vsub.f32 1.0, %v373_v0  ;;  %v2663_v60 = vld [vmem:[%s3650_s5 + $0xe8] sm:$0xff] }
  0x16   : > { %357 = vmatpush.msra.mxu0 %v346_v12  ;;  %385 = vmatpush.msra.mxu1 %v346_v12  ;;  %v2627_v0 = vld [vmem:[%s3650_s5 + $0x28] sm:$0xff] }
  0x17   : > { %v306_v32 = vadd.f32 %v305_v27, %v2920_v21  ;;  %v326_v35 = vadd.f32 %v325_v30, %v319_v24  ;;  %438 = vmatpush.msra.mxu2 %v415_v61  ;;  %461 = vmatpush.msra.mxu3 %v415_v61  ;;  %v375_v2 = vmul.f32 %v2761_v63, %v374_v1  ;;  %v466_v27 = vld [vmem:[%s3648_s3] sm:$0x1] }
  0x18   : > { %358 = vmatpush.msra.mxu0 %v345_v18  ;;  %386 = vmatpush.msra.mxu1 %v345_v18 }
  0x19   : > { %v307_v36 = vadd.f32 %v306_v32, %v2929_v26  ;;  %v327_v39 = vadd.f32 %v326_v35, %v320_v29  ;;  %v376_v3 = vadd.f32 %v2761_v63, %v375_v2  ;;  %v468_v32 = vld [vmem:[%s3649_s4] sm:$0x1] }
  0x1a   : > { %359 = vmatpush.msra.mxu0 %v344_v23  ;;  %387 = vmatpush.msra.mxu1 %v344_v23 }
  0x1b   : > { %v308_v40 = vadd.f32 %v307_v36, %v2938_v31  ;;  %v328_v42 = vadd.f32 %v327_v39, %v321_v34  ;;  %v378_v4 = vsel %vm377_vm0, %v2761_v63, %v376_v3  ;;  %v2679_v63 = vld [vmem:[%s3650_s5 + $0x168] sm:$0xff] }
  0x1c   : > { %360 = vmatpush.msra.mxu0 %v343_v28  ;;  %388 = vmatpush.msra.mxu1 %v343_v28 }
  0x1d   : > { %v309_v43 = vrot.slane %v308_v40, 4  ;;  %v329_v45 = vadd.f32 %v328_v42, %v322_v38 }
  0x1e   : > { %361 = vmatpush.msra.mxu0 %v342_v33  ;;  %389 = vmatpush.msra.mxu1 %v342_v33 }
  0x1f   : > { %v310_v46 = vadd.f32 %v309_v43, %v308_v40  ;;  %v330_v48 = vrot.slane %v329_v45, 4 }
  0x20   : > { %362 = vmatpush.msra.mxu0 %v341_v37  ;;  %390 = vmatpush.msra.mxu1 %v341_v37 }
  0x21   : > { %v311_v49 = vrot.slane %v310_v46, 2  ;;  %v331_v51 = vadd.f32 %v330_v48, %v329_v45 }
  0x22   : > { %363 = vmatpush.msra.mxu0 %v340_v41  ;;  %391 = vmatpush.msra.mxu1 %v340_v41 }
  0x23   : > { %v312_v52 = vadd.f32 %v311_v49, %v310_v46  ;;  %v332_v54 = vrot.slane %v331_v51, 2 }
  0x24   : > { %364 = vmatpush.msra.mxu0 %v339_v44  ;;  %392 = vmatpush.msra.mxu1 %v339_v44 }
  0x25   : > { %v313_v55 = vrot.slane %v312_v52, 1  ;;  %v333_v56 = vadd.f32 %v332_v54, %v331_v51  ;;  %v2681_v51 = vld [vmem:[%s3650_s5 + $0x178] sm:$0xff] }
  0x26   : > { %365 = vmatpush.msra.mxu0 %v338_v47  ;;  %393 = vmatpush.msra.mxu1 %v338_v47 }
  0x27   : > { %v314_v57 = vadd.f32 %v313_v55, %v312_v52  ;;  %v334_v58 = vrot.slane %v333_v56, 1  ;;  %v2664_v55 = vld [vmem:[%s3650_s5 + $0xf0] sm:$0xff] }
  0x28   : > { %366 = vmatpush.msra.mxu0 %v337_v50  ;;  %394 = vmatpush.msra.mxu1 %v337_v50 }
  0x29   : > { %v335_v59 = vadd.f32 %v334_v58, %v333_v56  ;;  %v2628_v58 = vld [vmem:[%s3650_s5 + $0x30] sm:$0xff] }
  0x2a   : > { %367 = vmatpush.msra.mxu0 %v336_v53  ;;  %395 = vmatpush.msra.mxu1 %v336_v53  ;;  %v2629_v53 = vld [vmem:[%s3650_s5 + $0x38] sm:$0xff] }
  0x2b   : > { %368 = vmatmul.f32.vlgmr.msra.gmra.mxu0 %v314_v57  ;;  %396 = vmatmul.f32.vlgmr.msra.gmra.mxu1 %v335_v59  ;;  %v2680_v57 = vld [vmem:[%s3650_s5 + $0x170] sm:$0xff] }
  0x2c   : > { %1274 = vmatpush.bf16.msrb.mxu0 %v2681_v51  ;;  %1511 = vmatpush.bf16.msrb.mxu1 %v2629_v53  ;;  %v2676_v51 = vld [vmem:[%s3650_s5 + $0x150] sm:$0xff] }
  0x30   : > { %1275 = vmatpush.bf16.msrb.mxu0 %v2680_v57  ;;  %1512 = vmatpush.bf16.msrb.mxu1 %v2628_v58 }
  0x34   : > { %1276 = vmatpush.bf16.msrb.mxu0 %v2679_v63  ;;  %1513 = vmatpush.bf16.msrb.mxu1 %v2627_v0 }
  0xa8   : > { %v369_v9 = vpop.f32.mrf.mxu0  ;;  %v397_v12 = vpop.f32.mrf.mxu1 }
  0xa9   : > { %v379_v10 = vmul.f32 %v378_v4, %v369_v9  ;;  %v400_v13 = vmul.f32 %v397_v12, %v378_v4 }
  0xab   : > { %v401_v11 = vmul.f32 %v379_v10, %v379_v10  ;;  %2068 = vmatmul.msk.f32.vlgmr.msra.gmra.mxu2 %vm419_vm1, %v379_v10 }
  0xad   : > { %v402_v14 = vsub.f32 %v400_v13, %v401_v11  ;;  %v2662_v11 = vld [vmem:[%s3650_s5 + $0xe0] sm:$0xff] }
  0xaf   : > { %v403_v16 = vmax.f32 %v402_v14, 0.0 }
  0xb1   : > { %v404_v17 = vadd.f32 1e-05, %v403_v16  ;;  %v2678_v16 = vld [vmem:[%s3650_s5 + $0x160] sm:$0xff] }
  0xb2   : > { %1277 = vmatpush.bf16.msrb.mxu0 %v2678_v16  ;;  %v2675_v16 = vld [vmem:[%s3650_s5 + $0x148] sm:$0xff] }
  0xb3   : > { %2762 = vrsqrt.f32 %v404_v17  ;;  %vm411_vm3 = vweird.f32 %v404_v17 }
  0xb9   : > { %v2763_v18 = vpop.eup %2762 }
  0xba   : > { %v406_v19 = vmul.f32 %v2763_v18, %v404_v17  ;;  %vm412_vm2 = vweird.f32 %v2763_v18  ;;  %v2626_v17 = vld [vmem:[%s3650_s5 + $0x20] sm:$0xff] }
  0xbb   : > { %vm413_vm4 = vmor %vm411_vm3, %vm412_vm2  ;;  %1514 = vmatpush.bf16.msrb.mxu1 %v2626_v17  ;;  %v2623_v17 = vld [vmem:[%s3650_s5 + $0x8] sm:$0xff] }
  0xbc   : > { %v407_v20 = vmul.f32 %v2763_v18, %v406_v19 }
  0xbe   : > { %v408_v22 = vmul.f32 0.5, %v407_v20 }
  0xc0   : > { %v409_v23 = vsub.f32 1.5, %v408_v22 }
  0xc2   : > { %v410_v24 = vmul.f32 %v2763_v18, %v409_v23 }
  0xc4   : > { %v414_v25 = vsel %vm413_vm4, %v2763_v18, %v410_v24 }
  0xc5   : > { %2069 = vmatmul.msk.f32.vlgmr.msra.gmra.mxu3 %vm419_vm1, %v414_v25 }
 0x12e   : > { %v440_v30 = vpop.f32.mrf.mxu2 }
 0x148   : > { %v463_v28 = vpop.f32.mrf.mxu3 }
 0x149   : > { %v467_v29 = vmul.f32 %v466_v27, %v463_v28  ;;  %v2661_v27 = vld [vmem:[%s3650_s5 + $0xd8] sm:$0xff] }
 0x14b   : > { %v469_v33 = vmul.f32 %v467_v29, %v440_v30  ;;  %v471_v34 = vperm.slane %v467_v29, 0 }
 0x14d   : > { %v470_v35 = vsub.f32 %v468_v32, %v469_v33  ;;  %v472_v36 = vmul.f32 %v471_v34, %v2882_v5  ;;  %v473_v37 = vmul.f32 %v471_v34, %v2885_v6  ;;  %v474_v38 = vmul.f32 %v471_v34, %v2888_v7  ;;  %v2677_v32 = vld [vmem:[%s3650_s5 + $0x158] sm:$0xff] }
 0x14e   : > { %v475_v39 = vmul.f32 %v471_v34, %v2891_v8  ;;  %v476_v41 = vmul.f32 %v471_v34, %v2908_v15  ;;  %v477_v42 = vmul.f32 %v471_v34, %v2920_v21  ;;  %v478_v43 = vmul.f32 %v471_v34, %v2929_v26  ;;  %v2625_v33 = vld [vmem:[%s3650_s5 + $0x18] sm:$0xff]  ;;  %1278 = vmatpush.bf16.msrb.mxu0 %v2677_v32 }
 0x14f   : > { %v481_v40 = vperm.slane %v470_v35, 0  ;;  %v479_v6 = vmul.f32 %v471_v34, %v2938_v31  ;;  %v2665_v31 = vld [vmem:[%s3650_s5 + $0xf8] sm:$0xff]  ;;  %1515 = vmatpush.bf16.msrb.mxu1 %v2625_v33 }
 0x150   : > { %1216 = vmatpush.bf16.msrb.mxu2 %v2665_v31  ;;  %2741 = vmatpush.bf16.msrb.mxu3 %v2665_v31 }
 0x151   : > { %v2989_v44 = vadd.f32 %v481_v40, %v472_v36  ;;  %v2991_v45 = vadd.f32 %v481_v40, %v473_v37  ;;  %v2993_v46 = vadd.f32 %v481_v40, %v474_v38  ;;  %v2995_v5 = vadd.f32 %v481_v40, %v475_v39 }
 0x152   : > { %v2998_v7 = vadd.f32 %v481_v40, %v476_v41  ;;  %v3000_v8 = vadd.f32 %v481_v40, %v477_v42  ;;  %v3002_v47 = vadd.f32 %v481_v40, %v478_v43  ;;  %v3007_v48 = vadd.f32 %v481_v40, %v479_v6  ;;  %1279 = vmatpush.bf16.msrb.mxu0 %v2676_v51 }
 0x153   : > { %v2070_v15 = vmul.f32 -1.442695, %v2989_v44  ;;  %v2071_v21 = vmul.f32 -1.442695, %v2991_v45  ;;  %v2072_v26 = vmul.f32 -1.442695, %v2993_v46 }
 0x154   : > { %v2073_v49 = vmul.f32 -1.442695, %v2995_v5  ;;  %v2074_v50 = vmul.f32 -1.442695, %v2998_v7  ;;  %v2075_v52 = vmul.f32 -1.442695, %v3000_v8  ;;  %1217 = vmatpush.bf16.msrb.mxu2 %v2664_v55  ;;  %2742 = vmatpush.bf16.msrb.mxu3 %v2664_v55 }
 0x155   : > { %2764 = vpow2.f32 %v2070_v15  ;;  %v2076_v54 = vmul.f32 -1.442695, %v3002_v47  ;;  %v2077_v56 = vmul.f32 -1.442695, %v3007_v48 }
 0x156   : > { %2766 = vpow2.f32 %v2071_v21  ;;  %1280 = vmatpush.bf16.msrb.mxu0 %v2675_v16 }
 0x157   : > { %2768 = vpow2.f32 %v2072_v26  ;;  %v2660_v26 = vld [vmem:[%s3650_s5 + $0xd0] sm:$0xff] }
 0x158   : > { %2770 = vpow2.f32 %v2073_v49  ;;  %1218 = vmatpush.bf16.msrb.mxu2 %v2663_v60  ;;  %2743 = vmatpush.bf16.msrb.mxu3 %v2663_v60 }
 0x159   : > { %2772 = vpow2.f32 %v2074_v50 }
 0x15a   : > { %2774 = vpow2.f32 %v2075_v52  ;;  %v2624_v52 = vld [vmem:[%s3650_s5 + $0x10] sm:$0xff] }
 0x15b   : > { %v2765_v59 = vpop.eup %2764  ;;  %2776 = vpow2.f32 %v2076_v54  ;;  %1516 = vmatpush.bf16.msrb.mxu1 %v2624_v52 }
 0x15c   : > { %v2767_v61 = vpop.eup %2766  ;;  %2778 = vpow2.f32 %v2077_v56  ;;  %v3035_v62 = vadd.f32 1.0, %v2765_v59  ;;  %1219 = vmatpush.bf16.msrb.mxu2 %v2662_v11  ;;  %2744 = vmatpush.bf16.msrb.mxu3 %v2662_v11 }
 0x15d   : > { %v2769_v1 = vpop.eup %2768  ;;  %v3043_v2 = vadd.f32 1.0, %v2767_v61 }
 0x15e   : > { %v2771_v3 = vpop.eup %2770  ;;  %v3045_v4 = vadd.f32 1.0, %v2769_v1  ;;  %2780 = vrcp.f32 %v3035_v62  ;;  %v532_v14 = vand.u32 2147483647, %v3035_v62  ;;  %v534_v20 = vand.u32 2147483648, %v3035_v62 }
 0x15f   : > { %v2773_v9 = vpop.eup %2772  ;;  %v3048_v10 = vadd.f32 1.0, %v2771_v3  ;;  %2782 = vrcp.f32 %v3043_v2  ;;  %v549_v22 = vand.u32 2147483648, %v3043_v2  ;;  %v547_v24 = vand.u32 2147483647, %v3043_v2  ;;  %1517 = vmatpush.bf16.msrb.mxu1 %v2623_v17 }
 0x160   : > { %v2775_v12 = vpop.eup %2774  ;;  %v3054_v13 = vadd.f32 1.0, %v2773_v9  ;;  %2784 = vrcp.f32 %v3045_v4  ;;  %vm528_vm5 = vweird.f32 %v3035_v62  ;;  %vm543_vm6 = vweird.f32 %v3043_v2  ;;  %1220 = vmatpush.bf16.msrb.mxu2 %v2661_v27  ;;  %2745 = vmatpush.bf16.msrb.mxu3 %v2661_v27  ;;  %v2659_v9 = vld [vmem:[%s3650_s5 + $0xc8] sm:$0xff] }
 0x161   : > { %v2777_v18 = vpop.eup %2776  ;;  %v3063_v19 = vadd.f32 1.0, %v2775_v12  ;;  %2786 = vrcp.f32 %v3048_v10  ;;  %vm3094_vm7 = vcmp.eq.f32.partialorder %v532_v14, 8.507059e+37  ;;  %v3098_v37 = vor.u32 1.1754944e-38, %v534_v20  ;;  %v2644_v20 = vld [vmem:[%s3650_s5 + $0xb0] sm:$0xff] }
 0x162   : > { %v2779_v23 = vpop.eup %2778  ;;  %v3070_v25 = vadd.f32 1.0, %v2777_v18  ;;  %2788 = vrcp.f32 %v3054_v13  ;;  %v594_v30 = vand.u32 2147483648, %v3054_v13  ;;  %v3100_v38 = vor.u32 1.1754944e-38, %v549_v22 }
 0x163   : > { %v3079_v29 = vadd.f32 1.0, %v2779_v23  ;;  %2790 = vrcp.f32 %v3063_v19  ;;  %v609_v39 = vand.u32 2147483648, %v3063_v19  ;;  %vm3106_vm9 = vcmp.eq.f32.partialorder %v547_v24, 8.507059e+37 }
 0x164   : > { %v3077_v28 = vpop.eup %2780  ;;  %v592_v42 = vand.u32 2147483647, %v3054_v13  ;;  %v607_v43 = vand.u32 2147483647, %v3063_v19  ;;  %vm558_vm10 = vweird.f32 %v3045_v4  ;;  %v3116_v21 = vor.u32 1.1754944e-38, %v594_v30  ;;  %1221 = vmatpush.bf16.msrb.mxu2 %v2660_v26  ;;  %2746 = vmatpush.bf16.msrb.mxu3 %v2660_v26 }
 0x165   : > { %v3090_v34 = vpop.eup %2782  ;;  %v524_v35 = vmul.f32 %v3077_v28, %v3035_v62  ;;  %vm529_vm8 = vweird.f32 %v3077_v28  ;;  %2792 = vrcp.f32 %v3070_v25  ;;  %vm588_vm12 = vweird.f32 %v3054_v13 }
 0x166   : > { %v539_v40 = vmul.f32 %v3090_v34, %v3043_v2  ;;  %v3113_v6 = vpop.eup %2784  ;;  %vm544_vm11 = vweird.f32 %v3090_v34  ;;  %v3125_v31 = vor.u32 1.1754944e-38, %v609_v39  ;;  %2794 = vrcp.f32 %v3079_v29  ;;  %vm3168_vm3 = vmor %vm528_vm5, %vm529_vm8 }
 0x167   : > { %v525_v15 = vsub.f32 1.0, %v524_v35  ;;  %v3122_v49 = vpop.eup %2786  ;;  %v554_v53 = vmul.f32 %v3113_v6, %v3045_v4  ;;  %vm603_vm13 = vweird.f32 %v3063_v19  ;;  %vm559_vm14 = vweird.f32 %v3113_v6  ;;  %vm545_vm5 = vmor %vm543_vm6, %vm544_vm11 }
 0x168   : > { %v540_v50 = vsub.f32 1.0, %v539_v40  ;;  %v3136_v54 = vpop.eup %2788  ;;  %v562_v56 = vand.u32 2147483647, %v3045_v4  ;;  %v564_v57 = vand.u32 2147483648, %v3045_v4  ;;  %vm3149_vm0 = vcmp.eq.f32.partialorder %v592_v42, 8.507059e+37  ;;  %1222 = vmatpush.bf16.msrb.mxu2 %v2659_v9  ;;  %2747 = vmatpush.bf16.msrb.mxu3 %v2659_v9  ;;  %vm560_vm11 = vmor %vm558_vm10, %vm559_vm14 }
 0x169   : > { %v526_v55 = vmul.f32 %v3077_v28, %v525_v15  ;;  %v3143_v58 = vpop.eup %2790  ;;  %v584_v60 = vmul.f32 %v3136_v54, %v3054_v13  ;;  %vm589_vm15 = vweird.f32 %v3136_v54  ;;  %v555_v63 = vsub.f32 1.0, %v554_v53  ;;  %v2673_v13 = vld [vmem:[%s3650_s5 + $0x138] sm:$0xff] }
 0x16a   : > { %v541_v59 = vmul.f32 %v3090_v34, %v540_v50  ;;  %v599_v1 = vmul.f32 %v3143_v58, %v3063_v19  ;;  %vm604_vm1 = vweird.f32 %v3143_v58  ;;  %vm3157_vm2 = vcmp.eq.f32.partialorder %v607_v43, 8.507059e+37  ;;  %v2637_v50 = vld [vmem:[%s3650_s5 + $0x78] sm:$0xff] }
 0x16b   : > { %v527_v0 = vadd.f32 %v3077_v28, %v526_v55  ;;  %v585_v14 = vsub.f32 1.0, %v584_v60  ;;  %v2805_v18 = vmov 0   ;;  %v556_v62 = vmul.f32 %v3113_v6, %v555_v63  ;;  %v3184_v22 = vpop.eup %2792  ;;  %vm605_vm14 = vmor %vm603_vm13, %vm604_vm1  ;;  %v2672_v60 = vld [vmem:[%s3650_s5 + $0x130] sm:$0xff] }
 0x16c   : > { %v542_v12 = vadd.f32 %v3090_v34, %v541_v59  ;;  %793 = vst [vmem:[#allocation2] sm:$0xff] %v2805_v18  ;;  %vm3180_vm4 = vcmp.eq.f32.partialorder %v562_v56, 8.507059e+37  ;;  %v600_v24 = vsub.f32 1.0, %v599_v1  ;;  %v565_v27 = vor.u32 1.1754944e-38, %v564_v57  ;;  %v3195_v32 = vpop.eup %2794 }
 0x16d   : > { %v531_v23 = vsel %vm3168_vm3, %v3077_v28, %v527_v0  ;;  %794 = vst [vmem:[#allocation2 + $0x8] sm:$0xf] %v2805_v18  ;;  %v569_v30 = vmul.f32 %v3122_v49, %v3048_v10  ;;  %v586_v28 = vmul.f32 %v3136_v54, %v585_v14  ;;  %vm747_vm8 = vcmask 1040384  }
 0x16e   : > { %v536_v33 = vsel %vm3094_vm7, %v3098_v37, %v531_v23  ;;  %v546_v35 = vsel %vm545_vm5, %v3090_v34, %v542_v12  ;;  %vm748_vm3 = vsmask.f32 256  ;;  %796 = vst [vmem:[#allocation2 + $0x6c] sm:$0xff] %v2805_v18  ;;  %v557_v2 = vadd.f32 %v3113_v6, %v556_v62  ;;  %v2658_v34 = vld [vmem:[%s3650_s5 + $0xc0] sm:$0xff] }
 0x16f   : > { %v551_v39 = vsel %vm3106_vm9, %v3100_v38, %v546_v35  ;;  %v601_v40 = vmul.f32 %v3143_v58, %v600_v24  ;;  %v643_v42 = vmul.f32 %v536_v33, %v2989_v44  ;;  %vm782_vm6 = vcmask 1043456   ;;  %797 = vst [vmem:[#allocation2 + $0x74] sm:$0xf] %v2805_v18  ;;  %v2674_v44 = vld [vmem:[%s3650_s5 + $0x140] sm:$0xff]  ;;  %vm590_vm9 = vmor %vm588_vm12, %vm589_vm15  ;;  %1223 = vmatpush.bf16.msrb.mxu2 %v2658_v34  ;;  %v2635_v24 = vld [vmem:[%s3650_s5 + $0x68] sm:$0xff] }
 0x170   : > { %vm783_vm7 = vsmask.f32 3328  ;;  %v587_v36 = vadd.f32 %v3136_v54, %v586_v28  ;;  %v644_v37 = vmul.f32 %v551_v39, %v2991_v45  ;;  %v2622_v38 = vld [vmem:[%s3650_s5] sm:$0xff]  ;;  %v561_v41 = vsel %vm560_vm11, %v3113_v6, %v557_v2  ;;  %2748 = vmatpush.bf16.msrb.mxu3 %v2658_v34  ;;  %1281 = vmatpush.bf16.msrb.mxu0 %v2674_v44  ;;  %v2708_v28 = vld [vmem:[%s3650_s5 + $0x1f0] sm:$0xff] }
 0x171   : > { %v570_v43 = vsub.f32 1.0, %v569_v30  ;;  %v602_v45 = vadd.f32 %v3143_v58, %v601_v40  ;;  %v651_v4 = vpack.c.bf16 %v643_v42, %v643_v42  ;;  %v566_v15 = vsel %vm3180_vm4, %v565_v27, %v561_v41  ;;  %1518 = vmatpush.bf16.msrb.mxu1 %v2622_v38  ;;  %vm3311_vm1 = vmand %vm782_vm6, %vm783_vm7 }
 0x172   : > { %vm573_vm10 = vweird.f32 %v3048_v10  ;;  %v591_v26 = vsel %vm590_vm9, %v3136_v54, %v587_v36  ;;  %v652_v6 = vpack.c.bf16 %v644_v37, %v644_v37  ;;  %vm574_vm12 = vweird.f32 %v3122_v49 }
 0x173   : > { %v571_v51 = vmul.f32 %v3122_v49, %v570_v43  ;;  %v596_v52 = vsel %vm3149_vm0, %v3116_v21, %v591_v26  ;;  %v606_v19 = vsel %vm605_vm14, %v3143_v58, %v602_v45  ;;  %v3249_v53 = vunpack.c.l.b16 %v651_v4  ;;  %1540 = vmatpush.bf16.msra.mxu2 %v2637_v50  ;;  %vm3272_vm13 = vmor %vm573_vm10, %vm574_vm12  ;;  %v2670_v4 = vld [vmem:[%s3650_s5 + $0x120] sm:$0xff] }
 0x174   : > { %v577_v54 = vand.u32 2147483647, %v3048_v10  ;;  %v611_v55 = vsel %vm3157_vm2, %v3125_v31, %v606_v19  ;;  %v647_v56 = vmul.f32 %v596_v52, %v2998_v7  ;;  %v3256_v57 = vunpack.c.l.b16 %v652_v6  ;;  %1245 = vmatpush.bf16.msra.mxu3 %v2673_v13  ;;  %v2636_v7 = vld [vmem:[%s3650_s5 + $0x70] sm:$0xff]  ;;  %vm3291_vm0 = vmand %vm747_vm8, %vm748_vm3  ;;  %v2634_v50 = vld [vmem:[%s3650_s5 + $0x60] sm:$0xff] }
 0x175   : > { %v572_v21 = vadd.f32 %v3122_v49, %v571_v51  ;;  %v648_v58 = vmul.f32 %v611_v55, %v3000_v8  ;;  %v675_v59 = vpack.c.b16 %v3249_v53, %v3249_v53  ;;  %v579_v61 = vand.u32 2147483648, %v3048_v10 }
 0x176   : > { %vm3276_vm15 = vcmp.eq.f32.partialorder %v577_v54, 8.507059e+37  ;;  %v655_v63 = vpack.c.bf16 %v647_v56, %v647_v56  ;;  %v676_v0 = vpack.c.b16 %v3256_v57, %v3256_v57  ;;  %v645_v3 = vmul.f32 %v566_v15, %v2993_v46  ;;  %v2671_v46 = vld [vmem:[%s3650_s5 + $0x128] sm:$0xff] }
 0x177   : > { %v576_v1 = vsel %vm3272_vm13, %v3122_v49, %v572_v21  ;;  %v656_v9 = vpack.c.bf16 %v648_v58, %v648_v58  ;;  %v684_v11 = vshrl.u32 %v675_v59, 16  ;;  %v687_v12 = vshll.u32 %v675_v59, 16  ;;  %1541 = vmatpush.bf16.msra.mxu2 %v2636_v7 }
 0x178   : > { %v580_v14 = vor.u32 1.1754944e-38, %v579_v61  ;;  %v691_v16 = vshrl.u32 %v676_v0, 16  ;;  %v694_v17 = vshll.u32 %v676_v0, 16  ;;  %v3287_v18 = vunpack.c.l.b16 %v655_v63  ;;  %1246 = vmatpush.bf16.msra.mxu3 %v2672_v60 }
 0x179   : > { %v653_v62 = vpack.c.bf16 %v645_v3, %v645_v3  ;;  %v686_v10 = vrot.slane %v684_v11, 7  ;;  %v3295_v23 = vunpack.c.l.b16 %v656_v9  ;;  %v758_v49 = vrot.slane %v687_v12, 1 }
 0x17a   : > { %v581_v27 = vsel %vm3276_vm15, %v580_v14, %v576_v1  ;;  %v693_v30 = vrot.slane %v691_v16, 7  ;;  %v3307_v33 = vpack.c.b16 %v3287_v18, %v3287_v18  ;;  %v760_v35 = vrot.slane %v694_v17, 1 }
 0x17b   : > { %v646_v2 = vmul.f32 %v581_v27, %v2995_v5  ;;  %v689_v39 = vor.u32 %v687_v12, %v686_v10  ;;  %v3318_v40 = vpack.c.b16 %v3295_v23, %v3295_v23  ;;  %v759_v42 = vor.u32 %v758_v49, %v684_v11  ;;  %1542 = vmatpush.bf16.msra.mxu2 %v2635_v24 }
 0x17c   : > { %v3320_v34 = vunpack.c.l.b16 %v653_v62  ;;  %v696_v36 = vor.u32 %v694_v17, %v693_v30  ;;  %v712_v37 = vshrl.u32 %v3307_v33, 16  ;;  %v715_v44 = vshll.u32 %v3307_v33, 16  ;;  %1247 = vmatpush.bf16.msra.mxu3 %v2671_v46  ;;  %v2272_v46 = vld [vmem:[#allocation2] sm:$0xf] }
 0x17d   : > { %v761_v38 = vor.u32 %v760_v35, %v691_v16  ;;  %v750_v41 = vsel %vm3291_vm0, 0, %v689_v39  ;;  %v719_v43 = vshrl.u32 %v3318_v40, 16  ;;  %v722_v5 = vshll.u32 %v3318_v40, 16 }
 0x17e   : > { %v785_v45 = vsel %vm3311_vm1, %v759_v42, 0  ;;  %v751_v15 = vsel %vm3291_vm0, 0, %v696_v36  ;;  %v814_v26 = vunpack.c.l.b16 %v750_v41  ;;  %v714_v6 = vrot.slane %v712_v37, 7 }
 0x17f   : > { %v786_v13 = vsel %vm3311_vm1, %v761_v38, 0  ;;  %v816_v51 = vunpack.c.l.b16 %v751_v15  ;;  %v721_v52 = vrot.slane %v719_v43, 7  ;;  %v815_v19 = vunpack.c.l.b16 %v785_v45  ;;  %1543 = vmatpush.bf16.msra.mxu2 %v2634_v50 }
 0x180   : > { %v817_v54 = vunpack.c.l.b16 %v786_v13  ;;  %v830_v55 = vpack.c.b16 %v3249_v53, %v814_v26  ;;  %v717_v56 = vor.u32 %v715_v44, %v714_v6  ;;  %v654_v21 = vpack.c.bf16 %v646_v2, %v646_v2  ;;  %1248 = vmatpush.bf16.msra.mxu3 %v2670_v4 }
 0x181   : > { %v3349_v58 = vpack.c.b16 %v3320_v34, %v3320_v34  ;;  %v832_v59 = vpack.c.b16 %v3256_v57, %v816_v51  ;;  %v724_v60 = vor.u32 %v722_v5, %v721_v52  ;;  %v831_v7 = vpack.c.b16 %v815_v19, %v815_v19 }
 0x182   : > { %v833_v31 = vpack.c.b16 %v817_v54, %v817_v54  ;;  %863 = vst [vmem:[#allocation2 + $0xc] sm:$0xff] %v830_v55  ;;  %v754_v53 = vsel %vm3291_vm0, 0, %v717_v56  ;;  %v3356_v8 = vunpack.c.l.b16 %v654_v21  ;;  %v614_v1 = vmul.f32 %v3184_v22, %v3070_v25 }
 0x183   : > { %v698_v61 = vshrl.u32 %v3349_v58, 16  ;;  %865 = vst [vmem:[#allocation2 + $0x18] sm:$0xff] %v832_v59  ;;  %v755_v63 = vsel %vm3291_vm0, 0, %v724_v60  ;;  %v822_v57 = vunpack.c.l.b16 %v754_v53  ;;  %v701_v0 = vshll.u32 %v3349_v58, 16 }
 0x184   : > { %v824_v3 = vunpack.c.l.b16 %v755_v63  ;;  %864 = vst [vmem:[#allocation2 + $0x14] sm:$0xf] %v831_v7  ;;  %v3366_v9 = vpack.c.b16 %v3356_v8, %v3356_v8  ;;  %vm618_vm2 = vweird.f32 %v3070_v25  ;;  %v615_v14 = vsub.f32 1.0, %v614_v1  ;;  %v2633_v1 = vld [vmem:[%s3650_s5 + $0x58] sm:$0xff] }
 0x185   : > { %v700_v11 = vrot.slane %v698_v61, 7  ;;  %v838_v12 = vpack.c.b16 %v3287_v18, %v822_v57  ;;  %866 = vst [vmem:[#allocation2 + $0x20] sm:$0xf] %v833_v31  ;;  %v622_v16 = vand.u32 2147483647, %v3070_v25  ;;  %v624_v17 = vand.u32 2147483648, %v3070_v25  ;;  %1544 = vmatpush.bf16.msra.mxu2 %v2633_v1 }
 0x186   : > { %v840_v62 = vpack.c.b16 %v3295_v23, %v824_v3  ;;  %v705_v49 = vshrl.u32 %v3366_v9, 16  ;;  %vm619_vm4 = vweird.f32 %v3184_v22  ;;  %v708_v24 = vshll.u32 %v3366_v9, 16  ;;  %v2669_v31 = vld [vmem:[%s3650_s5 + $0x118] sm:$0xff] }
 0x187   : > { %v703_v10 = vor.u32 %v701_v0, %v700_v11  ;;  %871 = vst [vmem:[#allocation2 + $0x3c] sm:$0xff] %v838_v12  ;;  %v616_v27 = vmul.f32 %v3184_v22, %v615_v14  ;;  %vm3379_vm5 = vcmp.eq.f32.partialorder %v622_v16, 8.507059e+37  ;;  %v629_v30 = vmul.f32 %v3195_v32, %v3079_v29  ;;  %vm620_vm3 = vmor %vm618_vm2, %vm619_vm4  ;;  %1249 = vmatpush.bf16.msra.mxu3 %v2669_v31  ;;  %v2645_v31 = vld [vmem:[%s3650_s5 + $0xb8] sm:$0xff] }
 0x188   : > { %873 = vst [vmem:[#allocation2 + $0x48] sm:$0xff] %v840_v62  ;;  %v707_v23 = vrot.slane %v705_v49, 7  ;;  %v625_v2 = vor.u32 1.1754944e-38, %v624_v17  ;;  %vm634_vm8 = vweird.f32 %v3195_v32  ;;  %v639_v45 = vand.u32 2147483648, %v3079_v29 }
 0x189   : > { %v752_v35 = vsel %vm3291_vm0, 0, %v703_v10  ;;  %v2128_v39 = vld [vmem:[#allocation2 + $0xc] sm:$0xf]  ;;  %v617_v38 = vadd.f32 %v3184_v22, %v616_v27  ;;  %v630_v41 = vsub.f32 1.0, %v629_v30  ;;  %v637_v6 = vand.u32 2147483647, %v3079_v29 }
 0x18a   : > { %v2611_v42 = vld [vmem:[#allocation2 + $0x8] sm:$0xf0]  ;;  %v818_v36 = vunpack.c.l.b16 %v752_v35  ;;  %v2647_v4 = vld [vmem:[#allocation2 + $0x14] sm:$0xf0]  ;;  %v710_v26 = vor.u32 %v708_v24, %v707_v23  ;;  %v762_v13 = vrot.slane %v701_v0, 1  ;;  %vm633_vm6 = vweird.f32 %v3079_v29 }
 0x18b   : > { %v2273_v15 = vor.u32 %v2611_v42, %v2272_v46  ;;  %v2129_v50 = vor.u32 %v2647_v4, %v2128_v39  ;;  %v2136_v51 = vld [vmem:[#allocation2 + $0x14] sm:$0xf]  ;;  %v621_v19 = vsel %vm620_vm3, %v3184_v22, %v617_v38  ;;  %v631_v54 = vmul.f32 %v3195_v32, %v630_v41  ;;  %vm635_vm7 = vmor %vm633_vm6, %vm634_vm8  ;;  %v2631_v30 = vld [vmem:[%s3650_s5 + $0x48] sm:$0xff] }
 0x18c   : > { %v834_v52 = vpack.c.b16 %v3320_v34, %v818_v36  ;;  %v2648_v55 = vld [vmem:[#allocation2 + $0x1c] sm:$0xf0]  ;;  %v753_v56 = vsel %vm3291_vm0, 0, %v710_v26  ;;  %v626_v25 = vsel %vm3379_vm5, %v625_v2, %v621_v19  ;;  %vm638_vm11 = vcmp.eq.f32.partialorder %v637_v6, 8.507059e+37  ;;  %v2284_v35 = vld [vmem:[#allocation2 + $0x18] sm:$0xf] }
 0x18d   : > { %1519 = vmatmul.bf16.vlgmr.msrb.gmra.mxu1 %v2273_v15  ;;  %1224 = vmatmul.bf16.vlgmr.msrb.gmra.mxu2 %v2129_v50  ;;  %v2137_v21 = vor.u32 %v2648_v55, %v2136_v51  ;;  %v820_v59 = vunpack.c.l.b16 %v753_v56  ;;  %v632_v34 = vadd.f32 %v3195_v32, %v631_v54  ;;  %v649_v22 = vmul.f32 %v626_v25, %v3002_v47  ;;  %v2630_v50 = vld [vmem:[%s3650_s5 + $0x40] sm:$0xff] }
 0x18e   : > { %867 = vst [vmem:[#allocation2 + $0x24] sm:$0xff] %v834_v52  ;;  %v2152_v60 = vld [vmem:[#allocation2 + $0x3c] sm:$0xf]  ;;  %v640_v7 = vor.u32 1.1754944e-38, %v639_v45  ;;  %v763_v29 = vor.u32 %v762_v13, %v698_v61  ;;  %v764_v53 = vrot.slane %v708_v24, 1  ;;  %v766_v3 = vrot.slane %v715_v44, 1 }
 0x18f   : > { %v2653_v63 = vld [vmem:[#allocation2 + $0x44] sm:$0xf0]  ;;  %1282 = vmatmul.bf16.vlgmr.msrb.gmra.mxu0 %v2137_v21  ;;  %v836_v57 = vpack.c.b16 %v3356_v8, %v820_v59  ;;  %v636_v47 = vsel %vm635_vm7, %v3195_v32, %v632_v34  ;;  %v657_v0 = vpack.c.bf16 %v649_v22, %v649_v22  ;;  %v2668_v8 = vld [vmem:[%s3650_s5 + $0x110] sm:$0xff]  ;;  %v768_v62 = vrot.slane %v722_v5, 1  ;;  %v2666_v45 = vld [vmem:[%s3650_s5 + $0x100] sm:$0xff] }
 0x190   : > { %v2153_v9 = vor.u32 %v2653_v63, %v2152_v60  ;;  %v641_v11 = vsel %vm638_vm11, %v640_v7, %v636_v47  ;;  %v765_v58 = vor.u32 %v764_v53, %v705_v49  ;;  %v787_v61 = vsel %vm3311_vm1, %v763_v29, 0  ;;  %v2632_v44 = vld [vmem:[%s3650_s5 + $0x50] sm:$0xff]  ;;  %1250 = vmatpush.bf16.msra.mxu3 %v2668_v8  ;;  %v2667_v24 = vld [vmem:[%s3650_s5 + $0x108] sm:$0xff]  ;;  %v2717_v29 = vld [vmem:[%s3650_s5 + $0x238] sm:$0xff] }
 0x191   : > { %869 = vst [vmem:[#allocation2 + $0x30] sm:$0xff] %v836_v57  ;;  %v650_v32 = vmul.f32 %v641_v11, %v3007_v48  ;;  %v3425_v12 = vunpack.c.l.b16 %v657_v0  ;;  %v819_v14 = vunpack.c.l.b16 %v787_v61  ;;  %v767_v16 = vor.u32 %v766_v3, %v712_v37  ;;  %1545 = vmatpush.bf16.msra.mxu2 %v2632_v44  ;;  %v2701_v47 = vld [vmem:[%s3650_s5 + $0x1b8] sm:$0xff]  ;;  %v2716_v11 = vld [vmem:[%s3650_s5 + $0x230] sm:$0xff]  ;;  %v2699_v44 = vld [vmem:[%s3650_s5 + $0x1a8] sm:$0xff] }
 0x192   : > { %1234 = vmatmul.bf16.vlgmr.msrb.gmra.mxu3 %v2153_v9  ;;  %v788_v17 = vsel %vm3311_vm1, %v765_v58, 0  ;;  %v769_v33 = vor.u32 %v768_v62, %v719_v43  ;;  %v2709_v0 = vld [vmem:[%s3650_s5 + $0x1f8] sm:$0xff]  ;;  %1872 = vmatpush.bf16.msra.mxu0 %v2701_v47  ;;  %v2610_v62 = vld [vmem:[#allocation2 + $0x4] sm:$0xf] }
 0x193   : > { %v658_v10 = vpack.c.bf16 %v650_v32, %v650_v32  ;;  %v681_v48 = vpack.c.b16 %v3425_v12, %v3425_v12  ;;  %v821_v49 = vunpack.c.l.b16 %v788_v17  ;;  %v835_v46 = vpack.c.b16 %v819_v14, %v819_v14  ;;  %1901 = vmatpush.bf16.msra.mxu1 %v2709_v0  ;;  %v2700_v32 = vld [vmem:[%s3650_s5 + $0x1b0] sm:$0xff]  ;;  %v2707_v14 = vld [vmem:[%s3650_s5 + $0x1e8] sm:$0xff]  ;;  %v2617_v17 = vld [vmem:[#allocation2 + $0x38] sm:$0xf0] }
 0x194   : > { %v789_v37 = vsel %vm3311_vm1, %v767_v16, 0  ;;  %v790_v2 = vsel %vm3311_vm1, %v769_v33, 0  ;;  %1251 = vmatpush.bf16.msra.mxu3 %v2667_v24  ;;  %v2698_v24 = vld [vmem:[%s3650_s5 + $0x1a0] sm:$0xff] }
 0x195   : > { %v3445_v27 = vunpack.c.l.b16 %v658_v10  ;;  %v726_v5 = vshrl.u32 %v681_v48, 16  ;;  %v837_v18 = vpack.c.b16 %v821_v49, %v821_v49  ;;  %868 = vst [vmem:[#allocation2 + $0x2c] sm:$0xf] %v835_v46  ;;  %v729_v23 = vshll.u32 %v681_v48, 16  ;;  %v2614_v42 = vld [vmem:[#allocation2 + $0x20] sm:$0xf0]  ;;  %1546 = vmatpush.bf16.msra.mxu2 %v2631_v30 }
 0x196   : > { %v823_v40 = vunpack.c.l.b16 %v789_v37  ;;  %v825_v36 = vunpack.c.l.b16 %v790_v2  ;;  %v2140_v38 = vld [vmem:[#allocation2 + $0x24] sm:$0xf]  ;;  %v2285_v13 = vor.u32 %v2614_v42, %v2284_v35  ;;  %1873 = vmatpush.bf16.msra.mxu0 %v2700_v32  ;;  %v2274_v10 = vld [vmem:[#allocation2 + $0xc] sm:$0xf0]  ;;  %v2643_v30 = vld [vmem:[%s3650_s5 + $0xa8] sm:$0xff] }
 0x197   : > { %v682_v43 = vpack.c.b16 %v3445_v27, %v3445_v27  ;;  %v728_v39 = vrot.slane %v726_v5, 7  ;;  %870 = vst [vmem:[#allocation2 + $0x38] sm:$0xf] %v837_v18  ;;  %v770_v52 = vrot.slane %v729_v23, 1  ;;  %1902 = vmatpush.bf16.msra.mxu1 %v2708_v28  ;;  %v2706_v49 = vld [vmem:[%s3650_s5 + $0x1e0] sm:$0xff]  ;;  %v2277_v37 = vor.u32 %v2610_v62, %v2274_v10  ;;  %v2697_v35 = vld [vmem:[%s3650_s5 + $0x198] sm:$0xff] }
 0x198   : > { %v2650_v41 = vld [vmem:[#allocation2 + $0x2c] sm:$0xf0]  ;;  %v839_v4 = vpack.c.b16 %v823_v40, %v823_v40  ;;  %v841_v51 = vpack.c.b16 %v825_v36, %v825_v36  ;;  %1252 = vmatpush.bf16.msra.mxu3 %v2666_v45  ;;  %v2705_v40 = vld [vmem:[%s3650_s5 + $0x1d8] sm:$0xff]  ;;  %v2308_v45 = vld [vmem:[#allocation2 + $0x48] sm:$0xf] }
 0x199   : > { %v731_v15 = vor.u32 %v729_v23, %v728_v39  ;;  %v733_v26 = vshrl.u32 %v682_v43, 16  ;;  %v736_v6 = vshll.u32 %v682_v43, 16  ;;  %v2141_v19 = vor.u32 %v2650_v41, %v2140_v38  ;;  %1547 = vmatpush.bf16.msra.mxu2 %v2630_v50  ;;  %v2296_v16 = vld [vmem:[#allocation2 + $0x30] sm:$0xf]  ;;  %v2715_v23 = vld [vmem:[%s3650_s5 + $0x228] sm:$0xff]  ;;  %v2642_v43 = vld [vmem:[%s3650_s5 + $0xa0] sm:$0xff] }
 0x19a   : > { %872 = vst [vmem:[#allocation2 + $0x44] sm:$0xf] %v839_v4  ;;  %v771_v59 = vor.u32 %v770_v52, %v726_v5  ;;  %v2297_v46 = vor.u32 %v2617_v17, %v2296_v16  ;;  %1874 = vmatpush.bf16.msra.mxu0 %v2699_v44  ;;  %v2714_v39 = vld [vmem:[%s3650_s5 + $0x220] sm:$0xff]  ;;  %v2704_v42 = vld [vmem:[%s3650_s5 + $0x1d0] sm:$0xff]  ;;  %v2703_v38 = vld [vmem:[%s3650_s5 + $0x1c8] sm:$0xff] }
 0x19b   : > { %v735_v54 = vrot.slane %v733_v26, 7  ;;  %v756_v55 = vsel %vm3291_vm0, 0, %v731_v15  ;;  %v772_v56 = vrot.slane %v736_v6, 1  ;;  %874 = vst [vmem:[#allocation2 + $0x50] sm:$0xf] %v841_v51  ;;  %1903 = vmatpush.bf16.msra.mxu1 %v2707_v14  ;;  %v2696_v36 = vld [vmem:[%s3650_s5 + $0x190] sm:$0xff] }
 0x19c   : > { %v826_v25 = vunpack.c.l.b16 %v756_v55  ;;  %v2148_v21 = vld [vmem:[#allocation2 + $0x2c] sm:$0xf]  ;;  %v791_v53 = vsel %vm3311_vm1, %v771_v59, 0  ;;  %1569 = vmatpush.bf16.msrb.mxu3 %v2645_v31  ;;  %v2613_v15 = vld [vmem:[#allocation2 + $0x1c] sm:$0xf]  ;;  %v2702_v50 = vld [vmem:[%s3650_s5 + $0x1c0] sm:$0xff] }
 0x19d   : > { %1524 = vmatmul.bf16.gmra.mxu1 %v2285_v13  ;;  %1229 = vmatmul.bf16.gmra.mxu2 %v2141_v19  ;;  %v738_v34 = vor.u32 %v736_v6, %v735_v54  ;;  %v773_v22 = vor.u32 %v772_v56, %v733_v26  ;;  %v827_v3 = vunpack.c.l.b16 %v791_v53  ;;  %v2695_v41 = vld [vmem:[%s3650_s5 + $0x188] sm:$0xff]  ;;  %v2646_v6 = vld [vmem:[#allocation2 + $0x10] sm:$0xf]  ;;  %v2130_v13 = vld [vmem:[#allocation2 + $0x18] sm:$0xf0] }
 0x19e   : > { %v842_v60 = vpack.c.b16 %v3425_v12, %v826_v25  ;;  %v2651_v7 = vld [vmem:[#allocation2 + $0x34] sm:$0xf0]  ;;  %1930 = vmatpush.bf16.msrb.mxu2 %v2717_v29  ;;  %1875 = vmatpush.bf16.msra.mxu0 %v2698_v24  ;;  %v2286_v26 = vld [vmem:[#allocation2 + $0x24] sm:$0xf0]  ;;  %v2694_v52 = vld [vmem:[%s3650_s5 + $0x180] sm:$0xff]  ;;  %v2133_v54 = vor.u32 %v2646_v6, %v2130_v13 }
 0x19f   : > { %v757_v63 = vsel %vm3291_vm0, 0, %v738_v34  ;;  %v2149_v57 = vor.u32 %v2651_v7, %v2148_v21  ;;  %v792_v1 = vsel %vm3311_vm1, %v773_v22, 0  ;;  %v843_v61 = vpack.c.b16 %v827_v3, %v827_v3  ;;  %1904 = vmatpush.bf16.msra.mxu1 %v2706_v49  ;;  %v2641_v25 = vld [vmem:[%s3650_s5 + $0x98] sm:$0xff]  ;;  %v2640_v34 = vld [vmem:[%s3650_s5 + $0x90] sm:$0xff]  ;;  %v2466_v7 = vld [vmem:[#allocation2 + $0x24] sm:$0xf0] }
 0x1a0   : > { %v828_v9 = vunpack.c.l.b16 %v757_v63  ;;  %875 = vst [vmem:[#allocation2 + $0x54] sm:$0xff] %v842_v60  ;;  %v829_v58 = vunpack.c.l.b16 %v792_v1  ;;  %1570 = vmatpush.bf16.msrb.mxu3 %v2644_v20  ;;  %v2289_v19 = vor.u32 %v2613_v15, %v2286_v26  ;;  %v2713_v21 = vld [vmem:[%s3650_s5 + $0x218] sm:$0xff]  ;;  %v2712_v22 = vld [vmem:[%s3650_s5 + $0x210] sm:$0xff]  ;;  %v2298_v29 = vld [vmem:[#allocation2 + $0x3c] sm:$0xf0] }
 0x1a1   : > { %1287 = vmatmul.bf16.gmra.mxu0 %v2149_v57  ;;  %876 = vst [vmem:[#allocation2 + $0x5c] sm:$0xf] %v843_v61  ;;  %v2160_v5 = vld [vmem:[#allocation2 + $0x44] sm:$0xf]  ;;  %v2682_v60 = vld [vmem:[#allocation2 + $0x1c] sm:$0xf] }
 0x1a2   : > { %v844_v8 = vpack.c.b16 %v3445_v27, %v828_v9  ;;  %v845_v12 = vpack.c.b16 %v829_v58, %v829_v58  ;;  %1931 = vmatpush.bf16.msrb.mxu2 %v2716_v11  ;;  %v2654_v18 = vld [vmem:[#allocation2 + $0x4c] sm:$0xf0]  ;;  %1876 = vmatpush.bf16.msra.mxu0 %v2697_v35  ;;  %v2616_v31 = vld [vmem:[#allocation2 + $0x34] sm:$0xf]  ;;  %v2649_v53 = vld [vmem:[#allocation2 + $0x28] sm:$0xf]  ;;  %v2469_v57 = vor.u32 %v2682_v60, %v2466_v7 }
 0x1a3   : > { %v2161_v2 = vor.u32 %v2654_v18, %v2160_v5  ;;  %1905 = vmatpush.bf16.msra.mxu1 %v2705_v40  ;;  %v2142_v63 = vld [vmem:[#allocation2 + $0x30] sm:$0xf0]  ;;  %v2301_v47 = vor.u32 %v2616_v31, %v2298_v29  ;;  %v2464_v1 = vld [vmem:[#allocation2 + $0x18] sm:$0xf]  ;;  %v2683_v3 = vld [vmem:[#allocation2 + $0x20] sm:$0xf0] }
 0x1a4   : > { %877 = vst [vmem:[#allocation2 + $0x60] sm:$0xff] %v844_v8  ;;  %1571 = vmatpush.bf16.msrb.mxu3 %v2643_v30  ;;  %v2145_v0 = vor.u32 %v2649_v53, %v2142_v63  ;;  %v2639_v9 = vld [vmem:[%s3650_s5 + $0x88] sm:$0xff]  ;;  %v2465_v11 = vor.u32 %v2683_v3, %v2464_v1  ;;  %v2638_v58 = vld [vmem:[%s3650_s5 + $0x80] sm:$0xff]  ;;  %v2685_v61 = vld [vmem:[#allocation2 + $0x34] sm:$0xf] }
 0x1a5   : > { %878 = vst [vmem:[#allocation2 + $0x68] sm:$0xf] %v845_v12  ;;  %v2711_v20 = vld [vmem:[%s3650_s5 + $0x208] sm:$0xff]  ;;  %v2710_v28 = vld [vmem:[%s3650_s5 + $0x200] sm:$0xff]  ;;  %v2476_v10 = vld [vmem:[#allocation2 + $0x30] sm:$0xf] }
 0x1a6   : > { %1932 = vmatpush.bf16.msrb.mxu2 %v2715_v23  ;;  %1877 = vmatpush.bf16.msra.mxu0 %v2696_v36  ;;  %v2478_v8 = vld [vmem:[#allocation2 + $0x3c] sm:$0xf0]  ;;  %v2619_v32 = vld [vmem:[#allocation2 + $0x4c] sm:$0xf]  ;;  %v2488_v35 = vld [vmem:[#allocation2 + $0x48] sm:$0xf] }
 0x1a7   : > { %v2164_v48 = vld [vmem:[#allocation2 + $0x54] sm:$0xf]  ;;  %1906 = vmatpush.bf16.msra.mxu1 %v2704_v42  ;;  %v2310_v12 = vld [vmem:[#allocation2 + $0x54] sm:$0xf0]  ;;  %v2652_v14 = vld [vmem:[#allocation2 + $0x40] sm:$0xf]  ;;  %v2481_v16 = vor.u32 %v2685_v61, %v2478_v8 }
 0x1a8   : > { %1572 = vmatpush.bf16.msrb.mxu3 %v2642_v43  ;;  %v2620_v4 = vld [vmem:[#allocation2 + $0x50] sm:$0xf0]  ;;  %v2172_v55 = vld [vmem:[#allocation2 + $0x5c] sm:$0xf]  ;;  %v2154_v44 = vld [vmem:[#allocation2 + $0x48] sm:$0xf0]  ;;  %v2313_v17 = vor.u32 %v2619_v32, %v2310_v12 }
 0x1a9   : > { %v2309_v51 = vor.u32 %v2620_v4, %v2308_v45  ;;  %v2157_v62 = vor.u32 %v2652_v14, %v2154_v44  ;;  %v2490_v24 = vld [vmem:[#allocation2 + $0x54] sm:$0xf0]  ;;  %v2687_v36 = vld [vmem:[#allocation2 + $0x40] sm:$0xf0]  ;;  %v2692_v6 = vld [vmem:[#allocation2 + $0x68] sm:$0xf0] }
 0x1aa   : > { %1933 = vmatpush.bf16.msrb.mxu2 %v2714_v39  ;;  %1878 = vmatpush.bf16.msra.mxu0 %v2695_v41  ;;  %v2502_v39 = vld [vmem:[#allocation2 + $0x6c] sm:$0xf0]  ;;  %v2484_v42 = vld [vmem:[#allocation2 + $0x38] sm:$0xf]  ;;  %v2612_v41 = vld [vmem:[#allocation2 + $0x10] sm:$0xf0] }
 0x1ab   : > { %v2656_v33 = vld [vmem:[#allocation2 + $0x5c] sm:$0xf0]  ;;  %1907 = vmatpush.bf16.msra.mxu1 %v2703_v38  ;;  %v2166_v5 = vld [vmem:[#allocation2 + $0x60] sm:$0xf0]  ;;  %v2280_v38 = vld [vmem:[#allocation2 + $0x8] sm:$0xf]  ;;  %v2485_v4 = vor.u32 %v2687_v36, %v2484_v42 }
 0x1ac   : > { %v2165_v27 = vor.u32 %v2656_v33, %v2164_v48  ;;  %v2657_v56 = vld [vmem:[#allocation2 + $0x64] sm:$0xf0]  ;;  %1573 = vmatpush.bf16.msrb.mxu3 %v2641_v25  ;;  %v2686_v48 = vld [vmem:[#allocation2 + $0x38] sm:$0xf0]  ;;  %v2472_v33 = vld [vmem:[#allocation2 + $0x20] sm:$0xf]  ;;  %v2281_v15 = vor.u32 %v2612_v41, %v2280_v38 }
 0x1ad   : > { %1529 = vmatmul.bf16.gmra.mxu1 %v2297_v46  ;;  %1548 = vmatmul.bf16.vlgmr.msra.gmra.mxu2 %v2277_v37  ;;  %v2173_v59 = vor.u32 %v2657_v56, %v2172_v55  ;;  %v2477_v49 = vor.u32 %v2686_v48, %v2476_v10  ;;  %v2688_v46 = vld [vmem:[#allocation2 + $0x4c] sm:$0xf]  ;;  %v2691_v43 = vld [vmem:[#allocation2 + $0x64] sm:$0xf]  ;;  %v2500_v26 = vld [vmem:[#allocation2 + $0x60] sm:$0xf] }
 0x1ae   : > { %1239 = vmatmul.bf16.gmra.mxu3 %v2165_v27  ;;  %1879 = vmatpush.bf16.msra.mxu0 %v2694_v52  ;;  %v2684_v37 = vld [vmem:[#allocation2 + $0x28] sm:$0xf0]  ;;  %v2655_v27 = vld [vmem:[#allocation2 + $0x58] sm:$0xf]  ;;  %v2493_v18 = vor.u32 %v2688_v46, %v2490_v24  ;;  %v2505_v45 = vor.u32 %v2691_v43, %v2502_v39  ;;  %v2501_v13 = vor.u32 %v2692_v6, %v2500_v26  ;;  %v2292_v52 = vld [vmem:[#allocation2 + $0x20] sm:$0xf] }
 0x1af   : > { %1908 = vmatpush.bf16.msra.mxu1 %v2702_v50  ;;  %1934 = vmatpush.bf16.msrb.mxu2 %v2713_v21  ;;  %v2473_v30 = vor.u32 %v2684_v37, %v2472_v33  ;;  %v2169_v23 = vor.u32 %v2655_v27, %v2166_v5  ;;  %v2496_v50 = vld [vmem:[#allocation2 + $0x50] sm:$0xf]  ;;  %v2508_v21 = vld [vmem:[#allocation2 + $0x68] sm:$0xf] }
 0x1b0   : > { %1574 = vmatpush.bf16.msrb.mxu3 %v2640_v34  ;;  %v2304_v34 = vld [vmem:[#allocation2 + $0x38] sm:$0xf]  ;;  %v2316_v3 = vld [vmem:[#allocation2 + $0x50] sm:$0xf] }
 0x1b1   : > { %1292 = vmatmul.bf16.gmra.mxu0 %v2161_v2  ;;  %v2689_v2 = vld [vmem:[#allocation2 + $0x50] sm:$0xf0] }
 0x1b2   : > { %v2489_v40 = vor.u32 %v2689_v2, %v2488_v35 }
 0x1b3   : > { %1935 = vmatpush.bf16.msrb.mxu2 %v2712_v22  ;;  %v2618_v22 = vld [vmem:[#allocation2 + $0x40] sm:$0xf0] }
 0x1b4   : > { %1575 = vmatpush.bf16.msrb.mxu3 %v2639_v9  ;;  %v2305_v31 = vor.u32 %v2618_v22, %v2304_v34  ;;  %v2621_v9 = vld [vmem:[#allocation2 + $0x58] sm:$0xf0] }
 0x1b7   : > { %1936 = vmatpush.bf16.msrb.mxu2 %v2711_v20  ;;  %v2317_v20 = vor.u32 %v2621_v9, %v2316_v3 }
 0x1b8   : > { %1576 = vmatpush.bf16.msrb.mxu3 %v2638_v58 }
 0x1bb   : > { %1937 = vmatpush.bf16.msrb.mxu2 %v2710_v28 }
 0x1bd   : > { %1534 = vmatmul.bf16.gmra.mxu1 %v2309_v51  ;;  %1553 = vmatmul.bf16.gmra.mxu2 %v2289_v19  ;;  %v2690_v51 = vld [vmem:[#allocation2 + $0x58] sm:$0xf0]  ;;  %v2615_v19 = vld [vmem:[#allocation2 + $0x28] sm:$0xf0] }
 0x1be   : > { %1253 = vmatmul.bf16.vlgmr.msra.gmra.mxu3 %v2133_v54  ;;  %v2497_v54 = vor.u32 %v2690_v51, %v2496_v50  ;;  %v2293_v55 = vor.u32 %v2615_v19, %v2292_v52 }
 0x1c1   : > { %1297 = vmatmul.bf16.gmra.mxu0 %v2173_v59  ;;  %v2693_v59 = vld [vmem:[#allocation2 + $0x70] sm:$0xf0] }
 0x1c2   : > { %v2509_v60 = vor.u32 %v2693_v59, %v2508_v21 }
 0x1cd   : > { %1909 = vmatmul.bf16.vlgmr.msra.gmra.mxu1 %v2469_v57  ;;  %1558 = vmatmul.bf16.gmra.mxu2 %v2301_v47 }
 0x1ce   : > { %1258 = vmatmul.bf16.gmra.mxu3 %v2145_v0 }
 0x1d1   : > { %1880 = vmatmul.bf16.vlgmr.msra.gmra.mxu0 %v2465_v11 }
 0x1dd   : > { %1914 = vmatmul.bf16.gmra.mxu1 %v2481_v16  ;;  %1563 = vmatmul.bf16.gmra.mxu2 %v2313_v17 }
 0x1de   : > { %1263 = vmatmul.bf16.gmra.mxu3 %v2157_v62 }
 0x1e1   : > { %1885 = vmatmul.bf16.gmra.mxu0 %v2477_v49 }
 0x1ed   : > { %1919 = vmatmul.bf16.gmra.mxu1 %v2493_v18  ;;  %1938 = vmatmul.bf16.vlgmr.msrb.gmra.mxu2 %v2473_v30 }
 0x1ee   : > { %1268 = vmatmul.bf16.gmra.mxu3 %v2169_v23 }
 0x1f1   : > { %1890 = vmatmul.bf16.gmra.mxu0 %v2489_v40 }
 0x1fd   : > { %1924 = vmatmul.bf16.gmra.mxu1 %v2505_v45  ;;  %1943 = vmatmul.bf16.gmra.mxu2 %v2485_v4 }
 0x1fe   : > { %1577 = vmatmul.bf16.vlgmr.msrb.gmra.mxu3 %v2281_v15 }
 0x201   : > { %1895 = vmatmul.bf16.gmra.mxu0 %v2501_v13 }
 0x20a   : > { %v1520_v7 = vpop.f32.mrf.mxu1 }
 0x20c   : > { %v1283_v29 = vpop.f32.mrf.mxu0 }
 0x20d   : > { %1948 = vmatmul.bf16.gmra.mxu2 %v2497_v54 }
 0x20e   : > { %1582 = vmatmul.bf16.gmra.mxu3 %v2293_v55 }
 0x210   : > { %v1225_v56 = vpop.f32.mrf.mxu2 }
 0x212   : > { %v3568_v57 = vpop.f32.mrf.mxu1 }
 0x214   : > { %v1285_v47 = vpop.f32.mrf.mxu0 }
 0x215   : > { %v1235_v53 = vpop.f32.mrf.mxu3 }
 0x218   : > { %v3566_v25 = vpop.f32.mrf.mxu2 }
 0x21a   : > { %v1525_v11 = vpop.f32.mrf.mxu1 }
 0x21d   : > { %1953 = vmatmul.bf16.gmra.mxu2 %v2509_v60  ;;  %v3570_v0 = vpop.f32.mrf.mxu3 }
 0x21e   : > { %1587 = vmatmul.bf16.gmra.mxu3 %v2305_v31  ;;  %v1288_v28 = vpop.f32.mrf.mxu0 }
 0x220   : > { %v1230_v63 = vpop.f32.mrf.mxu2 }
 0x222   : > { %v3576_v12 = vpop.f32.mrf.mxu1 }
 0x226   : > { %v3578_v14 = vpop.f32.mrf.mxu0 }
 0x228   : > { %v3572_v1 = vpop.f32.mrf.mxu2 }
 0x22a   : > { %v1530_v62 = vpop.f32.mrf.mxu1 }
 0x22e   : > { %1592 = vmatmul.bf16.gmra.mxu3 %v2317_v20  ;;  %v1293_v48 = vpop.f32.mrf.mxu0 }
 0x230   : > { %v1549_v58 = vpop.f32.mrf.mxu2 }
 0x231   : > { %v1240_v61 = vpop.f32.mrf.mxu3 }
 0x232   : > { %v3582_v37 = vpop.f32.mrf.mxu1 }
 0x236   : > { %v3584_v27 = vpop.f32.mrf.mxu0 }
 0x238   : > { %v1551_v8 = vpop.f32.mrf.mxu2 }
 0x239   : > { %v3574_v32 = vpop.f32.mrf.mxu3 }
 0x23a   : > { %v1535_v2 = vpop.f32.mrf.mxu1 }
 0x23e   : > { %v1298_v39 = vpop.f32.mrf.mxu0 }
 0x240   : > { %v1554_v44 = vpop.f32.mrf.mxu2 }
 0x241   : > { %v1254_v16 = vpop.f32.mrf.mxu3 }
 0x242   : > { %v1255_v17 = vadd.f32 %v1254_v16, %v1225_v56  ;;  %v3588_v41 = vpop.f32.mrf.mxu1 }
 0x244   : > { %v1284_v10 = vadd.f32 %v1283_v29, %v1255_v17 }
 0x246   : > { %v1521_v49 = vadd.f32 %v1520_v7, %v1284_v10  ;;  %v3590_v4 = vpop.f32.mrf.mxu0 }
 0x248   : > { %v1550_v46 = vadd.f32 %v1549_v58, %v1521_v49  ;;  %v3580_v24 = vpop.f32.mrf.mxu2 }
 0x249   : > { %v1256_v33 = vpop.f32.mrf.mxu3 }
 0x24a   : > { %v1910_v51 = vpop.f32.mrf.mxu1  ;;  %v1257_v31 = vadd.f32 %v1256_v33, %v3566_v25 }
 0x24e   : > { %v1881_v52 = vpop.f32.mrf.mxu0 }
 0x24f   : > { %v1911_v29 = vadd.f32 %v1910_v51, %v1881_v52 }
 0x250   : > { %v1559_v5 = vpop.f32.mrf.mxu2 }
 0x251   : > { %v1259_v18 = vpop.f32.mrf.mxu3 }
 0x252   : > { %v1260_v30 = vadd.f32 %v1259_v18, %v1230_v63  ;;  %v1912_v21 = vpop.f32.mrf.mxu1 }
 0x254   : > { %v1289_v23 = vadd.f32 %v1288_v28, %v1260_v30 }
 0x256   : > { %v1526_v35 = vadd.f32 %v1525_v11, %v1289_v23  ;;  %v1883_v34 = vpop.f32.mrf.mxu0  ;;  %v3606_v11 = vld [vmem:[%s287_s14] ss:$0 sm:$0xff] }
 0x257   : > { %v1913_v16 = vadd.f32 %v1912_v21, %v1883_v34 }
 0x258   : > { %v1555_v40 = vadd.f32 %v1554_v44, %v1526_v35  ;;  %v3586_v43 = vpop.f32.mrf.mxu2 }
 0x259   : > { %v1261_v42 = vpop.f32.mrf.mxu3 }
 0x25a   : > { %v1915_v63 = vpop.f32.mrf.mxu1  ;;  %v1262_v33 = vadd.f32 %v1261_v42, %v3572_v1 }
 0x25e   : > { %v1886_v9 = vpop.f32.mrf.mxu0 }
 0x25f   : > { %v1916_v30 = vadd.f32 %v1915_v63, %v1886_v9 }
 0x260   : > { %v1564_v36 = vpop.f32.mrf.mxu2 }
 0x261   : > { %v1264_v38 = vpop.f32.mrf.mxu3 }
 0x262   : > { %v1265_v45 = vadd.f32 %v1264_v38, %v1235_v53  ;;  %v1286_v53 = vadd.f32 %v1285_v47, %v1257_v31  ;;  %v1917_v10 = vpop.f32.mrf.mxu1 }
 0x264   : > { %v1294_v15 = vadd.f32 %v1293_v48, %v1265_v45 }
 0x266   : > { %v1531_v26 = vadd.f32 %v1530_v62, %v1294_v15  ;;  %v1888_v49 = vpop.f32.mrf.mxu0 }
 0x267   : > { %v1918_v38 = vadd.f32 %v1917_v10, %v1888_v49 }
 0x268   : > { %v3592_v6 = vadd.f32 %v1559_v5, %v1531_v26  ;;  %v3594_v13 = vpop.f32.mrf.mxu2 }
 0x269   : > { %v1266_v50 = vpop.f32.mrf.mxu3 }
 0x270   : > { %v1939_v19 = vpop.f32.mrf.mxu2 }
 0x271   : > { %v1269_v54 = vpop.f32.mrf.mxu3  ;;  %v1940_v3 = vadd.f32 %v1939_v19, %v1911_v29  ;;  %v1267_v19 = vadd.f32 %v1266_v50, %v3570_v0 }
 0x272   : > { %v1270_v55 = vadd.f32 %v1269_v54, %v1240_v61  ;;  %v1523_v61 = vadd.f32 %v3568_v57, %v1286_v53  ;;  %v1291_v57 = vadd.f32 %v3578_v14, %v1262_v33 }
 0x273   : > { %v1296_v21 = vadd.f32 %v3584_v27, %v1267_v19 }
 0x274   : > { %v1299_v56 = vadd.f32 %v1298_v39, %v1270_v55  ;;  %v1552_v47 = vadd.f32 %v1551_v8, %v1523_v61  ;;  %v1528_v1 = vadd.f32 %v3576_v12, %v1291_v57  ;;  %v1920_v39 = vpop.f32.mrf.mxu1 }
 0x275   : > { %v1533_v29 = vadd.f32 %v3582_v37, %v1296_v21 }
 0x276   : > { %v1536_v59 = vadd.f32 %v1535_v2, %v1299_v56  ;;  %v1557_v26 = vadd.f32 %v3580_v24, %v1528_v1 }
 0x277   : > { %v1562_v50 = vadd.f32 %v3586_v43, %v1533_v29 }
 0x278   : > { %v3596_v22 = vadd.f32 %v1564_v36, %v1536_v59  ;;  %v1941_v7 = vpop.f32.mrf.mxu2  ;;  %v1891_v36 = vpop.f32.mrf.mxu0 }
 0x279   : > { %v3598_v60 = vpop.f32.mrf.mxu3  ;;  %v1942_v17 = vadd.f32 %v1941_v7, %v1913_v16  ;;  %v1921_v55 = vadd.f32 %v1920_v39, %v1891_v36 }
 0x27a   : > { %v1272_v61 = vadd.f32 %v3598_v60, %v3574_v32 }
 0x27c   : > { %v1301_v16 = vadd.f32 %v3590_v4, %v1272_v61 }
 0x280   : > { %v1944_v28 = vpop.f32.mrf.mxu2  ;;  %v1893_v56 = vpop.f32.mrf.mxu0 }
 0x281   : > { %v1578_v20 = vpop.f32.mrf.mxu3  ;;  %v1945_v23 = vadd.f32 %v1944_v28, %v1916_v30 }
 0x282   : > { %v1579_v58 = vadd.f32 %v1578_v20, %v1550_v46 }
 0x284   : > { %v1959_v44 = vadd.f32 %v1940_v3, %v1579_v58 }
 0x286   : > { %v1971_v25 = vadd.f32 %v3606_v11, %v1959_v44 }
 0x288   : > { %v1946_v18 = vpop.f32.mrf.mxu2  ;;  %v1896_v20 = vpop.f32.mrf.mxu0 }
 0x289   : > { %v1580_v62 = vpop.f32.mrf.mxu3  ;;  %v1947_v51 = vadd.f32 %v1946_v18, %v1918_v38 }
 0x28a   : > { %v1581_v48 = vadd.f32 %v1580_v62, %v1552_v47 }
 0x28c   : > { %v1960_v5 = vadd.f32 %v1942_v17, %v1581_v48  ;;  %v1538_v48 = vadd.f32 %v3588_v41, %v1301_v16 }
 0x28e   : > { %v1972_v46 = vadd.f32 %v3606_v11, %v1960_v5  ;;  %v1567_v5 = vadd.f32 %v3594_v13, %v1538_v48 }
 0x290   : > { %v2721_v8 = vpack.c.bf16 %v1972_v46, %v1971_v25  ;;  %v1949_v15 = vpop.f32.mrf.mxu2  ;;  %v1898_v62 = vpop.f32.mrf.mxu0 }
 0x291   : > { %v1583_v35 = vpop.f32.mrf.mxu3  ;;  %v1950_v34 = vadd.f32 %v1949_v15, %v1921_v55 }
 0x292   : > { %2722 = vst [vmem:[%s3616_s22] sm:$0xff] %v2721_v8   ;;  %v1584_v2 = vadd.f32 %v1583_v35, %v1555_v40  ;;  %v1922_v40 = vpop.f32.mrf.mxu1 }
 0x293   : > { %v1923_v63 = vadd.f32 %v1922_v40, %v1893_v56 }
 0x294   : > { %v1961_v42 = vadd.f32 %v1945_v23, %v1584_v2 }
 0x296   : > { %v1973_v45 = vadd.f32 %v3606_v11, %v1961_v42 }
 0x298   : > { %v1951_v31 = vpop.f32.mrf.mxu2 }
 0x299   : > { %v1585_v52 = vpop.f32.mrf.mxu3  ;;  %v1952_v9 = vadd.f32 %v1951_v31, %v1923_v63 }
 0x29a   : > { %v1586_v14 = vadd.f32 %v1585_v52, %v1557_v26  ;;  %v1925_v3 = vpop.f32.mrf.mxu1 }
 0x29c   : > { %v1962_v54 = vadd.f32 %v1947_v51, %v1586_v14 }
 0x29e   : > { %v1974_v12 = vadd.f32 %v3606_v11, %v1962_v54 }
 0x2a0   : > { %v2726_v59 = vpack.c.bf16 %v1974_v12, %v1973_v45  ;;  %v1954_v28 = vpop.f32.mrf.mxu2 }
 0x2a1   : > { %v1588_v7 = vpop.f32.mrf.mxu3 }
 0x2a2   : > { %2738 = vst [vmem:[%s3616_s22 + $0x8] sm:$0xff] %v2726_v59   ;;  %v1589_v24 = vadd.f32 %v1588_v7, %v3592_v6  ;;  %v1926_v6 = vadd.f32 %v1925_v3, %v1896_v20  ;;  %v1927_v10 = vpop.f32.mrf.mxu1 }
 0x2a3   : > { %v1928_v32 = vadd.f32 %v1927_v10, %v1898_v62 }
 0x2a4   : > { %v1963_v53 = vadd.f32 %v1950_v34, %v1589_v24  ;;  %v1955_v47 = vadd.f32 %v1954_v28, %v1926_v6 }
 0x2a6   : > { %v1975_v0 = vadd.f32 %v3606_v11, %v1963_v53 }
 0x2a8   : > { %v1956_v33 = vpop.f32.mrf.mxu2 }
 0x2a9   : > { %v1590_v27 = vpop.f32.mrf.mxu3  ;;  %v1957_v18 = vadd.f32 %v1956_v33, %v1928_v32 }
 0x2aa   : > { %v1591_v58 = vadd.f32 %v1590_v27, %v1562_v50 }
 0x2ac   : > { %v1964_v44 = vadd.f32 %v1952_v9, %v1591_v58 }
 0x2ae   : > { %v1976_v37 = vadd.f32 %v3606_v11, %v1964_v44 }
 0x2b0   : > { %v2731_v25 = vpack.c.bf16 %v1976_v37, %v1975_v0 }
 0x2b1   : > { %v1593_v17 = vpop.f32.mrf.mxu3 }
 0x2b2   : > { %2739 = vst [vmem:[%s3616_s22 + $0x10] sm:$0xff] %v2731_v25   ;;  %v1594_v43 = vadd.f32 %v1593_v17, %v3596_v22 }
 0x2b4   : > { %v1965_v49 = vadd.f32 %v1955_v47, %v1594_v43 }
 0x2b6   : > { %v1977_v60 = vadd.f32 %v3606_v11, %v1965_v49 }
 0x2b9   : > { %v1595_v4 = vpop.f32.mrf.mxu3 }
 0x2ba   : > { %v1596_v30 = vadd.f32 %v1595_v4, %v1567_v5 }
 0x2bc   : > { %v1966_v46 = vadd.f32 %v1957_v18, %v1596_v30 }
 0x2be   : > { %v1978_v57 = vadd.f32 %v3606_v11, %v1966_v46 }
 0x2c0   : > { %v2736_v8 = vpack.c.bf16 %v1978_v57, %v1977_v60 }
 0x2c2   : > { %2740 = vst [vmem:[%s3616_s22 + $0x18] sm:$0xff] %v2736_v8  }
 0x2c3 PF: > { %s17_s24 = sadd.s32 1, %s2802_s24  }
 0x2c4   : > { %p14_p4 = scmp.ge.s32.totalorder %s17_s24, 4  }
 0x2c6   :  { %16 = sbr.rel (!%p14_p4) target bundleno = 1 (0x1), region = 86 }

// kernel: _lambda_.3
= control target key start
LH: loop header
LB: loop body
LE: loop exit
PB: predicated region body
PF: predicated region fallthrough
CT: control target
= control target key end

     0   :  { %s3152_s13 = smov 0   ;;  %s3956_s0 = inlined_call_operand.vmem [shape: bf16[2,8,8,128], index: 0, kind: input, shape index: {}]   ;;  %s3957_s1 = inlined_call_operand.vmem [shape: f32[128,32], index: 1, kind: input, shape index: {}]   ;;  %s3958_s2 = inlined_call_operand.vmem [shape: f32[32,128], index: 2, kind: input, shape index: {}]   ;;  %s3959_s3 = inlined_call_operand.vmem [shape: f32[1,128], index: 3, kind: input, shape index: {}]   ;;  %s3960_s4 = inlined_call_operand.vmem [shape: f32[1,128], index: 4, kind: input, shape index: {}]   ;;  %s3961_s5 = inlined_call_operand.vmem [shape: bf16[3,384,128], index: 5, kind: input, shape index: {}]   ;;  %s3962_s6 = inlined_call_operand.vmem [shape: f32[1,1,128], index: 6, kind: input, shape index: {}]   ;;  %s3963_s7 = inlined_call_operand.vmem [shape: f32[2,8,8,128], index: 7, kind: input, shape index: {}]   ;;  %s3964_s8 = inlined_call_operand.vmem [shape: bf16[128,128], index: 8, kind: input, shape index: {}]   ;;  %s3965_s9 = inlined_call_operand.vmem [shape: f32[1,128], index: 9, kind: input, shape index: {}]   ;;  %s3966_s10 = inlined_call_operand.vmem [shape: f32[2,8,8,128], index: 10, kind: output, shape index: {}]  }
   0x1 LB: > { %s2302_s14 = sadd.s32 4294967295, %s3093_s13   ;;  %p2306_p0 = scmp.ge.s32.totalorder %s3093_s13, 1  ;;  %s3093_s13 = sphi %s3152_s13, %s20_s13  }
   0x2   : > { %p322_p1 = scmp.lt.s32.totalorder %s3093_s13, 3 }
   0x4   : > { %p323_p2 = pnand %p2306_p0, %p322_p1 }
   0x5   : > { %p365_p3 = scmp.lt.s32.totalorder (!%p323_p2), %s2302_s14, 1 }
   0x6   : > { %326 = sbr.rel (%p323_p2) target bundleno = 708 (0x2c4), region = 60 }
   0xb   : > { %v446_v0 = vld [vmem:[%s3957_s1 + $0x78] sm:$0xff]  ;;  %v445_v1 = vld [vmem:[%s3957_s1 + $0x70] sm:$0xff]  ;;  %v444_v2 = vld [vmem:[%s3957_s1 + $0x68] sm:$0xff]  ;;  %s3990_s14 = smov (!%p365_p3, %s2302_s14), 1  ;;  %vm514_vm1 = vcmask 261120  }
   0xc   : > { %447 = vmatpush.msra.mxu0 %v446_v0  ;;  %475 = vmatpush.msra.mxu1 %v446_v0  ;;  %v443_v3 = vld [vmem:[%s3957_s1 + $0x60] sm:$0xff]  ;;  %s2885_s23 = sshll.u32 %s3990_s14, 5  ;;  %v442_v4 = vld [vmem:[%s3957_s1 + $0x58] sm:$0xff]  ;;  %v512_v12 = vld [vmem:[%s3958_s2 + $0x10] sm:$0xff]  ;;  %s2886_s25 = sshll.u32 %s3990_s14, 6 }
   0xd   : > { %s369_s26 = scalar_lea.vmem %s3956_s0, %s2885_s23  ;;  %v513_v11 = vld [vmem:[%s3958_s2 + $0x18] sm:$0xff]  ;;  %v441_v13 = vld [vmem:[%s3957_s1 + $0x50] sm:$0xff]  ;;  %v440_v18 = vld [vmem:[%s3957_s1 + $0x48] sm:$0xff]  ;;  %s3845_s28 = scalar_lea.vmem %s3963_s7, %s2886_s25 }
   0xe   : > { %448 = vmatpush.msra.mxu0 %v445_v1  ;;  %476 = vmatpush.msra.mxu1 %v445_v1  ;;  %v3005_v5 = vld [vmem:[%s369_s26] sm:$0xff]   ;;  %v3020_v6 = vld [vmem:[%s369_s26 + $0x8] sm:$0xff]   ;;  %v3021_v10 = vld [vmem:[%s369_s26 + $0x10] sm:$0xff]   ;;  %s3911_s17 = scalar_lea.vmem %s3966_s10, %s2886_s25 }
   0xf   : > { %v3181_v7 = vunpack.c.l.bf16 %v3005_v5  ;;  %v3183_v8 = vunpack.c.h.bf16 %v3005_v5  ;;  %v3185_v9 = vunpack.c.l.bf16 %v3020_v6  ;;  %v3196_v14 = vunpack.c.h.bf16 %v3020_v6  ;;  %530 = vmatpush.msra.mxu2 %v513_v11  ;;  %553 = vmatpush.msra.mxu3 %v513_v11  ;;  %v3022_v21 = vld [vmem:[%s369_s26 + $0x18] sm:$0xff]   ;;  %v439_v23 = vld [vmem:[%s3957_s1 + $0x40] sm:$0xff]  ;;  %v437_v33 = vld [vmem:[%s3957_s1 + $0x30] sm:$0xff] }
  0x10   : > { %449 = vmatpush.msra.mxu0 %v444_v2  ;;  %477 = vmatpush.msra.mxu1 %v444_v2  ;;  %v3207_v19 = vunpack.c.l.bf16 %v3021_v10  ;;  %v3215_v24 = vunpack.c.h.bf16 %v3021_v10  ;;  %v438_v28 = vld [vmem:[%s3957_s1 + $0x38] sm:$0xff]  ;;  %v3223_v29 = vunpack.c.l.bf16 %v3022_v21  ;;  %v3231_v34 = vunpack.c.h.bf16 %v3022_v21  ;;  %v436_v38 = vld [vmem:[%s3957_s1 + $0x28] sm:$0xff]  ;;  %v435_v42 = vld [vmem:[%s3957_s1 + $0x20] sm:$0xff] }
  0x11   : > { %v397_v15 = vadd.f32 %v3183_v8, %v3181_v7  ;;  %v410_v16 = vmul.f32 %v3181_v7, %v3181_v7  ;;  %v411_v17 = vmul.f32 %v3183_v8, %v3183_v8  ;;  %v412_v20 = vmul.f32 %v3185_v9, %v3185_v9  ;;  %531 = vmatpush.msra.mxu2 %v512_v12  ;;  %v434_v46 = vld [vmem:[%s3957_s1 + $0x18] sm:$0xff]  ;;  %v433_v49 = vld [vmem:[%s3957_s1 + $0x10] sm:$0xff]  ;;  %v432_v52 = vld [vmem:[%s3957_s1 + $0x8] sm:$0xff] }
  0x12   : > { %450 = vmatpush.msra.mxu0 %v443_v3  ;;  %478 = vmatpush.msra.mxu1 %v443_v3  ;;  %v413_v25 = vmul.f32 %v3196_v14, %v3196_v14  ;;  %v414_v30 = vmul.f32 %v3207_v19, %v3207_v19  ;;  %v415_v35 = vmul.f32 %v3215_v24, %v3215_v24  ;;  %v431_v55 = vld [vmem:[%s3957_s1] sm:$0xff]  ;;  %v511_v0 = vld [vmem:[%s3958_s2 + $0x8] sm:$0xff]  ;;  %v3095_v2 = vmov 128.0  }
  0x13   : > { %v398_v22 = vadd.f32 %v3185_v9, %v397_v15  ;;  %v418_v26 = vadd.f32 %v411_v17, %v410_v16  ;;  %554 = vmatpush.msra.mxu3 %v512_v12  ;;  %v416_v39 = vmul.f32 %v3223_v29, %v3223_v29  ;;  %v417_v43 = vmul.f32 %v3231_v34, %v3231_v34  ;;  %v510_v1 = vld [vmem:[%s3958_s2] sm:$0xff] }
  0x14   : > { %451 = vmatpush.msra.mxu0 %v442_v4  ;;  %479 = vmatpush.msra.mxu1 %v442_v4  ;;  %3051 = vrcp.f32 %v3095_v2  ;;  %v2949_v2 = vld [vmem:[%s3961_s5 + $0x128] sm:$0xff] }
  0x15   : > { %v399_v27 = vadd.f32 %v3196_v14, %v398_v22  ;;  %v419_v31 = vadd.f32 %v418_v26, %v412_v20  ;;  %532 = vmatpush.msra.mxu2 %v511_v0  ;;  %555 = vmatpush.msra.mxu3 %v511_v0 }
  0x16   : > { %452 = vmatpush.msra.mxu0 %v441_v13  ;;  %480 = vmatpush.msra.mxu1 %v441_v13 }
  0x17   : > { %v400_v32 = vadd.f32 %v3207_v19, %v399_v27  ;;  %v420_v36 = vadd.f32 %v419_v31, %v413_v25  ;;  %533 = vmatpush.msra.mxu2 %v510_v1  ;;  %556 = vmatpush.msra.mxu3 %v510_v1  ;;  %v561_v31 = vld [vmem:[%s3959_s3] sm:$0x1]  ;;  %v2941_v1 = vld [vmem:[%s3961_s5 + $0xe8] sm:$0xff] }
  0x18   : > { %453 = vmatpush.msra.mxu0 %v440_v18  ;;  %481 = vmatpush.msra.mxu1 %v440_v18 }
  0x19   : > { %v401_v37 = vadd.f32 %v3215_v24, %v400_v32  ;;  %v421_v40 = vadd.f32 %v420_v36, %v414_v30  ;;  %v563_v36 = vld [vmem:[%s3960_s4] sm:$0x1] }
  0x1a   : > { %454 = vmatpush.msra.mxu0 %v439_v23  ;;  %482 = vmatpush.msra.mxu1 %v439_v23  ;;  %v3052_v3 = vpop.eup %3051 }
  0x1b   : > { %v402_v41 = vadd.f32 %v3223_v29, %v401_v37  ;;  %v422_v44 = vadd.f32 %v421_v40, %v415_v35  ;;  %v468_v4 = vmul.f32 128.0, %v3052_v3  ;;  %vm472_vm0 = vweird.f32 %v3052_v3 }
  0x1c   : > { %455 = vmatpush.msra.mxu0 %v438_v28  ;;  %483 = vmatpush.msra.mxu1 %v438_v28 }
  0x1d   : > { %v403_v45 = vadd.f32 %v3231_v34, %v402_v41  ;;  %v423_v47 = vadd.f32 %v422_v44, %v416_v39  ;;  %v469_v5 = vsub.f32 1.0, %v468_v4 }
  0x1e   : > { %456 = vmatpush.msra.mxu0 %v437_v33  ;;  %484 = vmatpush.msra.mxu1 %v437_v33 }
  0x1f   : > { %v404_v48 = vrot.slane %v403_v45, 4  ;;  %v424_v50 = vadd.f32 %v423_v47, %v417_v43  ;;  %v470_v6 = vmul.f32 %v3052_v3, %v469_v5  ;;  %v2905_v5 = vld [vmem:[%s3961_s5 + $0x28] sm:$0xff] }
  0x20   : > { %457 = vmatpush.msra.mxu0 %v436_v38  ;;  %485 = vmatpush.msra.mxu1 %v436_v38 }
  0x21   : > { %v405_v51 = vadd.f32 %v404_v48, %v403_v45  ;;  %v425_v53 = vrot.slane %v424_v50, 4  ;;  %v471_v10 = vadd.f32 %v3052_v3, %v470_v6 }
  0x22   : > { %458 = vmatpush.msra.mxu0 %v435_v42  ;;  %486 = vmatpush.msra.mxu1 %v435_v42 }
  0x23   : > { %v406_v54 = vrot.slane %v405_v51, 2  ;;  %v426_v56 = vadd.f32 %v425_v53, %v424_v50  ;;  %v473_v11 = vsel %vm472_vm0, %v3052_v3, %v471_v10  ;;  %v2957_v3 = vld [vmem:[%s3961_s5 + $0x168] sm:$0xff] }
  0x24   : > { %459 = vmatpush.msra.mxu0 %v434_v46  ;;  %487 = vmatpush.msra.mxu1 %v434_v46 }
  0x25   : > { %v407_v57 = vadd.f32 %v406_v54, %v405_v51  ;;  %v427_v58 = vrot.slane %v426_v56, 2 }
  0x26   : > { %460 = vmatpush.msra.mxu0 %v433_v49  ;;  %488 = vmatpush.msra.mxu1 %v433_v49 }
  0x27   : > { %v408_v59 = vrot.slane %v407_v57, 1  ;;  %v428_v60 = vadd.f32 %v427_v58, %v426_v56  ;;  %v2942_v58 = vld [vmem:[%s3961_s5 + $0xf0] sm:$0xff] }
  0x28   : > { %461 = vmatpush.msra.mxu0 %v432_v52  ;;  %489 = vmatpush.msra.mxu1 %v432_v52 }
  0x29   : > { %v409_v61 = vadd.f32 %v408_v59, %v407_v57  ;;  %v429_v62 = vrot.slane %v428_v60, 1  ;;  %v2907_v57 = vld [vmem:[%s3961_s5 + $0x38] sm:$0xff] }
  0x2a   : > { %462 = vmatpush.msra.mxu0 %v431_v55  ;;  %490 = vmatpush.msra.mxu1 %v431_v55 }
  0x2b   : > { %463 = vmatmul.f32.vlgmr.msra.gmra.mxu0 %v409_v61  ;;  %v430_v63 = vadd.f32 %v429_v62, %v428_v60  ;;  %v2950_v60 = vld [vmem:[%s3961_s5 + $0x130] sm:$0xff] }
  0x2c   : > { %v2958_v61 = vld [vmem:[%s3961_s5 + $0x170] sm:$0xff]  ;;  %1606 = vmatpush.bf16.msrb.mxu1 %v2907_v57 }
  0x2d   : > { %491 = vmatmul.f32.vlgmr.msra.gmra.mxu1 %v430_v63  ;;  %v2906_v63 = vld [vmem:[%s3961_s5 + $0x30] sm:$0xff] }
  0x2e   : > { %v2902_v57 = vld [vmem:[%s3961_s5 + $0x10] sm:$0xff] }
  0x30   : > { %1607 = vmatpush.bf16.msrb.mxu1 %v2906_v63 }
  0x34   : > { %1608 = vmatpush.bf16.msrb.mxu1 %v2905_v5 }
  0xa8   : > { %v464_v12 = vpop.f32.mrf.mxu0 }
  0xa9   : > { %v474_v13 = vmul.f32 %v473_v11, %v464_v12  ;;  %v2948_v12 = vld [vmem:[%s3961_s5 + $0x120] sm:$0xff] }
  0xaa   : > { %v492_v16 = vpop.f32.mrf.mxu1 }
  0xab   : > { %v496_v15 = vmul.f32 %v474_v13, %v474_v13  ;;  %2313 = vmatmul.msk.f32.vlgmr.msra.gmra.mxu2 %vm514_vm1, %v474_v13  ;;  %v495_v17 = vmul.f32 %v492_v16, %v473_v11  ;;  %v2940_v11 = vld [vmem:[%s3961_s5 + $0xe0] sm:$0xff] }
  0xac   : > { %v2956_v16 = vld [vmem:[%s3961_s5 + $0x160] sm:$0xff] }
  0xad   : > { %v497_v18 = vsub.f32 %v495_v17, %v496_v15 }
  0xaf   : > { %v498_v20 = vmax.f32 %v497_v18, 0.0 }
  0xb1   : > { %v499_v21 = vadd.f32 1e-05, %v498_v20 }
  0xb3   : > { %3053 = vrsqrt.f32 %v499_v21  ;;  %vm506_vm3 = vweird.f32 %v499_v21 }
  0xb9   : > { %v3054_v22 = vpop.eup %3053 }
  0xba   : > { %v501_v23 = vmul.f32 %v3054_v22, %v499_v21  ;;  %vm507_vm2 = vweird.f32 %v3054_v22 }
  0xbb   : > { %vm508_vm4 = vmor %vm506_vm3, %vm507_vm2 }
  0xbc   : > { %v502_v25 = vmul.f32 %v3054_v22, %v501_v23 }
  0xbe   : > { %v503_v26 = vmul.f32 0.5, %v502_v25 }
  0xc0   : > { %v504_v27 = vsub.f32 1.5, %v503_v26  ;;  %v2939_v26 = vld [vmem:[%s3961_s5 + $0xd8] sm:$0xff] }
  0xc2   : > { %v505_v28 = vmul.f32 %v3054_v22, %v504_v27  ;;  %v2947_v27 = vld [vmem:[%s3961_s5 + $0x118] sm:$0xff] }
  0xc4   : > { %v509_v30 = vsel %vm508_vm4, %v3054_v22, %v505_v28  ;;  %v2904_v22 = vld [vmem:[%s3961_s5 + $0x20] sm:$0xff] }
  0xc5   : > { %2314 = vmatmul.msk.f32.vlgmr.msra.gmra.mxu3 %vm514_vm1, %v509_v30  ;;  %1609 = vmatpush.bf16.msrb.mxu1 %v2904_v22 }
 0x12e   : > { %v535_v35 = vpop.f32.mrf.mxu2 }
 0x148   : > { %v558_v32 = vpop.f32.mrf.mxu3 }
 0x149   : > { %v562_v33 = vmul.f32 %v561_v31, %v558_v32 }
 0x14b   : > { %v564_v37 = vmul.f32 %v562_v33, %v535_v35  ;;  %v566_v38 = vperm.slane %v562_v33, 0  ;;  %v2955_v33 = vld [vmem:[%s3961_s5 + $0x158] sm:$0xff] }
 0x14d   : > { %v565_v39 = vsub.f32 %v563_v36, %v564_v37  ;;  %v567_v40 = vmul.f32 %v3181_v7, %v566_v38  ;;  %v568_v41 = vmul.f32 %v3183_v8, %v566_v38  ;;  %v569_v42 = vmul.f32 %v3185_v9, %v566_v38 }
 0x14e   : > { %v570_v43 = vmul.f32 %v3196_v14, %v566_v38  ;;  %v571_v45 = vmul.f32 %v3207_v19, %v566_v38  ;;  %v572_v46 = vmul.f32 %v3215_v24, %v566_v38  ;;  %v573_v47 = vmul.f32 %v3223_v29, %v566_v38  ;;  %v2943_v19 = vld [vmem:[%s3961_s5 + $0xf8] sm:$0xff] }
 0x14f   : > { %v576_v44 = vperm.slane %v565_v39, 0  ;;  %v574_v8 = vmul.f32 %v3231_v34, %v566_v38  ;;  %v2951_v24 = vld [vmem:[%s3961_s5 + $0x138] sm:$0xff]  ;;  %1311 = vmatpush.bf16.msrb.mxu2 %v2943_v19 }
 0x150   : > { %v2959_v29 = vld [vmem:[%s3961_s5 + $0x178] sm:$0xff]  ;;  %1340 = vmatpush.bf16.msrb.mxu3 %v2951_v24  ;;  %v2954_v24 = vld [vmem:[%s3961_s5 + $0x150] sm:$0xff] }
 0x151   : > { %v3281_v48 = vadd.f32 %v576_v44, %v567_v40  ;;  %v3283_v49 = vadd.f32 %v576_v44, %v568_v41  ;;  %v3285_v50 = vadd.f32 %v576_v44, %v569_v42  ;;  %v3287_v7 = vadd.f32 %v576_v44, %v570_v43  ;;  %1369 = vmatpush.bf16.msrb.mxu0 %v2959_v29  ;;  %v2903_v40 = vld [vmem:[%s3961_s5 + $0x18] sm:$0xff]  ;;  %v2938_v42 = vld [vmem:[%s3961_s5 + $0xd0] sm:$0xff] }
 0x152   : > { %v3290_v9 = vadd.f32 %v576_v44, %v571_v45  ;;  %v3292_v14 = vadd.f32 %v576_v44, %v572_v46  ;;  %v3303_v51 = vadd.f32 %v576_v44, %v573_v47  ;;  %v3308_v54 = vadd.f32 %v576_v44, %v574_v8  ;;  %v2946_v43 = vld [vmem:[%s3961_s5 + $0x110] sm:$0xff]  ;;  %1610 = vmatpush.bf16.msrb.mxu1 %v2903_v40  ;;  %v2923_v8 = vld [vmem:[%s3961_s5 + $0xb8] sm:$0xff] }
 0x153   : > { %v2315_v34 = vmul.f32 -1.442695, %v3281_v48  ;;  %v2316_v52 = vmul.f32 -1.442695, %v3283_v49  ;;  %v2317_v53 = vmul.f32 -1.442695, %v3285_v50  ;;  %1312 = vmatpush.bf16.msrb.mxu2 %v2942_v58 }
 0x154   : > { %v2318_v55 = vmul.f32 -1.442695, %v3287_v7  ;;  %v2319_v56 = vmul.f32 -1.442695, %v3290_v9  ;;  %v2320_v59 = vmul.f32 -1.442695, %v3292_v14  ;;  %1341 = vmatpush.bf16.msrb.mxu3 %v2950_v60 }
 0x155   : > { %3055 = vpow2.f32 %v2315_v34  ;;  %v2321_v62 = vmul.f32 -1.442695, %v3303_v51  ;;  %v2322_v0 = vmul.f32 -1.442695, %v3308_v54  ;;  %1370 = vmatpush.bf16.msrb.mxu0 %v2958_v61  ;;  %v2937_v61 = vld [vmem:[%s3961_s5 + $0xc8] sm:$0xff] }
 0x156   : > { %3057 = vpow2.f32 %v2316_v52  ;;  %1611 = vmatpush.bf16.msrb.mxu1 %v2902_v57 }
 0x157   : > { %3059 = vpow2.f32 %v2317_v53  ;;  %1313 = vmatpush.bf16.msrb.mxu2 %v2941_v1 }
 0x158   : > { %3061 = vpow2.f32 %v2318_v55  ;;  %1342 = vmatpush.bf16.msrb.mxu3 %v2949_v2 }
 0x159   : > { %3063 = vpow2.f32 %v2319_v56  ;;  %1371 = vmatpush.bf16.msrb.mxu0 %v2957_v3 }
 0x15a   : > { %3065 = vpow2.f32 %v2320_v59 }
 0x15b   : > { %v3056_v4 = vpop.eup %3055  ;;  %3067 = vpow2.f32 %v2321_v62  ;;  %1314 = vmatpush.bf16.msrb.mxu2 %v2940_v11  ;;  %v2945_v62 = vld [vmem:[%s3961_s5 + $0x108] sm:$0xff] }
 0x15c   : > { %v3058_v6 = vpop.eup %3057  ;;  %3069 = vpow2.f32 %v2322_v0  ;;  %v3342_v10 = vadd.f32 1.0, %v3056_v4  ;;  %1343 = vmatpush.bf16.msrb.mxu3 %v2948_v12  ;;  %v2953_v4 = vld [vmem:[%s3961_s5 + $0x148] sm:$0xff] }
 0x15d   : > { %v3060_v13 = vpop.eup %3059  ;;  %v3350_v15 = vadd.f32 1.0, %v3058_v6  ;;  %1372 = vmatpush.bf16.msrb.mxu0 %v2956_v16  ;;  %v3096_v16 = vmov 0  }
 0x15e   : > { %v3062_v17 = vpop.eup %3061  ;;  %v3355_v18 = vadd.f32 1.0, %v3060_v13  ;;  %3071 = vrcp.f32 %v3342_v10  ;;  %v627_v31 = vand.u32 2147483647, %v3342_v10  ;;  %v629_v32 = vand.u32 2147483648, %v3342_v10  ;;  %v2901_v13 = vld [vmem:[%s3961_s5 + $0x8] sm:$0xff]  ;;  %888 = vst [vmem:[#allocation2] sm:$0xff] %v3096_v16 }
 0x15f   : > { %v3064_v20 = vpop.eup %3063  ;;  %v3358_v21 = vadd.f32 1.0, %v3062_v17  ;;  %3073 = vrcp.f32 %v3350_v15  ;;  %v642_v37 = vand.u32 2147483647, %v3350_v15  ;;  %v644_v38 = vand.u32 2147483648, %v3350_v15  ;;  %1315 = vmatpush.bf16.msrb.mxu2 %v2939_v26  ;;  %889 = vst [vmem:[#allocation2 + $0x8] sm:$0xf] %v3096_v16  ;;  %1612 = vmatpush.bf16.msrb.mxu1 %v2901_v13 }
 0x160   : > { %v3066_v23 = vpop.eup %3065  ;;  %v3364_v25 = vadd.f32 1.0, %v3064_v20  ;;  %3075 = vrcp.f32 %v3355_v18  ;;  %vm623_vm5 = vweird.f32 %v3342_v10  ;;  %vm638_vm6 = vweird.f32 %v3350_v15  ;;  %1344 = vmatpush.bf16.msrb.mxu3 %v2947_v27  ;;  %891 = vst [vmem:[#allocation2 + $0x6c] sm:$0xff] %v3096_v16 }
 0x161   : > { %v3068_v28 = vpop.eup %3067  ;;  %v3372_v30 = vadd.f32 1.0, %v3066_v23  ;;  %3077 = vrcp.f32 %v3358_v21  ;;  %v657_v44 = vand.u32 2147483647, %v3355_v18  ;;  %v659_v45 = vand.u32 2147483648, %v3355_v18  ;;  %1373 = vmatpush.bf16.msrb.mxu0 %v2955_v33  ;;  %v2936_v33 = vld [vmem:[%s3961_s5 + $0xc0] sm:$0xff] }
 0x162   : > { %v3070_v35 = vpop.eup %3069  ;;  %v3380_v36 = vadd.f32 1.0, %v3068_v28  ;;  %3079 = vrcp.f32 %v3364_v25  ;;  %vm3408_vm7 = vcmp.eq.f32.partialorder %v627_v31, 8.507059e+37  ;;  %v3412_v19 = vor.u32 1.1754944e-38, %v629_v32  ;;  %892 = vst [vmem:[#allocation2 + $0x74] sm:$0xf] %v3096_v16 }
 0x163   : > { %v3385_v39 = vadd.f32 1.0, %v3070_v35  ;;  %3081 = vrcp.f32 %v3372_v30  ;;  %v672_v29 = vand.u32 2147483647, %v3358_v21  ;;  %vm3421_vm9 = vcmp.eq.f32.partialorder %v642_v37, 8.507059e+37  ;;  %1316 = vmatpush.bf16.msrb.mxu2 %v2938_v42  ;;  %v2944_v35 = vld [vmem:[%s3961_s5 + $0x100] sm:$0xff] }
 0x164   : > { %v3392_v41 = vpop.eup %3071  ;;  %v3425_v53 = vor.u32 1.1754944e-38, %v644_v38  ;;  %3083 = vrcp.f32 %v3380_v36  ;;  %vm653_vm10 = vweird.f32 %v3355_v18  ;;  %vm668_vm12 = vweird.f32 %v3358_v21  ;;  %1345 = vmatpush.bf16.msrb.mxu3 %v2946_v43  ;;  %v2952_v42 = vld [vmem:[%s3961_s5 + $0x140] sm:$0xff] }
 0x165   : > { %v3404_v46 = vpop.eup %3073  ;;  %v619_v47 = vmul.f32 %v3392_v41, %v3342_v10  ;;  %vm624_vm8 = vweird.f32 %v3392_v41  ;;  %3085 = vrcp.f32 %v3385_v39  ;;  %v674_v58 = vand.u32 2147483648, %v3358_v21  ;;  %1374 = vmatpush.bf16.msrb.mxu0 %v2954_v24 }
 0x166   : > { %v634_v34 = vmul.f32 %v3404_v46, %v3350_v15  ;;  %v3429_v55 = vpop.eup %3075  ;;  %vm639_vm11 = vweird.f32 %v3404_v46  ;;  %vm3449_vm14 = vcmp.eq.f32.partialorder %v657_v44, 8.507059e+37  ;;  %v3453_v1 = vor.u32 1.1754944e-38, %v659_v45  ;;  %vm3485_vm2 = vmor %vm623_vm5, %vm624_vm8 }
 0x167   : > { %v620_v56 = vsub.f32 1.0, %v619_v47  ;;  %v3438_v59 = vpop.eup %3077  ;;  %v649_v63 = vmul.f32 %v3429_v55, %v3355_v18  ;;  %vm654_vm13 = vweird.f32 %v3429_v55  ;;  %vm3463_vm15 = vcmp.eq.f32.partialorder %v672_v29, 8.507059e+37  ;;  %1317 = vmatpush.bf16.msrb.mxu2 %v2937_v61  ;;  %vm640_vm4 = vmor %vm638_vm6, %vm639_vm11  ;;  %v2900_v47 = vld [vmem:[%s3961_s5] sm:$0xff] }
 0x168   : > { %v635_v60 = vsub.f32 1.0, %v634_v34  ;;  %v3455_v2 = vpop.eup %3079  ;;  %v664_v5 = vmul.f32 %v3438_v59, %v3358_v21  ;;  %vm683_vm0 = vweird.f32 %v3364_v25  ;;  %vm669_vm1 = vweird.f32 %v3438_v59  ;;  %1346 = vmatpush.bf16.msrb.mxu3 %v2945_v62  ;;  %vm655_vm11 = vmor %vm653_vm10, %vm654_vm13  ;;  %v2922_v62 = vld [vmem:[%s3961_s5 + $0xb0] sm:$0xff]  ;;  %1613 = vmatpush.bf16.msrb.mxu1 %v2900_v47 }
 0x169   : > { %v621_v3 = vmul.f32 %v3392_v41, %v620_v56  ;;  %v3468_v11 = vpop.eup %3081  ;;  %v650_v17 = vsub.f32 1.0, %v649_v63  ;;  %v679_v20 = vmul.f32 %v3455_v2, %v3364_v25  ;;  %v675_v26 = vor.u32 1.1754944e-38, %v674_v58  ;;  %1375 = vmatpush.bf16.msrb.mxu0 %v2953_v4 }
 0x16a   : > { %v636_v12 = vmul.f32 %v3404_v46, %v635_v60  ;;  %v665_v23 = vsub.f32 1.0, %v664_v5  ;;  %v687_v27 = vand.u32 2147483647, %v3364_v25  ;;  %v3479_v28 = vpop.eup %3083  ;;  %vm684_vm3 = vweird.f32 %v3455_v2  ;;  %v2914_v60 = vld [vmem:[%s3961_s5 + $0x70] sm:$0xff] }
 0x16b   : > { %v622_v22 = vadd.f32 %v3392_v41, %v621_v3  ;;  %v651_v37 = vmul.f32 %v3429_v55, %v650_v17  ;;  %v680_v10 = vsub.f32 1.0, %v679_v20  ;;  %v3498_v38 = vpop.eup %3085  ;;  %v689_v44 = vand.u32 2147483648, %v3364_v25  ;;  %1318 = vmatpush.bf16.msrb.mxu2 %v2936_v33  ;;  %vm685_vm10 = vmor %vm683_vm0, %vm684_vm3 }
 0x16c   : > { %v637_v32 = vadd.f32 %v3404_v46, %v636_v12  ;;  %v666_v43 = vmul.f32 %v3438_v59, %v665_v23  ;;  %v694_v45 = vmul.f32 %v3468_v11, %v3372_v30  ;;  %vm842_vm5 = vcmask 1040384   ;;  %1347 = vmatpush.bf16.msrb.mxu3 %v2944_v35 }
 0x16d   : > { %v626_v40 = vsel %vm3485_vm2, %v3392_v41, %v622_v22  ;;  %vm843_vm6 = vsmask.f32 256  ;;  %v652_v24 = vadd.f32 %v3429_v55, %v651_v37  ;;  %v681_v29 = vmul.f32 %v3455_v2, %v680_v10  ;;  %vm670_vm2 = vmor %vm668_vm12, %vm669_vm1  ;;  %1376 = vmatpush.bf16.msrb.mxu0 %v2952_v42 }
 0x16e   : > { %v631_v41 = vsel %vm3408_vm7, %v3412_v19, %v626_v40  ;;  %v641_v15 = vsel %vm640_vm4, %v3404_v46, %v637_v32  ;;  %vm877_vm7 = vcmask 1043456   ;;  %vm878_vm8 = vsmask.f32 3328  ;;  %v2915_v46 = vld [vmem:[%s3961_s5 + $0x78] sm:$0xff] }
 0x16f   : > { %v646_v34 = vsel %vm3421_vm9, %v3425_v53, %v641_v15  ;;  %v738_v56 = vmul.f32 %v631_v41, %v3281_v48  ;;  %v667_v19 = vadd.f32 %v3438_v59, %v666_v43  ;;  %vm3538_vm9 = vcmp.eq.f32.partialorder %v687_v27, 8.507059e+37  ;;  %1635 = vmatpush.bf16.msra.mxu2 %v2915_v46  ;;  %vm3615_vm0 = vmand %vm877_vm7, %vm878_vm8 }
 0x170   : > { %v739_v52 = vmul.f32 %v646_v34, %v3283_v49  ;;  %v656_v53 = vsel %vm655_vm11, %v3429_v55, %v652_v24  ;;  %v682_v18 = vadd.f32 %v3455_v2, %v681_v29  ;;  %v695_v57 = vsub.f32 1.0, %v694_v45  ;;  %1664 = vmatpush.bf16.msra.mxu3 %v2923_v8 }
 0x171   : > { %v746_v58 = vpack.c.bf16 %v738_v56, %v738_v56  ;;  %v661_v49 = vsel %vm3449_vm14, %v3453_v1, %v656_v53  ;;  %v671_v55 = vsel %vm670_vm2, %v3438_v59, %v667_v19  ;;  %v690_v21 = vor.u32 1.1754944e-38, %v689_v44  ;;  %v2980_v44 = vld [vmem:[%s3961_s5 + $0x1c0] sm:$0xff] }
 0x172   : > { %v747_v61 = vpack.c.bf16 %v739_v52, %v739_v52  ;;  %v676_v63 = vsel %vm3463_vm15, %v675_v26, %v671_v55  ;;  %v740_v0 = vmul.f32 %v661_v49, %v3285_v50  ;;  %v686_v1 = vsel %vm685_vm10, %v3455_v2, %v682_v18  ;;  %vm3605_vm15 = vmand %vm842_vm5, %vm843_vm6 }
 0x173   : > { %v3567_v59 = vunpack.c.l.b16 %v746_v58  ;;  %v741_v25 = vmul.f32 %v676_v63, %v3287_v7  ;;  %v691_v3 = vsel %vm3538_vm9, %v690_v21, %v686_v1  ;;  %v696_v4 = vmul.f32 %v3468_v11, %v695_v57  ;;  %1636 = vmatpush.bf16.msra.mxu2 %v2914_v60  ;;  %v2913_v63 = vld [vmem:[%s3961_s5 + $0x68] sm:$0xff] }
 0x174   : > { %v3573_v5 = vunpack.c.l.b16 %v747_v61  ;;  %v748_v12 = vpack.c.bf16 %v740_v0, %v740_v0  ;;  %vm698_vm12 = vweird.f32 %v3372_v30  ;;  %vm699_vm13 = vweird.f32 %v3468_v11  ;;  %1665 = vmatpush.bf16.msra.mxu3 %v2922_v62  ;;  %v2921_v0 = vld [vmem:[%s3961_s5 + $0xa8] sm:$0xff] }
 0x175   : > { %v770_v50 = vpack.c.b16 %v3567_v59, %v3567_v59  ;;  %v749_v2 = vpack.c.bf16 %v741_v25, %v741_v25  ;;  %v3580_v6 = vadd.f32 %v3468_v11, %v696_v4  ;;  %v704_v7 = vand.u32 2147483648, %v3372_v30  ;;  %vm3587_vm14 = vmor %vm698_vm12, %vm699_vm13 }
 0x176   : > { %v771_v13 = vpack.c.b16 %v3573_v5, %v3573_v5  ;;  %v3585_v16 = vunpack.c.l.b16 %v748_v12  ;;  %v702_v20 = vand.u32 2147483647, %v3372_v30  ;;  %v3593_v22 = vmul.f32 %v691_v3, %v3290_v9 }
 0x177   : > { %v779_v23 = vshrl.u32 %v770_v50, 16  ;;  %v782_v26 = vshll.u32 %v770_v50, 16  ;;  %v3595_v27 = vunpack.c.l.b16 %v749_v2  ;;  %v701_v31 = vsel %vm3587_vm14, %v3468_v11, %v3580_v6  ;;  %1637 = vmatpush.bf16.msra.mxu2 %v2913_v63 }
 0x178   : > { %v786_v32 = vshrl.u32 %v771_v13, 16  ;;  %v789_v33 = vshll.u32 %v771_v13, 16  ;;  %v772_v35 = vpack.c.b16 %v3585_v16, %v3585_v16  ;;  %v705_v37 = vor.u32 1.1754944e-38, %v704_v7  ;;  %1666 = vmatpush.bf16.msra.mxu3 %v2921_v0  ;;  %v2912_v7 = vld [vmem:[%s3961_s5 + $0x60] sm:$0xff]  ;;  %v2909_v0 = vld [vmem:[%s3961_s5 + $0x48] sm:$0xff] }
 0x179   : > { %v781_v10 = vrot.slane %v779_v23, 7  ;;  %v853_v30 = vrot.slane %v782_v26, 1  ;;  %v773_v40 = vpack.c.b16 %v3595_v27, %v3595_v27  ;;  %v750_v11 = vpack.c.bf16 %v3593_v22, %v3593_v22 }
 0x17a   : > { %v788_v42 = vrot.slane %v786_v32, 7  ;;  %v855_v43 = vrot.slane %v789_v33, 1  ;;  %v793_v45 = vshrl.u32 %v772_v35, 16  ;;  %v796_v41 = vshll.u32 %v772_v35, 16 }
 0x17b   : > { %vm3619_vm1 = vcmp.eq.f32.partialorder %v702_v20, 8.507059e+37  ;;  %v784_v47 = vor.u32 %v782_v26, %v781_v10  ;;  %v854_v24 = vor.u32 %v853_v30, %v779_v23  ;;  %v800_v29 = vshrl.u32 %v773_v40, 16  ;;  %1638 = vmatpush.bf16.msra.mxu2 %v2912_v7  ;;  %v2911_v7 = vld [vmem:[%s3961_s5 + $0x58] sm:$0xff] }
 0x17c   : > { %v803_v34 = vshll.u32 %v773_v40, 16  ;;  %v791_v56 = vor.u32 %v789_v33, %v788_v42  ;;  %v856_v46 = vor.u32 %v855_v43, %v786_v32  ;;  %v795_v8 = vrot.slane %v793_v45, 7  ;;  %v2517_v43 = vld [vmem:[#allocation2] sm:$0xf] }
 0x17d   : > { %v857_v19 = vrot.slane %v796_v41, 1  ;;  %v845_v48 = vsel %vm3605_vm15, 0, %v784_v47  ;;  %v880_v52 = vsel %vm3615_vm0, %v854_v24, 0  ;;  %v802_v53 = vrot.slane %v800_v29, 7 }
 0x17e   : > { %v859_v18 = vrot.slane %v803_v34, 1  ;;  %v846_v57 = vsel %vm3605_vm15, 0, %v791_v56  ;;  %v909_v58 = vunpack.c.l.b16 %v845_v48  ;;  %v881_v60 = vsel %vm3615_vm0, %v856_v46, 0 }
 0x17f   : > { %v910_v49 = vunpack.c.l.b16 %v880_v52  ;;  %v911_v55 = vunpack.c.l.b16 %v846_v57  ;;  %v912_v21 = vunpack.c.l.b16 %v881_v60  ;;  %v798_v61 = vor.u32 %v796_v41, %v795_v8  ;;  %1639 = vmatpush.bf16.msra.mxu2 %v2911_v7 }
 0x180   : > { %v805_v62 = vor.u32 %v803_v34, %v802_v53  ;;  %v925_v1 = vpack.c.b16 %v3567_v59, %v909_v58  ;;  %v858_v3 = vor.u32 %v857_v19, %v793_v45  ;;  %v860_v4 = vor.u32 %v859_v18, %v800_v29  ;;  %v2920_v59 = vld [vmem:[%s3961_s5 + $0xa0] sm:$0xff] }
 0x181   : > { %v926_v25 = vpack.c.b16 %v910_v49, %v910_v49  ;;  %v927_v12 = vpack.c.b16 %v3573_v5, %v911_v55  ;;  %v928_v50 = vpack.c.b16 %v912_v21, %v912_v21  ;;  %v847_v2 = vsel %vm3605_vm15, 0, %v798_v61  ;;  %1667 = vmatpush.bf16.msra.mxu3 %v2920_v59  ;;  %v2987_v59 = vld [vmem:[%s3961_s5 + $0x1f8] sm:$0xff] }
 0x182   : > { %v848_v6 = vsel %vm3605_vm15, 0, %v805_v62  ;;  %958 = vst [vmem:[#allocation2 + $0xc] sm:$0xff] %v925_v1  ;;  %v913_v13 = vunpack.c.l.b16 %v847_v2  ;;  %v882_v17 = vsel %vm3615_vm0, %v858_v3, 0  ;;  %v883_v20 = vsel %vm3615_vm0, %v860_v4, 0  ;;  %1996 = vmatpush.bf16.msra.mxu1 %v2987_v59 }
 0x183   : > { %v915_v5 = vunpack.c.l.b16 %v848_v6  ;;  %960 = vst [vmem:[#allocation2 + $0x18] sm:$0xff] %v927_v12  ;;  %v914_v22 = vunpack.c.l.b16 %v882_v17  ;;  %v916_v23 = vunpack.c.l.b16 %v883_v20  ;;  %v706_v26 = vsel %vm3619_vm1, %v705_v37, %v701_v31 }
 0x184   : > { %v3655_v32 = vunpack.c.l.b16 %v750_v11  ;;  %959 = vst [vmem:[#allocation2 + $0x14] sm:$0xf] %v926_v25  ;;  %v929_v33 = vpack.c.b16 %v3585_v16, %v913_v13  ;;  %v743_v10 = vmul.f32 %v706_v26, %v3292_v14  ;;  %v709_v30 = vmul.f32 %v3479_v28, %v3380_v36  ;;  %v2910_v26 = vld [vmem:[%s3961_s5 + $0x50] sm:$0xff] }
 0x185   : > { %v931_v35 = vpack.c.b16 %v3595_v27, %v915_v5  ;;  %961 = vst [vmem:[#allocation2 + $0x20] sm:$0xf] %v928_v50  ;;  %v930_v40 = vpack.c.b16 %v914_v22, %v914_v22  ;;  %v932_v31 = vpack.c.b16 %v916_v23, %v916_v23  ;;  %vm714_vm3 = vweird.f32 %v3479_v28  ;;  %v2978_v22 = vld [vmem:[%s3961_s5 + $0x1b0] sm:$0xff]  ;;  %v2919_v23 = vld [vmem:[%s3961_s5 + $0x98] sm:$0xff]  ;;  %1640 = vmatpush.bf16.msra.mxu2 %v2910_v26 }
 0x186   : > { %v774_v42 = vpack.c.b16 %v3655_v32, %v3655_v32  ;;  %962 = vst [vmem:[#allocation2 + $0x24] sm:$0xff] %v929_v33  ;;  %v751_v37 = vpack.c.bf16 %v743_v10, %v743_v10  ;;  %v710_v11 = vsub.f32 1.0, %v709_v30  ;;  %vm713_vm4 = vweird.f32 %v3380_v36  ;;  %v2986_v10 = vld [vmem:[%s3961_s5 + $0x1f0] sm:$0xff]  ;;  %1668 = vmatpush.bf16.msra.mxu3 %v2919_v23 }
 0x187   : > { %964 = vst [vmem:[#allocation2 + $0x30] sm:$0xff] %v931_v35  ;;  %v724_v60 = vmul.f32 %v3498_v38, %v3385_v39  ;;  %v719_v61 = vand.u32 2147483648, %v3380_v36  ;;  %vm3677_vm5 = vmor %vm713_vm4, %vm714_vm3  ;;  %v717_v1 = vand.u32 2147483647, %v3380_v36  ;;  %v2979_v36 = vld [vmem:[%s3961_s5 + $0x1b8] sm:$0xff]  ;;  %vm729_vm6 = vweird.f32 %v3498_v38  ;;  %1997 = vmatpush.bf16.msra.mxu1 %v2986_v10 }
 0x188   : > { %v807_v16 = vshrl.u32 %v774_v42, 16  ;;  %v810_v27 = vshll.u32 %v774_v42, 16  ;;  %963 = vst [vmem:[#allocation2 + $0x2c] sm:$0xf] %v930_v40  ;;  %v3664_v14 = vunpack.c.l.b16 %v751_v37  ;;  %v711_v45 = vmul.f32 %v3479_v28, %v710_v11  ;;  %1967 = vmatpush.bf16.msra.mxu0 %v2979_v36  ;;  %v2918_v40 = vld [vmem:[%s3961_s5 + $0x90] sm:$0xff] }
 0x189   : > { %v2373_v41 = vld [vmem:[#allocation2 + $0xc] sm:$0xf]  ;;  %v2924_v15 = vld [vmem:[#allocation2 + $0x10] sm:$0xf]  ;;  %965 = vst [vmem:[#allocation2 + $0x38] sm:$0xf] %v932_v31  ;;  %vm728_vm8 = vweird.f32 %v3385_v39  ;;  %1641 = vmatpush.bf16.msra.mxu2 %v2909_v0 }
 0x18a   : > { %v2889_v47 = vld [vmem:[#allocation2 + $0x8] sm:$0xf0]  ;;  %v2925_v24 = vld [vmem:[#allocation2 + $0x14] sm:$0xf0]  ;;  %v2375_v29 = vld [vmem:[#allocation2 + $0x18] sm:$0xf0]  ;;  %v775_v56 = vpack.c.b16 %v3664_v14, %v3664_v14  ;;  %v712_v46 = vadd.f32 %v3479_v28, %v711_v45  ;;  %1669 = vmatpush.bf16.msra.mxu3 %v2918_v40 }
 0x18b   : > { %v2518_v34 = vor.u32 %v2889_v47, %v2517_v43  ;;  %v2374_v8 = vor.u32 %v2925_v24, %v2373_v41  ;;  %v2378_v19 = vor.u32 %v2924_v15, %v2375_v29  ;;  %v2381_v48 = vld [vmem:[#allocation2 + $0x14] sm:$0xf]  ;;  %v809_v52 = vrot.slane %v807_v16, 7  ;;  %v2529_v43 = vld [vmem:[#allocation2 + $0x18] sm:$0xf]  ;;  %v2977_v47 = vld [vmem:[%s3961_s5 + $0x1a8] sm:$0xff] }
 0x18c   : > { %v861_v53 = vrot.slane %v810_v27, 1  ;;  %v2926_v18 = vld [vmem:[#allocation2 + $0x1c] sm:$0xf0]  ;;  %v814_v57 = vshrl.u32 %v775_v56, 16  ;;  %v817_v58 = vshll.u32 %v775_v56, 16  ;;  %v716_v4 = vsel %vm3677_vm5, %v3479_v28, %v712_v46  ;;  %1968 = vmatpush.bf16.msra.mxu0 %v2978_v22  ;;  %vm730_vm11 = vmor %vm728_vm8, %vm729_vm6 }
 0x18d   : > { %1614 = vmatmul.bf16.vlgmr.msrb.gmra.mxu1 %v2518_v34  ;;  %1319 = vmatmul.bf16.vlgmr.msrb.gmra.mxu2 %v2374_v8  ;;  %v2382_v49 = vor.u32 %v2926_v18, %v2381_v48  ;;  %v812_v55 = vor.u32 %v810_v27, %v809_v52  ;;  %v720_v13 = vor.u32 1.1754944e-38, %v719_v61  ;;  %v725_v5 = vsub.f32 1.0, %v724_v60  ;;  %v2385_v45 = vld [vmem:[#allocation2 + $0x24] sm:$0xf]  ;;  %v2927_v41 = vld [vmem:[#allocation2 + $0x28] sm:$0xf] }
 0x18e   : > { %1348 = vmatmul.bf16.vlgmr.msrb.gmra.mxu3 %v2378_v19  ;;  %v862_v21 = vor.u32 %v861_v53, %v807_v16  ;;  %v816_v62 = vrot.slane %v814_v57, 7  ;;  %v863_v63 = vrot.slane %v817_v58, 1  ;;  %vm718_vm7 = vcmp.eq.f32.partialorder %v717_v1, 8.507059e+37  ;;  %v2892_v15 = vld [vmem:[#allocation2 + $0x20] sm:$0xf0] }
 0x18f   : > { %1377 = vmatmul.bf16.vlgmr.msrb.gmra.mxu0 %v2382_v49  ;;  %v849_v25 = vsel %vm3605_vm15, 0, %v812_v55  ;;  %v721_v30 = vsel %vm718_vm7, %v720_v13, %v716_v4  ;;  %v726_v42 = vmul.f32 %v3498_v38, %v725_v5  ;;  %v732_v31 = vand.u32 2147483647, %v3385_v39  ;;  %v2387_v56 = vld [vmem:[#allocation2 + $0x30] sm:$0xf0]  ;;  %v2976_v53 = vld [vmem:[%s3961_s5 + $0x1a0] sm:$0xff] }
 0x190   : > { %v884_v3 = vsel %vm3615_vm0, %v862_v21, 0  ;;  %v819_v12 = vor.u32 %v817_v58, %v816_v62  ;;  %v917_v50 = vunpack.c.l.b16 %v849_v25  ;;  %v864_v2 = vor.u32 %v863_v63, %v814_v57  ;;  %v2393_v19 = vld [vmem:[#allocation2 + $0x2c] sm:$0xf]  ;;  %v2929_v48 = vld [vmem:[#allocation2 + $0x34] sm:$0xf0]  ;;  %1969 = vmatpush.bf16.msra.mxu0 %v2977_v47  ;;  %v2974_v13 = vld [vmem:[%s3961_s5 + $0x190] sm:$0xff] }
 0x191   : > { %v918_v6 = vunpack.c.l.b16 %v884_v3  ;;  %v734_v37 = vand.u32 2147483648, %v3385_v39  ;;  %v744_v11 = vmul.f32 %v721_v30, %v3303_v51  ;;  %v727_v24 = vadd.f32 %v3498_v38, %v726_v42  ;;  %v2928_v51 = vld [vmem:[#allocation2 + $0x2c] sm:$0xf0]  ;;  %v2975_v4 = vld [vmem:[%s3961_s5 + $0x198] sm:$0xff]  ;;  %v2973_v42 = vld [vmem:[%s3961_s5 + $0x188] sm:$0xff] }
 0x192   : > { %v850_v28 = vsel %vm3605_vm15, 0, %v819_v12  ;;  %v933_v17 = vpack.c.b16 %v3655_v32, %v917_v50  ;;  %v885_v20 = vsel %vm3615_vm0, %v864_v2, 0  ;;  %vm733_vm9 = vcmp.eq.f32.partialorder %v732_v31, 8.507059e+37  ;;  %v2983_v12 = vld [vmem:[%s3961_s5 + $0x1d8] sm:$0xff]  ;;  %v2917_v50 = vld [vmem:[%s3961_s5 + $0x88] sm:$0xff]  ;;  %v2908_v2 = vld [vmem:[%s3961_s5 + $0x40] sm:$0xff] }
 0x193   : > { %v919_v33 = vunpack.c.l.b16 %v850_v28  ;;  %v920_v32 = vunpack.c.l.b16 %v885_v20  ;;  %v934_v35 = vpack.c.b16 %v918_v6, %v918_v6  ;;  %v752_v29 = vpack.c.bf16 %v744_v11, %v744_v11  ;;  %1670 = vmatpush.bf16.msra.mxu3 %v2917_v50  ;;  %v2916_v20 = vld [vmem:[%s3961_s5 + $0x80] sm:$0xff]  ;;  %v2541_v26 = vld [vmem:[#allocation2 + $0x30] sm:$0xf]  ;;  %1642 = vmatpush.bf16.msra.mxu2 %v2908_v2  ;;  %v2981_v11 = vld [vmem:[%s3961_s5 + $0x1c8] sm:$0xff] }
 0x194   : > { %966 = vst [vmem:[#allocation2 + $0x3c] sm:$0xff] %v933_v17  ;;  %v735_v34 = vor.u32 1.1754944e-38, %v734_v37  ;;  %v731_v46 = vsel %vm730_vm11, %v3498_v38, %v727_v24  ;;  %v2530_v52 = vor.u32 %v2892_v15, %v2529_v43  ;;  %v2386_v58 = vor.u32 %v2928_v51, %v2385_v45  ;;  %v2984_v38 = vld [vmem:[%s3961_s5 + $0x1e0] sm:$0xff]  ;;  %1970 = vmatpush.bf16.msra.mxu0 %v2976_v53  ;;  %v2982_v17 = vld [vmem:[%s3961_s5 + $0x1d0] sm:$0xff]  ;;  %v2709_v2 = vld [vmem:[#allocation2 + $0x18] sm:$0xf] }
 0x195   : > { %v935_v16 = vpack.c.b16 %v3664_v14, %v919_v33  ;;  %v936_v27 = vpack.c.b16 %v920_v32, %v920_v32  ;;  %967 = vst [vmem:[#allocation2 + $0x44] sm:$0xf] %v934_v35  ;;  %v2985_v14 = vld [vmem:[%s3961_s5 + $0x1e8] sm:$0xff]  ;;  %v768_v8 = vunpack.c.l.b16 %v752_v29  ;;  %v2390_v60 = vor.u32 %v2927_v41, %v2387_v56  ;;  %v2972_v29 = vld [vmem:[%s3961_s5 + $0x180] sm:$0xff]  ;;  %v2890_v50 = vld [vmem:[#allocation2 + $0x10] sm:$0xf0] }
 0x196   : > { %v736_v39 = vsel %vm733_vm9, %v735_v34, %v731_v46  ;;  %1998 = vmatpush.bf16.msra.mxu1 %v2985_v14  ;;  %v2394_v61 = vor.u32 %v2929_v48, %v2393_v19  ;;  %v2995_v46 = vld [vmem:[%s3961_s5 + $0x238] sm:$0xff]  ;;  %v3002_v19 = vld [vmem:[%s3964_s8 + $0x30] sm:$0xff]  ;;  %v3000_v0 = vld [vmem:[%s3964_s8 + $0x20] sm:$0xff] }
 0x197   : > { %968 = vst [vmem:[#allocation2 + $0x48] sm:$0xff] %v935_v16  ;;  %v745_v18 = vmul.f32 %v736_v39, %v3308_v54  ;;  %v776_v57 = vpack.c.b16 %v768_v8, %v768_v8  ;;  %1671 = vmatpush.bf16.msra.mxu3 %v2916_v20  ;;  %3023 = vmatpush.bf16.msrb.mxu2 %v2995_v46  ;;  %v2994_v39 = vld [vmem:[%s3961_s5 + $0x230] sm:$0xff] }
 0x198   : > { %969 = vst [vmem:[#allocation2 + $0x50] sm:$0xf] %v936_v27  ;;  %1971 = vmatpush.bf16.msra.mxu0 %v2975_v4  ;;  %v2519_v4 = vld [vmem:[#allocation2 + $0xc] sm:$0xf0] }
 0x199   : > { %v753_v49 = vpack.c.bf16 %v745_v18, %v745_v18  ;;  %v821_v55 = vshrl.u32 %v776_v57, 16  ;;  %v824_v21 = vshll.u32 %v776_v57, 16  ;;  %v2998_v20 = vld [vmem:[%s3964_s8 + $0x10] sm:$0xff] }
 0x19a   : > { %1999 = vmatpush.bf16.msra.mxu1 %v2984_v38 }
 0x19b   : > { %v3742_v62 = vunpack.c.l.b16 %v753_v49  ;;  %v823_v63 = vrot.slane %v821_v55, 7  ;;  %v865_v54 = vrot.slane %v824_v21, 1  ;;  %v2397_v35 = vld [vmem:[#allocation2 + $0x3c] sm:$0xf]  ;;  %v2930_v10 = vld [vmem:[#allocation2 + $0x40] sm:$0xf]  ;;  %3024 = vmatpush.bf16.msrb.mxu2 %v2994_v39 }
 0x19c   : > { %1972 = vmatpush.bf16.msra.mxu0 %v2974_v13  ;;  %v2895_v37 = vld [vmem:[#allocation2 + $0x38] sm:$0xf0]  ;;  %v2405_v15 = vld [vmem:[#allocation2 + $0x44] sm:$0xf] }
 0x19d   : > { %1619 = vmatmul.bf16.gmra.mxu1 %v2530_v52  ;;  %1324 = vmatmul.bf16.gmra.mxu2 %v2386_v58  ;;  %v777_v1 = vpack.c.b16 %v3742_v62, %v3742_v62  ;;  %v826_v25 = vor.u32 %v824_v21, %v823_v63  ;;  %v866_v3 = vor.u32 %v865_v54, %v821_v55  ;;  %v3001_v63 = vld [vmem:[%s3964_s8 + $0x28] sm:$0xff]  ;;  %v2992_v54 = vld [vmem:[%s3961_s5 + $0x220] sm:$0xff] }
 0x19e   : > { %1353 = vmatmul.bf16.gmra.mxu3 %v2390_v60  ;;  %2000 = vmatpush.bf16.msra.mxu1 %v2983_v12  ;;  %v2931_v31 = vld [vmem:[#allocation2 + $0x44] sm:$0xf0]  ;;  %v2399_v43 = vld [vmem:[#allocation2 + $0x48] sm:$0xf0]  ;;  %v2542_v24 = vor.u32 %v2895_v37, %v2541_v26  ;;  %v2723_v26 = vld [vmem:[#allocation2 + $0x3c] sm:$0xf0] }
 0x19f   : > { %1382 = vmatmul.bf16.gmra.mxu0 %v2394_v61  ;;  %v828_v6 = vshrl.u32 %v777_v1, 16  ;;  %v831_v7 = vshll.u32 %v777_v1, 16  ;;  %v851_v36 = vsel %vm3605_vm15, 0, %v826_v25  ;;  %v886_v59 = vsel %vm3615_vm0, %v866_v3, 0  ;;  %v2932_v47 = vld [vmem:[#allocation2 + $0x4c] sm:$0xf0] }
 0x1a0   : > { %v921_v5 = vunpack.c.l.b16 %v851_v36  ;;  %v922_v28 = vunpack.c.l.b16 %v886_v59  ;;  %1973 = vmatpush.bf16.msra.mxu0 %v2973_v42  ;;  %v2398_v51 = vor.u32 %v2931_v31, %v2397_v35  ;;  %v2402_v14 = vor.u32 %v2930_v10, %v2399_v43  ;;  %v2553_v52 = vld [vmem:[#allocation2 + $0x48] sm:$0xf]  ;;  %v2888_v1 = vld [vmem:[#allocation2 + $0x4] sm:$0xf]  ;;  %v2960_v25 = vld [vmem:[#allocation2 + $0x1c] sm:$0xf] }
 0x1a1   : > { %v830_v22 = vrot.slane %v828_v6, 7  ;;  %v867_v23 = vrot.slane %v831_v7, 1  ;;  %v2406_v56 = vor.u32 %v2932_v47, %v2405_v15  ;;  %v2711_v3 = vld [vmem:[#allocation2 + $0x24] sm:$0xf0]  ;;  %v2522_v36 = vor.u32 %v2888_v1, %v2519_v4  ;;  %v2893_v35 = vld [vmem:[#allocation2 + $0x28] sm:$0xf0] }
 0x1a2   : > { %v937_v33 = vpack.c.b16 %v768_v8, %v921_v5  ;;  %v938_v32 = vpack.c.b16 %v922_v28, %v922_v28  ;;  %2001 = vmatpush.bf16.msra.mxu1 %v2982_v17  ;;  %v3003_v8 = vld [vmem:[%s3964_s8 + $0x38] sm:$0xff]  ;;  %v2525_v12 = vld [vmem:[#allocation2 + $0x8] sm:$0xf]  ;;  %v2990_v17 = vld [vmem:[%s3961_s5 + $0x210] sm:$0xff] }
 0x1a3   : > { %v833_v30 = vor.u32 %v831_v7, %v830_v22  ;;  %v868_v40 = vor.u32 %v867_v23, %v828_v6  ;;  %3031 = vmatpush.bf16.msrb.mxu3 %v3003_v8  ;;  %v2961_v6 = vld [vmem:[#allocation2 + $0x20] sm:$0xf0]  ;;  %v2714_v7 = vor.u32 %v2960_v25, %v2711_v3  ;;  %v2526_v59 = vor.u32 %v2890_v50, %v2525_v12  ;;  %v2991_v5 = vld [vmem:[%s3961_s5 + $0x218] sm:$0xff]  ;;  %v2963_v23 = vld [vmem:[#allocation2 + $0x34] sm:$0xf] }
 0x1a4   : > { %970 = vst [vmem:[#allocation2 + $0x54] sm:$0xff] %v937_v33  ;;  %1974 = vmatpush.bf16.msra.mxu0 %v2972_v29  ;;  %v2710_v13 = vor.u32 %v2961_v6, %v2709_v2  ;;  %v2999_v28 = vld [vmem:[%s3964_s8 + $0x18] sm:$0xff]  ;;  %v2531_v33 = vld [vmem:[#allocation2 + $0x24] sm:$0xf0]  ;;  %v2721_v10 = vld [vmem:[#allocation2 + $0x30] sm:$0xf] }
 0x1a5   : > { %v852_v16 = vsel %vm3605_vm15, 0, %v833_v30  ;;  %v887_v27 = vsel %vm3615_vm0, %v868_v40, 0  ;;  %971 = vst [vmem:[#allocation2 + $0x5c] sm:$0xf] %v938_v32  ;;  %v2891_v22 = vld [vmem:[#allocation2 + $0x1c] sm:$0xf]  ;;  %v2726_v40 = vor.u32 %v2963_v23, %v2723_v26 }
 0x1a6   : > { %v923_v45 = vunpack.c.l.b16 %v852_v16  ;;  %v924_v41 = vunpack.c.l.b16 %v887_v27  ;;  %2002 = vmatpush.bf16.msra.mxu1 %v2981_v11  ;;  %v2537_v32 = vld [vmem:[#allocation2 + $0x20] sm:$0xf]  ;;  %v2964_v30 = vld [vmem:[#allocation2 + $0x38] sm:$0xf0]  ;;  %v2534_v42 = vor.u32 %v2891_v22, %v2531_v33  ;;  %v2989_v11 = vld [vmem:[%s3961_s5 + $0x208] sm:$0xff] }
 0x1a7   : > { %3032 = vmatpush.bf16.msrb.mxu3 %v3002_v19  ;;  %v2538_v31 = vor.u32 %v2893_v35, %v2537_v32  ;;  %v2722_v37 = vor.u32 %v2964_v30, %v2721_v10  ;;  %v2997_v43 = vld [vmem:[%s3964_s8 + $0x8] sm:$0xff]  ;;  %v2988_v16 = vld [vmem:[%s3961_s5 + $0x200] sm:$0xff]  ;;  %v2894_v27 = vld [vmem:[#allocation2 + $0x34] sm:$0xf] }
 0x1a8   : > { %v939_v34 = vpack.c.b16 %v3742_v62, %v923_v45  ;;  %v940_v9 = vpack.c.b16 %v924_v41, %v924_v41  ;;  %2025 = vmatpush.bf16.msrb.mxu0 %v2995_v46  ;;  %v2993_v62 = vld [vmem:[%s3961_s5 + $0x228] sm:$0xff]  ;;  %v2543_v15 = vld [vmem:[#allocation2 + $0x3c] sm:$0xf0]  ;;  %v2549_v47 = vld [vmem:[#allocation2 + $0x38] sm:$0xf] }
 0x1a9   : > { %3025 = vmatpush.bf16.msrb.mxu2 %v2993_v62  ;;  %v2966_v45 = vld [vmem:[#allocation2 + $0x4c] sm:$0xf]  ;;  %v2733_v29 = vld [vmem:[#allocation2 + $0x48] sm:$0xf]  ;;  %v2729_v12 = vld [vmem:[#allocation2 + $0x38] sm:$0xf] }
 0x1aa   : > { %972 = vst [vmem:[#allocation2 + $0x60] sm:$0xff] %v939_v34  ;;  %2003 = vmatpush.bf16.msra.mxu1 %v2980_v44  ;;  %v2546_v34 = vor.u32 %v2894_v27, %v2543_v15  ;;  %v2996_v44 = vld [vmem:[%s3964_s8] sm:$0xff]  ;;  %v2897_v46 = vld [vmem:[#allocation2 + $0x4c] sm:$0xf] }
 0x1ab   : > { %973 = vst [vmem:[#allocation2 + $0x68] sm:$0xf] %v940_v9  ;;  %v2409_v48 = vld [vmem:[#allocation2 + $0x54] sm:$0xf]  ;;  %v2933_v57 = vld [vmem:[#allocation2 + $0x58] sm:$0xf]  ;;  %3033 = vmatpush.bf16.msrb.mxu3 %v3001_v63 }
 0x1ac   : > { %2026 = vmatpush.bf16.msrb.mxu0 %v2994_v39  ;;  %v2898_v53 = vld [vmem:[#allocation2 + $0x50] sm:$0xf0]  ;;  %v2417_v60 = vld [vmem:[#allocation2 + $0x5c] sm:$0xf]  ;;  %v2735_v41 = vld [vmem:[#allocation2 + $0x54] sm:$0xf0] }
 0x1ad   : > { %1624 = vmatmul.bf16.gmra.mxu1 %v2542_v24  ;;  %1329 = vmatmul.bf16.gmra.mxu2 %v2398_v51  ;;  %v2554_v49 = vor.u32 %v2898_v53, %v2553_v52  ;;  %v2896_v24 = vld [vmem:[#allocation2 + $0x40] sm:$0xf0]  ;;  %v2967_v51 = vld [vmem:[#allocation2 + $0x50] sm:$0xf0]  ;;  %v2747_v39 = vld [vmem:[#allocation2 + $0x6c] sm:$0xf0] }
 0x1ae   : > { %1358 = vmatmul.bf16.gmra.mxu3 %v2402_v14  ;;  %2178 = vmatpush.bf16.msrb.mxu1 %v3003_v8  ;;  %v2738_v14 = vor.u32 %v2966_v45, %v2735_v41  ;;  %v2550_v9 = vor.u32 %v2896_v24, %v2549_v47  ;;  %v2899_v52 = vld [vmem:[#allocation2 + $0x58] sm:$0xf0]  ;;  %v2965_v50 = vld [vmem:[#allocation2 + $0x40] sm:$0xf0]  ;;  %v2080_v24 = vld [vmem:[%s3845_s28 + $0x30] sm:$0xff] }
 0x1af   : > { %1387 = vmatmul.bf16.gmra.mxu0 %v2406_v56  ;;  %3026 = vmatpush.bf16.msrb.mxu2 %v2992_v54  ;;  %v2734_v56 = vor.u32 %v2967_v51, %v2733_v29  ;;  %v2081_v29 = vld [vmem:[%s3845_s28 + $0x38] sm:$0xff] }
 0x1b0   : > { %2027 = vmatpush.bf16.msrb.mxu0 %v2993_v62  ;;  %3034 = vmatpush.bf16.msrb.mxu3 %v3000_v0 }
 0x1b1   : > { %v2934_v18 = vld [vmem:[#allocation2 + $0x5c] sm:$0xf0]  ;;  %v2411_v58 = vld [vmem:[#allocation2 + $0x60] sm:$0xf0] }
 0x1b2   : > { %2179 = vmatpush.bf16.msrb.mxu1 %v3002_v19  ;;  %v2935_v38 = vld [vmem:[#allocation2 + $0x64] sm:$0xf0]  ;;  %v2410_v55 = vor.u32 %v2934_v18, %v2409_v48  ;;  %v2414_v21 = vor.u32 %v2933_v57, %v2411_v58  ;;  %v2969_v8 = vld [vmem:[#allocation2 + $0x64] sm:$0xf]  ;;  %v2555_v19 = vld [vmem:[#allocation2 + $0x54] sm:$0xf0] }
 0x1b3   : > { %v2418_v61 = vor.u32 %v2935_v38, %v2417_v60  ;;  %3027 = vmatpush.bf16.msrb.mxu2 %v2991_v5  ;;  %v2561_v48 = vld [vmem:[#allocation2 + $0x50] sm:$0xf]  ;;  %v2745_v53 = vld [vmem:[#allocation2 + $0x60] sm:$0xf]  ;;  %v2970_v18 = vld [vmem:[#allocation2 + $0x68] sm:$0xf0]  ;;  %v2750_v57 = vor.u32 %v2969_v8, %v2747_v39  ;;  %v2558_v58 = vor.u32 %v2897_v46, %v2555_v19 }
 0x1b4   : > { %2028 = vmatpush.bf16.msrb.mxu0 %v2992_v54  ;;  %3035 = vmatpush.bf16.msrb.mxu3 %v2999_v28  ;;  %v2562_v60 = vor.u32 %v2899_v52, %v2561_v48  ;;  %v2746_v38 = vor.u32 %v2970_v18, %v2745_v53  ;;  %v2753_v53 = vld [vmem:[#allocation2 + $0x68] sm:$0xf]  ;;  %v2971_v18 = vld [vmem:[#allocation2 + $0x70] sm:$0xf0] }
 0x1b6   : > { %2180 = vmatpush.bf16.msrb.mxu1 %v3001_v63 }
 0x1b7   : > { %3028 = vmatpush.bf16.msrb.mxu2 %v2990_v17 }
 0x1b8   : > { %2029 = vmatpush.bf16.msrb.mxu0 %v2991_v5  ;;  %3036 = vmatpush.bf16.msrb.mxu3 %v2998_v20 }
 0x1ba   : > { %2181 = vmatpush.bf16.msrb.mxu1 %v3000_v0 }
 0x1bb   : > { %3029 = vmatpush.bf16.msrb.mxu2 %v2989_v11 }
 0x1bc   : > { %2030 = vmatpush.bf16.msrb.mxu0 %v2990_v17  ;;  %3037 = vmatpush.bf16.msrb.mxu3 %v2997_v43  ;;  %v2078_v17 = vld [vmem:[%s3845_s28 + $0x20] sm:$0xff] }
 0x1bd   : > { %1629 = vmatmul.bf16.gmra.mxu1 %v2554_v49  ;;  %1334 = vmatmul.bf16.gmra.mxu2 %v2410_v55  ;;  %v2074_v49 = vld [vmem:[%s3845_s28] sm:$0xff]  ;;  %v2075_v55 = vld [vmem:[%s3845_s28 + $0x8] sm:$0xff]  ;;  %v2086_v32 = vpack.c.bf16 %v2078_v17, %v2078_v17 }
 0x1be   : > { %1363 = vmatmul.bf16.gmra.mxu3 %v2414_v21  ;;  %2182 = vmatpush.bf16.msrb.mxu1 %v2999_v28  ;;  %v2076_v21 = vld [vmem:[%s3845_s28 + $0x10] sm:$0xff]  ;;  %v2082_v62 = vpack.c.bf16 %v2074_v49, %v2074_v49  ;;  %v2083_v63 = vpack.c.bf16 %v2075_v55, %v2075_v55  ;;  %v2754_v55 = vor.u32 %v2971_v18, %v2753_v53 }
 0x1bf   : > { %1392 = vmatmul.bf16.gmra.mxu0 %v2418_v61  ;;  %3030 = vmatpush.bf16.msrb.mxu2 %v2988_v16  ;;  %v2077_v61 = vld [vmem:[%s3845_s28 + $0x18] sm:$0xff]  ;;  %v2084_v54 = vpack.c.bf16 %v2076_v21, %v2076_v21 }
 0x1c0   : > { %2031 = vmatpush.bf16.msrb.mxu0 %v2989_v11  ;;  %3038 = vmatpush.bf16.msrb.mxu3 %v2996_v44  ;;  %v2085_v0 = vpack.c.bf16 %v2077_v61, %v2077_v61  ;;  %v2114_v1 = vunpack.c.l.b16 %v2082_v62  ;;  %v2115_v25 = vunpack.c.l.b16 %v2083_v63  ;;  %v2741_v11 = vld [vmem:[#allocation2 + $0x50] sm:$0xf] }
 0x1c1   : > { %v2116_v3 = vunpack.c.l.b16 %v2084_v54 }
 0x1c2   : > { %2183 = vmatpush.bf16.msrb.mxu1 %v2998_v20  ;;  %v2117_v4 = vunpack.c.l.b16 %v2085_v0  ;;  %v2122_v2 = vpack.c.b16 %v2115_v25, %v2114_v1  ;;  %v2079_v20 = vld [vmem:[%s3845_s28 + $0x28] sm:$0xff] }
 0x1c3   : > { %v2087_v35 = vpack.c.bf16 %v2079_v20, %v2079_v20 }
 0x1c4   : > { %2032 = vmatpush.bf16.msrb.mxu0 %v2988_v16 }
 0x1c6   : > { %2184 = vmatpush.bf16.msrb.mxu1 %v2997_v43  ;;  %v2968_v43 = vld [vmem:[#allocation2 + $0x58] sm:$0xf0] }
 0x1c7   : > { %v2742_v15 = vor.u32 %v2968_v43, %v2741_v11 }
 0x1ca   : > { %2185 = vmatpush.bf16.msrb.mxu1 %v2996_v44  ;;  %v2088_v44 = vpack.c.bf16 %v2080_v24, %v2080_v24 }
 0x1cc   : > { %v2120_v39 = vunpack.c.l.b16 %v2088_v44 }
 0x1cd   : > { %2004 = vmatmul.bf16.vlgmr.msra.gmra.mxu1 %v2714_v7  ;;  %1643 = vmatmul.bf16.vlgmr.msra.gmra.mxu2 %v2522_v36  ;;  %v2123_v7 = vpack.c.b16 %v2117_v4, %v2116_v3  ;;  %v2717_v36 = vld [vmem:[#allocation2 + $0x20] sm:$0xf] }
 0x1ce   : > { %1672 = vmatmul.bf16.vlgmr.msra.gmra.mxu3 %v2526_v59  ;;  %v2962_v59 = vld [vmem:[#allocation2 + $0x28] sm:$0xf0] }
 0x1cf   : > { %1975 = vmatmul.bf16.vlgmr.msra.gmra.mxu0 %v2710_v13  ;;  %v2730_v13 = vor.u32 %v2965_v50, %v2729_v12  ;;  %v2718_v28 = vor.u32 %v2962_v59, %v2717_v36 }
 0x1dd   : > { %2009 = vmatmul.bf16.gmra.mxu1 %v2726_v40  ;;  %1648 = vmatmul.bf16.gmra.mxu2 %v2534_v42  ;;  %v2118_v40 = vunpack.c.l.b16 %v2086_v32  ;;  %v2119_v42 = vunpack.c.l.b16 %v2087_v35 }
 0x1de   : > { %1677 = vmatmul.bf16.gmra.mxu3 %v2538_v31 }
 0x1df   : > { %1980 = vmatmul.bf16.gmra.mxu0 %v2722_v37  ;;  %v2124_v45 = vpack.c.b16 %v2119_v42, %v2118_v40 }
 0x1ed   : > { %2014 = vmatmul.bf16.gmra.mxu1 %v2738_v14  ;;  %1653 = vmatmul.bf16.gmra.mxu2 %v2546_v34 }
 0x1ee   : > { %1682 = vmatmul.bf16.gmra.mxu3 %v2550_v9 }
 0x1ef   : > { %1985 = vmatmul.bf16.gmra.mxu0 %v2734_v56  ;;  %v2089_v56 = vpack.c.bf16 %v2081_v29, %v2081_v29 }
 0x1f1   : > { %v2121_v19 = vunpack.c.l.b16 %v2089_v56 }
 0x1fd   : > { %2019 = vmatmul.bf16.gmra.mxu1 %v2750_v57  ;;  %1658 = vmatmul.bf16.gmra.mxu2 %v2558_v58 }
 0x1fe   : > { %1687 = vmatmul.bf16.gmra.mxu3 %v2562_v60  ;;  %v2125_v60 = vpack.c.b16 %v2121_v19, %v2120_v39 }
 0x1ff   : > { %1990 = vmatmul.bf16.gmra.mxu0 %v2746_v38 }
 0x20a   : > { %v1615_v6 = vpop.f32.mrf.mxu1 }
 0x20c   : > { %v1378_v5 = vpop.f32.mrf.mxu0 }
 0x20d   : > { %2186 = vmatmul.bf16.vlgmr.msrb.gmra.mxu1 %v2122_v2  ;;  %2038 = vmatmul.bf16.vlgmr.msrb.gmra.mxu2 %v2730_v13 }
 0x20e   : > { %2191 = vmatmul.bf16.vlgmr.msrb.gmra.mxu3 %v2123_v7 }
 0x20f   : > { %2033 = vmatmul.bf16.vlgmr.msrb.gmra.mxu0 %v2718_v28 }
 0x210   : > { %v1320_v22 = vpop.f32.mrf.mxu2 }
 0x211   : > { %v1349_v23 = vpop.f32.mrf.mxu3 }
 0x212   : > { %v1350_v26 = vadd.f32 %v1349_v23, %v1320_v22  ;;  %v1617_v33 = vpop.f32.mrf.mxu1 }
 0x214   : > { %v1379_v10 = vadd.f32 %v1378_v5, %v1350_v26  ;;  %v1380_v30 = vpop.f32.mrf.mxu0 }
 0x216   : > { %v3855_v38 = vadd.f32 %v1615_v6, %v1379_v10 }
 0x218   : > { %v1322_v31 = vpop.f32.mrf.mxu2 }
 0x219   : > { %v1351_v37 = vpop.f32.mrf.mxu3 }
 0x21a   : > { %v1352_v16 = vadd.f32 %v1351_v37, %v1322_v31  ;;  %v1620_v27 = vpop.f32.mrf.mxu1 }
 0x21c   : > { %v1381_v41 = vadd.f32 %v1380_v30, %v1352_v16  ;;  %v1383_v47 = vpop.f32.mrf.mxu0 }
 0x21d   : > { %2043 = vmatmul.bf16.gmra.mxu2 %v2742_v15 }
 0x21e   : > { %2196 = vmatmul.bf16.gmra.mxu3 %v2124_v45  ;;  %v3857_v0 = vadd.f32 %v1617_v33, %v1381_v41 }
 0x220   : > { %v1325_v51 = vpop.f32.mrf.mxu2 }
 0x221   : > { %v1354_v14 = vpop.f32.mrf.mxu3 }
 0x222   : > { %v1355_v34 = vadd.f32 %v1354_v14, %v1325_v51  ;;  %v1622_v9 = vpop.f32.mrf.mxu1 }
 0x224   : > { %v1384_v46 = vadd.f32 %v1383_v47, %v1355_v34  ;;  %v1385_v8 = vpop.f32.mrf.mxu0 }
 0x226   : > { %v1621_v2 = vadd.f32 %v1620_v27, %v1384_v46 }
 0x228   : > { %v1327_v48 = vpop.f32.mrf.mxu2 }
 0x229   : > { %v1356_v52 = vpop.f32.mrf.mxu3 }
 0x22a   : > { %v1357_v57 = vadd.f32 %v1356_v52, %v1327_v48  ;;  %v1625_v58 = vpop.f32.mrf.mxu1 }
 0x22c   : > { %v1386_v49 = vadd.f32 %v1385_v8, %v1357_v57  ;;  %v1388_v21 = vpop.f32.mrf.mxu0 }
 0x22d   : > { %2048 = vmatmul.bf16.gmra.mxu2 %v2754_v55 }
 0x22e   : > { %2201 = vmatmul.bf16.gmra.mxu3 %v2125_v60  ;;  %v3859_v28 = vadd.f32 %v1622_v9, %v1386_v49 }
 0x230   : > { %v1330_v61 = vpop.f32.mrf.mxu2 }
 0x231   : > { %v1359_v62 = vpop.f32.mrf.mxu3 }
 0x232   : > { %v1360_v63 = vadd.f32 %v1359_v62, %v1330_v61  ;;  %v1627_v54 = vpop.f32.mrf.mxu1 }
 0x234   : > { %v1389_v1 = vadd.f32 %v1388_v21, %v1360_v63  ;;  %v1390_v25 = vpop.f32.mrf.mxu0 }
 0x236   : > { %v3861_v32 = vadd.f32 %v1625_v58, %v1389_v1  ;;  %v3897_v1 = vld [vmem:[%s3962_s6] ss:$0 sm:$0xff] }
 0x238   : > { %v1332_v3 = vpop.f32.mrf.mxu2 }
 0x239   : > { %v1361_v4 = vpop.f32.mrf.mxu3 }
 0x23a   : > { %v1362_v12 = vadd.f32 %v1361_v4, %v1332_v3  ;;  %v1630_v50 = vpop.f32.mrf.mxu1 }
 0x23c   : > { %v1391_v6 = vadd.f32 %v1390_v25, %v1362_v12  ;;  %v1393_v7 = vpop.f32.mrf.mxu0 }
 0x23e   : > { %v3863_v31 = vadd.f32 %v1627_v54, %v1391_v6 }
 0x240   : > { %v1335_v36 = vpop.f32.mrf.mxu2 }
 0x241   : > { %v1364_v59 = vpop.f32.mrf.mxu3 }
 0x242   : > { %v1365_v13 = vadd.f32 %v1364_v59, %v1335_v36  ;;  %v1632_v5 = vpop.f32.mrf.mxu1 }
 0x244   : > { %v1394_v17 = vadd.f32 %v1393_v7, %v1365_v13  ;;  %v1395_v20 = vpop.f32.mrf.mxu0 }
 0x246   : > { %v3865_v27 = vadd.f32 %v1630_v50, %v1394_v17 }
 0x248   : > { %v1337_v22 = vpop.f32.mrf.mxu2 }
 0x249   : > { %v1366_v23 = vpop.f32.mrf.mxu3 }
 0x24a   : > { %v1367_v26 = vadd.f32 %v1366_v23, %v1337_v22  ;;  %v2005_v33 = vpop.f32.mrf.mxu1 }
 0x24c   : > { %v1396_v35 = vadd.f32 %v1395_v20, %v1367_v26  ;;  %v1976_v10 = vpop.f32.mrf.mxu0 }
 0x24d   : > { %v2006_v21 = vadd.f32 %v2005_v33, %v1976_v10 }
 0x24e   : > { %v3867_v24 = vadd.f32 %v1632_v5, %v1396_v35 }
 0x250   : > { %v1644_v30 = vpop.f32.mrf.mxu2 }
 0x251   : > { %v1673_v40 = vpop.f32.mrf.mxu3  ;;  %v1645_v55 = vadd.f32 %v1644_v30, %v3855_v38 }
 0x252   : > { %v2007_v42 = vpop.f32.mrf.mxu1 }
 0x253   : > { %v1674_v62 = vadd.f32 %v1673_v40, %v1645_v55 }
 0x254   : > { %v1978_v37 = vpop.f32.mrf.mxu0 }
 0x255   : > { %v2008_v59 = vadd.f32 %v2007_v42, %v1978_v37 }
 0x258   : > { %v1646_v11 = vpop.f32.mrf.mxu2 }
 0x259   : > { %v1675_v43 = vpop.f32.mrf.mxu3  ;;  %v1647_v12 = vadd.f32 %v1646_v11, %v3857_v0 }
 0x25a   : > { %v2010_v16 = vpop.f32.mrf.mxu1 }
 0x25b   : > { %v1676_v17 = vadd.f32 %v1675_v43, %v1647_v12 }
 0x25c   : > { %v1981_v45 = vpop.f32.mrf.mxu0 }
 0x25d   : > { %v2011_v3 = vadd.f32 %v2010_v16, %v1981_v45 }
 0x260   : > { %v1649_v41 = vpop.f32.mrf.mxu2 }
 0x261   : > { %v1678_v15 = vpop.f32.mrf.mxu3  ;;  %v1650_v63 = vadd.f32 %v1649_v41, %v1621_v2  ;;  %v3904_v2 = vld [vmem:[%s3965_s9] ss:$0 sm:$0xff] }
 0x262   : > { %v2012_v47 = vpop.f32.mrf.mxu1 }
 0x263   : > { %v1679_v7 = vadd.f32 %v1678_v15, %v1650_v63 }
 0x264   : > { %v1983_v29 = vpop.f32.mrf.mxu0 }
 0x265   : > { %v2013_v33 = vadd.f32 %v2012_v47, %v1983_v29 }
 0x268   : > { %v1651_v51 = vpop.f32.mrf.mxu2 }
 0x269   : > { %v1680_v14 = vpop.f32.mrf.mxu3  ;;  %v1652_v20 = vadd.f32 %v1651_v51, %v3859_v28 }
 0x26a   : > { %v2015_v34 = vpop.f32.mrf.mxu1 }
 0x26b   : > { %v1681_v37 = vadd.f32 %v1680_v14, %v1652_v20 }
 0x26c   : > { %v1986_v9 = vpop.f32.mrf.mxu0 }
 0x26d   : > { %v2016_v29 = vadd.f32 %v2015_v34, %v1986_v9 }
 0x270   : > { %v1654_v44 = vpop.f32.mrf.mxu2 }
 0x271   : > { %v1683_v56 = vpop.f32.mrf.mxu3  ;;  %v1655_v41 = vadd.f32 %v1654_v44, %v3861_v32 }
 0x272   : > { %v3869_v46 = vpop.f32.mrf.mxu1 }
 0x274   : > { %v3871_v8 = vpop.f32.mrf.mxu0 }
 0x275   : > { %v2018_v44 = vadd.f32 %v3869_v46, %v3871_v8 }
 0x278   : > { %v3873_v39 = vpop.f32.mrf.mxu2 }
 0x279   : > { %v3875_v19 = vpop.f32.mrf.mxu3 }
 0x27a   : > { %v3877_v48 = vpop.f32.mrf.mxu1 }
 0x27c   : > { %v3879_v52 = vpop.f32.mrf.mxu0 }
 0x280   : > { %v3881_v53 = vpop.f32.mrf.mxu2 }
 0x281   : > { %v3883_v18 = vpop.f32.mrf.mxu3 }
 0x282   : > { %v3887_v58 = vpop.f32.mrf.mxu1 }
 0x284   : > { %v3885_v57 = vpop.f32.mrf.mxu0 }
 0x288   : > { %v3889_v60 = vpop.f32.mrf.mxu2 }
 0x289   : > { %v3891_v49 = vpop.f32.mrf.mxu3 }
 0x28a   : > { %v2187_v25 = vpop.f32.mrf.mxu1 }
 0x28c   : > { %v2034_v61 = vpop.f32.mrf.mxu0 }
 0x28d   : > { %v2035_v54 = vadd.f32 %v2034_v61, %v2006_v21  ;;  %v1684_v21 = vadd.f32 %v1683_v56, %v1655_v41 }
 0x28f   : > { %v2054_v4 = vadd.f32 %v2035_v54, %v1674_v62  ;;  %v1657_v54 = vadd.f32 %v3873_v39, %v3863_v31  ;;  %v2021_v39 = vadd.f32 %v3877_v48, %v3879_v52  ;;  %v2023_v48 = vadd.f32 %v3887_v58, %v3885_v57 }
 0x290   : > { %v2039_v50 = vpop.f32.mrf.mxu2 }
 0x291   : > { %v2192_v6 = vpop.f32.mrf.mxu3  ;;  %v2040_v38 = vadd.f32 %v2039_v50, %v2011_v3  ;;  %v2066_v36 = vadd.f32 %v3897_v1, %v2054_v4  ;;  %v1660_v50 = vadd.f32 %v3881_v53, %v3865_v27  ;;  %v1662_v27 = vadd.f32 %v3889_v60, %v3867_v24 }
 0x292   : > { %v2189_v30 = vpop.f32.mrf.mxu1 }
 0x293   : > { %v2056_v13 = vadd.f32 %v2040_v38, %v1679_v7  ;;  %v2207_v5 = vadd.f32 %v2187_v25, %v2066_v36  ;;  %v1686_v25 = vadd.f32 %v3875_v19, %v1657_v54 }
 0x294   : > { %v2036_v0 = vpop.f32.mrf.mxu0 }
 0x295   : > { %v2219_v22 = vadd.f32 %v3904_v2, %v2207_v5  ;;  %v2068_v23 = vadd.f32 %v3897_v1, %v2056_v13  ;;  %v2037_v26 = vadd.f32 %v2036_v0, %v2008_v59  ;;  %v1691_v13 = vadd.f32 %v3891_v49, %v1662_v27 }
 0x297   : > { %2227 = vst [vmem:[%s3911_s17] sm:$0xff] %v2219_v22  ;;  %v2209_v35 = vadd.f32 %v2192_v6, %v2068_v23  ;;  %v2055_v10 = vadd.f32 %v2037_v26, %v1676_v17  ;;  %v1689_v6 = vadd.f32 %v3883_v18, %v1660_v50 }
 0x298   : > { %v2041_v40 = vpop.f32.mrf.mxu2 }
 0x299   : > { %v2194_v42 = vpop.f32.mrf.mxu3  ;;  %v2221_v11 = vadd.f32 %v3904_v2, %v2209_v35  ;;  %v2042_v43 = vadd.f32 %v2041_v40, %v2013_v33  ;;  %v2067_v28 = vadd.f32 %v3897_v1, %v2055_v10 }
 0x29b   : > { %2229 = vst [vmem:[%s3911_s17 + $0x10] sm:$0xff] %v2221_v11  ;;  %v2057_v16 = vadd.f32 %v2042_v43, %v1681_v37  ;;  %v2208_v45 = vadd.f32 %v2189_v30, %v2067_v28 }
 0x29d   : > { %v2220_v15 = vadd.f32 %v3904_v2, %v2208_v45  ;;  %v2069_v47 = vadd.f32 %v3897_v1, %v2057_v16 }
 0x29f   : > { %2228 = vst [vmem:[%s3911_s17 + $0x8] sm:$0xff] %v2220_v15  ;;  %v2210_v51 = vadd.f32 %v2194_v42, %v2069_v47 }
 0x2a0   : > { %v2044_v55 = vpop.f32.mrf.mxu2 }
 0x2a1   : > { %v2197_v14 = vpop.f32.mrf.mxu3  ;;  %v2222_v61 = vadd.f32 %v3904_v2, %v2210_v51  ;;  %v2045_v62 = vadd.f32 %v2044_v55, %v2016_v29 }
 0x2a3   : > { %2230 = vst [vmem:[%s3911_s17 + $0x18] sm:$0xff] %v2222_v61  ;;  %v2058_v63 = vadd.f32 %v2045_v62, %v1684_v21 }
 0x2a5   : > { %v2070_v32 = vadd.f32 %v3897_v1, %v2058_v63 }
 0x2a7   : > { %v2211_v34 = vadd.f32 %v2197_v14, %v2070_v32 }
 0x2a8   : > { %v2046_v9 = vpop.f32.mrf.mxu2 }
 0x2a9   : > { %v2223_v56 = vadd.f32 %v3904_v2, %v2211_v34  ;;  %v2047_v3 = vadd.f32 %v2046_v9, %v2018_v44  ;;  %v2199_v4 = vpop.f32.mrf.mxu3 }
 0x2ab   : > { %2231 = vst [vmem:[%s3911_s17 + $0x20] sm:$0xff] %v2223_v56  ;;  %v2059_v12 = vadd.f32 %v2047_v3, %v1686_v25 }
 0x2ad   : > { %v2071_v31 = vadd.f32 %v3897_v1, %v2059_v12 }
 0x2af   : > { %v2212_v46 = vadd.f32 %v2199_v4, %v2071_v31 }
 0x2b0   : > { %v2049_v8 = vpop.f32.mrf.mxu2 }
 0x2b1   : > { %v2224_v19 = vadd.f32 %v3904_v2, %v2212_v46  ;;  %v2050_v7 = vadd.f32 %v2049_v8, %v2021_v39  ;;  %v2202_v36 = vpop.f32.mrf.mxu3 }
 0x2b3   : > { %2232 = vst [vmem:[%s3911_s17 + $0x28] sm:$0xff] %v2224_v19  ;;  %v2060_v38 = vadd.f32 %v2050_v7, %v1689_v6 }
 0x2b5   : > { %v2072_v53 = vadd.f32 %v3897_v1, %v2060_v38 }
 0x2b7   : > { %v2213_v52 = vadd.f32 %v2202_v36, %v2072_v53 }
 0x2b8   : > { %v2051_v59 = vpop.f32.mrf.mxu2 }
 0x2b9   : > { %v2225_v18 = vadd.f32 %v3904_v2, %v2213_v52  ;;  %v2052_v5 = vadd.f32 %v2051_v59, %v2023_v48  ;;  %v2204_v20 = vpop.f32.mrf.mxu3 }
 0x2bb   : > { %2233 = vst [vmem:[%s3911_s17 + $0x30] sm:$0xff] %v2225_v18  ;;  %v2061_v17 = vadd.f32 %v2052_v5, %v1691_v13 }
 0x2bd   : > { %v2073_v0 = vadd.f32 %v3897_v1, %v2061_v17 }
 0x2bf   : > { %v2214_v22 = vadd.f32 %v2204_v20, %v2073_v0 }
 0x2c1   : > { %v2226_v24 = vadd.f32 %v3904_v2, %v2214_v22 }
 0x2c3   : > { %2234 = vst [vmem:[%s3911_s17 + $0x38] sm:$0xff] %v2226_v24 }
 0x2c4 PF: > { %s20_s13 = sadd.s32 1, %s3093_s13  }
 0x2c5   : > { %p17_p4 = scmp.ge.s32.totalorder %s20_s13, 4  }
 0x2c7   :  { %19 = sbr.rel (!%p17_p4) target bundleno = 1 (0x1), region = 98 }

</bundles_post_ra>
